<compile_context>
chip_gen: v7x
topology: tpu7x:2x2x1
jax: 0.10.0
libtpu: 0.0.40
codegen_flags: <defaults>
</compile_context>

<pallas_src>
import functools
import math

import jax
import jax.numpy as jnp
from jax import lax
from jax.experimental import pallas as pl
from jax.experimental.pallas import tpu as pltpu

EPS = 1e-5
F32 = jnp.float32
BF16 = jnp.bfloat16


def _vmem_limit_bytes():
    # Per-generation VMEM sizing (v7x has 64 MiB physical vs 128 MiB on v5e/v6e).
    try:
        cap = int(pltpu.get_tpu_info().vmem_capacity_bytes)
    except Exception:
        cap = 64 * 1024 * 1024
    return min((cap * 3) // 4, 96 * 1024 * 1024)


_VMEM_LIMIT = _vmem_limit_bytes()


def _cparams(dim_sem=None):
    kw = dict(vmem_limit_bytes=_VMEM_LIMIT)
    if dim_sem is not None:
        kw["dimension_semantics"] = dim_sem
    return pltpu.CompilerParams(**kw)


def _vmem_spec():
    return pl.BlockSpec(memory_space=pltpu.MemorySpace.VMEM)


# ----------------------------------------------------------------------------
# Fused conv kernel:  [BN+ReLU of previous conv] (+ MaxPool) + Conv1d(k=3) + stats
# ----------------------------------------------------------------------------
def conv_bn_kernel(*refs, first_layer, pool_input, reduce_max, mask_last):
    """One batch tile per grid step.

    refs (first layer):      x_ref, w_ref, y_ref, stats_ref
    refs (all other layers): x_ref, bn_ref, w_ref, y_ref, stats_ref
      x_ref:  (Bt, L, Cin) raw previous conv output (bf16); (Bt, L, 2*Cin) with time
              pairs packed on lanes when pool_input (free wrapper reshape);
              first layer: (Bt, L, 1) f32 raw input.
      bn_ref: (2, Cin) f32 rows [rstd, -mean*rstd] of the previous conv (pre-reduced).
      w_ref:  (Cin, 3*Cout) tap-concatenated weight, taps ordered [l-1, l, l+1].
      y_ref:  (Bt, L, Cout) bf16 raw conv output, or (Bt, 1, Cout) f32 per-sample
              row-max when reduce_max (block 3: maxpool + global max commute with BN+ReLU).
      stats_ref: (1, 2, Cout) f32 partial [sum, sum(x^2)] over this tile's Bt*L rows.
    """
    if first_layer:
        x_ref, w_ref, y_ref, stats_ref = refs
    else:
        x_ref, bn_ref, w_ref, y_ref, stats_ref = refs

    x = x_ref[...]
    bt, l = x.shape[0], x.shape[1]
    m = bt * l
    x2 = x.reshape(m, x.shape[2])                        # free leading-dim merge

    if first_layer:
        a = x2.astype(F32)                               # (M, 1) raw input, no BN
    else:
        xf = x2.astype(F32)
        if pool_input:
            c = xf.shape[1] // 2
            # MaxPool1d(2,2) on the RAW previous output (exact: BN+ReLU are monotone).
            xf = jnp.maximum(xf[:, :c], xf[:, c:])
        bn = bn_ref[...]
        a = jnp.maximum(xf * bn[0:1, :] + bn[1:2, :], 0.0)   # BN + ReLU in-register
        a = a.astype(BF16)                               # MXU operand

    if first_layer:
        # Cin == 1: VPU broadcast outer product instead of a badly padded MXU matmul.
        z = a * w_ref[...]                               # (M, 3*Cout) f32
    else:
        z = jnp.dot(a, w_ref[...], preferred_element_type=F32)   # single MXU matmul

    cout = z.shape[1] // 3
    local = lax.broadcasted_iota(jnp.int32, (bt, l, cout), 1).reshape(m, cout)

    # y[l] = z0[l-1] + z1[l] + z2[l+1], zero padding outside [0, L).  The row masks
    # also kill cross-batch-element wrap-around from the flat 2-D rolls.
    y = z[:, cout:2 * cout]
    zp = pltpu.roll(z[:, :cout], shift=1, axis=0)
    y = y + jnp.where(local == 0, 0.0, zp)
    zn = pltpu.roll(z[:, 2 * cout:], shift=m - 1, axis=0)
    y = y + jnp.where(local == l - 1, 0.0, zn)

    # BatchNorm partial statistics (f32) over all un-pooled rows of this tile.
    # TODO(synk): E[x^2]-mean^2 can cancel for very large B*L; a shifted accumulation
    #             would be more robust (values here are post-ReLU-activation scale).
    stats_ref[0, 0:1, :] = jnp.sum(y, axis=0, keepdims=True)
    stats_ref[0, 1:2, :] = jnp.sum(y * y, axis=0, keepdims=True)

    if reduce_max:
        ym = jnp.where(local == l - 1, -jnp.inf, y) if mask_last else y
        y_ref[...] = jnp.max(ym.reshape(bt, l, cout), axis=1, keepdims=True)
    else:
        y_ref[...] = y.reshape(bt, l, cout).astype(y_ref.dtype)


# ----------------------------------------------------------------------------
# Head: bytecode BN+ReLU on maxima, sourcecode Linear+BN+ReLU, final Linear, sigmoid
# ----------------------------------------------------------------------------
def head_kernel(bmax_ref, bn_b_ref, src_ref, w_fc_ref, b_fc_ref,
                wf_b_ref, wf_s_ref, bf_ref, pred_ref, brep_ref, srep_ref):
    bn_b = bn_b_ref[...]
    byte_rep = jnp.maximum(bmax_ref[...] * bn_b[0:1, :] + bn_b[1:2, :], 0.0)

    h = jnp.dot(src_ref[...], w_fc_ref[...], preferred_element_type=F32) + b_fc_ref[...]
    mean_s = jnp.mean(h, axis=0, keepdims=True)
    var_s = jnp.maximum(jnp.mean(h * h, axis=0, keepdims=True) - mean_s * mean_s, 0.0)
    src_rep = jnp.maximum((h - mean_s) * lax.rsqrt(var_s + EPS), 0.0)

    # final_fc over concat([byte_rep, src_rep]) as two matmuls (no in-kernel concat).
    logit = (jnp.dot(byte_rep, wf_b_ref[...], preferred_element_type=F32)
             + jnp.dot(src_rep, wf_s_ref[...], preferred_element_type=F32)
             + bf_ref[...])
    e = jnp.exp(-jnp.abs(logit))                         # numerically stable sigmoid
    pred_ref[...] = jnp.where(logit >= 0.0, 1.0 / (1.0 + e), e / (1.0 + e))
    brep_ref[...] = byte_rep
    srep_ref[...] = src_rep


# ----------------------------------------------------------------------------
# Wrappers
# ----------------------------------------------------------------------------
def _largest_divisor_at_most(n, cap):
    best = 1
    for d in range(1, n + 1):
        if n % d == 0 and d <= cap:
            best = d
    return best


def _pick_batch_tile(b, rows, in_width, in_bytes, out_rows, cout):
    """Batch elements per grid step: as many as fit a conservative VMEM budget, but
    keep >= 2 grid steps when possible so the 'parallel' batch axis can split across
    the two TensorCores of a v7x megacore."""
    lanes = 128
    per_elem = (
        rows * max(in_width, lanes) * in_bytes * 2        # input, double-buffered
        + out_rows * max(cout, lanes) * 4 * 2             # output, double-buffered
        + rows * 3 * max(cout, lanes) * 4                 # z = tap-concat matmul result
        + rows * max(cout, lanes) * 4 * 3                 # y / rolled tap / mask working set
    )
    budget = 20 * 1024 * 1024
    cap = max(1, budget // max(per_elem, 1))
    bt = _largest_divisor_at_most(b, cap)
    if bt == b and b > 1:
        bt = _largest_divisor_at_most(b, max(1, b // 2))
    return bt


def conv_layer(x, w, bn=None, *, first_layer=False, pool_input=False,
               reduce_max=False, mask_last=False):
    """One fused conv call.  x: (B, rows, in_width); w: (Cin, 3*Cout)."""
    b, rows, in_width = x.shape
    cin = in_width // 2 if pool_input else in_width
    cout = w.shape[-1] // 3
    out_rows = 1 if reduce_max else rows
    in_bytes = jnp.dtype(x.dtype).itemsize
    bt = _pick_batch_tile(b, rows, in_width, in_bytes, out_rows, cout)
    grid = (b // bt,)

    in_specs = [pl.BlockSpec((bt, rows, in_width), lambda i: (i, 0, 0))]
    args = [x]
    if not first_layer:
        in_specs.append(pl.BlockSpec((2, cin), lambda i: (0, 0)))
        args.append(bn)
    in_specs.append(pl.BlockSpec(w.shape, lambda i: (0, 0)))
    args.append(w)

    y_dtype = F32 if reduce_max else BF16
    out_shape = (
        jax.ShapeDtypeStruct((b, out_rows, cout), y_dtype),
        jax.ShapeDtypeStruct((grid[0], 2, cout), F32),
    )
    out_specs = (
        pl.BlockSpec((bt, out_rows, cout), lambda i: (i, 0, 0)),
        pl.BlockSpec((1, 2, cout), lambda i: (i, 0, 0)),
    )
    kern = functools.partial(conv_bn_kernel, first_layer=first_layer,
                             pool_input=pool_input, reduce_max=reduce_max,
                             mask_last=mask_last)
    # TODO(synk): on v6e (128 MiB VMEM) a 3-deep input pipeline (pl.Buffered(3)) may
    #             hide residual DMA latency; left at the default depth here.
    return pl.pallas_call(
        kern, grid=grid, in_specs=in_specs, out_specs=out_specs,
        out_shape=out_shape,
        compiler_params=_cparams(("parallel",)),
    )(*args)


def _bn_scale_shift(stats, count):
    """Host-side (plain JAX) reduction of per-tile BN partials -> (2,C) [rstd, -mean*rstd]."""
    s = jnp.sum(stats, axis=0)                           # (2, C) f32
    mean = s[0] * (1.0 / count)
    var = jnp.maximum(s[1] * (1.0 / count) - mean * mean, 0.0)
    rstd = lax.rsqrt(var + EPS)
    return jnp.stack([rstd, -mean * rstd], axis=0)


def sbfusion_forward(params, input_sourcecode, input_bytecode):
    b, seq_len = input_bytecode.shape
    assert seq_len % 4 == 0, "two MaxPool1d(2,2) stages require seq_len % 4 == 0"
    l1, l2, l3 = seq_len, seq_len // 2, seq_len // 4

    # TODO(synk): the (B, L, 1) first-layer input pads its 1-wide lane dim to 128 in
    #             VMEM; a lane-dense first-layer layout is future work (tiny tensor).
    x0 = input_bytecode.reshape(b, l1, 1).astype(F32)

    # block 1
    y1a, s1a = conv_layer(x0, params["w1a"], first_layer=True)          # (B,L,64) bf16
    bn1a = _bn_scale_shift(s1a, b * l1)
    y1b, s1b = conv_layer(y1a, params["w1b"], bn1a)                     # (B,L,64) bf16
    bn1b = _bn_scale_shift(s1b, b * l1)

    # block 2 — consumes block 1's raw output; block 1's second BN+ReLU and its
    # MaxPool1d(2,2) are fused into this call (pool-before-BN is exact: monotone).
    y2a, s2a = conv_layer(y1b.reshape(b, l2, 2 * 64), params["w2a"], bn1b,
                          pool_input=True)                              # (B,L/2,128)
    bn2a = _bn_scale_shift(s2a, b * l2)
    y2b, s2b = conv_layer(y2a, params["w2b"], bn2a)                     # (B,L/2,128)
    bn2b = _bn_scale_shift(s2b, b * l2)

    # block 3 — final conv emits only per-sample raw maxima (maxpool + global max
    # commute with BN+ReLU); its BN is applied in the head kernel.
    y3a, s3a = conv_layer(y2b.reshape(b, l3, 2 * 128), params["w3a"], bn2b,
                          pool_input=True)                              # (B,L/4,256)
    bn3a = _bn_scale_shift(s3a, b * l3)
    bmax, s3b = conv_layer(y3a, params["w3b"], bn3a, reduce_max=True,
                           mask_last=(l3 % 2 == 1))                     # (B,1,256) f32
    bn3b = _bn_scale_shift(s3b, b * l3)

    classes_num = params["b_final"].shape[1]
    pred, byte_rep, src_rep = pl.pallas_call(
        head_kernel,
        out_shape=(
            jax.ShapeDtypeStruct((b, classes_num), F32),
            jax.ShapeDtypeStruct((b, 256), F32),
            jax.ShapeDtypeStruct((b, 256), F32),
        ),
        in_specs=[_vmem_spec()] * 8,
        out_specs=(_vmem_spec(), _vmem_spec(), _vmem_spec()),
        compiler_params=_cparams(),
    )(bmax.reshape(b, 256), bn3b, input_sourcecode.astype(F32),
      params["w_fc"], params["b_fc"], params["wf_byte"], params["wf_src"],
      params["b_final"])
    return pred, byte_rep, src_rep


# ----------------------------------------------------------------------------
# Deterministic parameter init (mirrors init_layer / init_bn shapes & scales)
# ----------------------------------------------------------------------------
def _uniform_init(key, shape, n):
    scale = math.sqrt(2.0 / n) * math.sqrt(3.0)
    return jax.random.uniform(key, shape, F32, -scale, scale)


def _conv_w(key, cin, cout, dtype):
    # taps ordered [x(l-1), x(l), x(l+1)]; stored tap-concatenated as (Cin, 3*Cout).
    w = _uniform_init(key, (3, cin, cout), cin * 3)
    return jnp.transpose(w, (1, 0, 2)).reshape(cin, 3 * cout).astype(dtype)


def init_params(key, classes_num):
    k = jax.random.split(key, 8)
    p = {}
    # First conv stays f32 (VPU path; v5e has no bf16 VALU); the rest are bf16 MXU operands.
    p["w1a"] = _conv_w(k[0], 1, 64, F32)
    p["w1b"] = _conv_w(k[1], 64, 64, BF16)
    p["w2a"] = _conv_w(k[2], 64, 128, BF16)
    p["w2b"] = _conv_w(k[3], 128, 128, BF16)
    p["w3a"] = _conv_w(k[4], 128, 256, BF16)
    p["w3b"] = _conv_w(k[5], 256, 256, BF16)
    # sourcecode_fc (256 -> 256), bias = 0
    p["w_fc"] = _uniform_init(k[6], (256, 256), 256)
    p["b_fc"] = jnp.zeros((1, 256), F32)
    # final_fc (512 -> classes), bias = 0; split rows for byte / source halves
    w_final = _uniform_init(k[7], (512, classes_num), 512)
    p["wf_byte"] = w_final[:256]
    p["wf_src"] = w_final[256:]
    p["b_final"] = jnp.zeros((1, classes_num), F32)
    return p


# ----------------------------------------------------------------------------
if __name__ == "__main__":
    classes_num = 10
    B, seq_len, src_dim = 2, 64, 256

    root = jax.random.PRNGKey(0)
    kp, ks, kb = jax.random.split(root, 3)
    params = init_params(kp, classes_num)

    input_sourcecode = jax.random.normal(ks, (B, src_dim), F32)
    input_bytecode = jax.random.normal(kb, (B, seq_len), F32)

    fwd = jax.jit(sbfusion_forward)
    teacher_prediction, byte_rep, src_rep = fwd(params, input_sourcecode,
                                                input_bytecode)
    jax.block_until_ready((teacher_prediction, byte_rep, src_rep))

    assert teacher_prediction.shape == (B, classes_num)
    assert byte_rep.shape == (B, 256)
    assert src_rep.shape == (B, 256)
    assert bool(jnp.all(jnp.isfinite(teacher_prediction)))
    assert bool(jnp.all((teacher_prediction >= 0.0) & (teacher_prediction <= 1.0)))
    print("KERNEL_OK")
</pallas_src>

<mosaic_0001>
module attributes {stable_mosaic.version = 11 : i64} {
  func.func @conv_bn_kernel(%arg0: i32, %arg1: memref<1x64x1xf32, #tpu.memory_space<vmem>>, %arg2: memref<1x192xf32, #tpu.memory_space<vmem>>, %arg3: memref<1x64x64xbf16, #tpu.memory_space<vmem>>, %arg4: memref<1x2x64xf32, #tpu.memory_space<vmem>>) attributes {dimension_semantics = [#tpu.dimension_semantics<parallel>], iteration_bounds = array<i64: 2>, scalar_prefetch = 0 : i64, scratch_operands = 0 : i64, tpu.core_type = #tpu.core_type<tc>, window_params = [{transform_indices = @transform_0, window_bounds = array<i64: 1, 64, 1>}, {pipeline_mode = #tpu.pipeline_mode<synchronous>, transform_indices = @transform_1, window_bounds = array<i64: 1, 192>}, {transform_indices = @transform_2, window_bounds = array<i64: 1, 64, 64>}, {transform_indices = @transform_3, window_bounds = array<i64: 1, 2, 64>}]} {
    %c0 = arith.constant 0 : index
    %c0_0 = arith.constant 0 : index
    %c0_1 = arith.constant 0 : index
    %0 = vector.load %arg1[%c0, %c0_0, %c0_1] : memref<1x64x1xf32, #tpu.memory_space<vmem>>, vector<1x64x1xf32>
    %1 = vector.shape_cast %0 : vector<1x64x1xf32> to vector<64x1xf32>
    %c0_2 = arith.constant 0 : index
    %c0_3 = arith.constant 0 : index
    %2 = vector.load %arg2[%c0_2, %c0_3] : memref<1x192xf32, #tpu.memory_space<vmem>>, vector<1x192xf32>
    %3 = vector.broadcast %1 : vector<64x1xf32> to vector<64x192xf32>
    %4 = vector.broadcast %2 : vector<1x192xf32> to vector<64x192xf32>
    %5 = arith.mulf %3, %4 : vector<64x192xf32>
    %6 = tpu.iota {dimensions = array<i32: 1>} : vector<1x64x64xi32>
    %7 = vector.shape_cast %6 : vector<1x64x64xi32> to vector<64x64xi32>
    %8 = vector.extract_strided_slice %5 {offsets = [0, 64], sizes = [64, 64], strides = [1, 1]} : vector<64x192xf32> to vector<64x64xf32>
    %9 = vector.extract_strided_slice %5 {offsets = [0, 0], sizes = [64, 64], strides = [1, 1]} : vector<64x192xf32> to vector<64x64xf32>
    %c1_i32 = arith.constant 1 : i32
    %10 = tpu.dynamic_rotate %9 by %c1_i32 dim 0 : vector<64x64xf32>, i32 -> vector<64x64xf32>
    %c0_i32 = arith.constant 0 : i32
    %11 = vector.broadcast %c0_i32 : i32 to vector<64x64xi32>
    %12 = arith.cmpi eq, %7, %11 : vector<64x64xi32>
    %cst = arith.constant 0.000000e+00 : f32
    %13 = vector.broadcast %cst : f32 to vector<64x64xf32>
    %14 = arith.select %12, %13, %10 : vector<64x64xi1>, vector<64x64xf32>
    %15 = arith.addf %8, %14 : vector<64x64xf32>
    %16 = vector.extract_strided_slice %5 {offsets = [0, 128], sizes = [64, 64], strides = [1, 1]} : vector<64x192xf32> to vector<64x64xf32>
    %c63_i32 = arith.constant 63 : i32
    %17 = tpu.dynamic_rotate %16 by %c63_i32 dim 0 : vector<64x64xf32>, i32 -> vector<64x64xf32>
    %c63_i32_4 = arith.constant 63 : i32
    %18 = vector.broadcast %c63_i32_4 : i32 to vector<64x64xi32>
    %19 = arith.cmpi eq, %7, %18 : vector<64x64xi32>
    %cst_5 = arith.constant 0.000000e+00 : f32
    %20 = vector.broadcast %cst_5 : f32 to vector<64x64xf32>
    %21 = arith.select %19, %20, %17 : vector<64x64xi1>, vector<64x64xf32>
    %22 = arith.addf %15, %21 : vector<64x64xf32>
    %cst_6 = arith.constant dense<0.000000e+00> : vector<64xf32>
    %23 = vector.multi_reduction <add>, %22, %cst_6 [0] : vector<64x64xf32> to vector<64xf32>
    %24 = vector.shape_cast %23 : vector<64xf32> to vector<1x64xf32>
    %c0_7 = arith.constant 0 : index
    %c0_8 = arith.constant 0 : index
    %c0_9 = arith.constant 0 : index
    %25 = vector.load %arg4[%c0_7, %c0_8, %c0_9] : memref<1x2x64xf32, #tpu.memory_space<vmem>>, vector<1x1x64xf32>
    %26 = vector.shape_cast %25 : vector<1x1x64xf32> to vector<1x64xf32>
    %27 = vector.shape_cast %24 : vector<1x64xf32> to vector<1x1x64xf32>
    tpu.vector_store %arg4[%c0_7, %c0_8, %c0_9], %27 {strides = array<i32>} : memref<1x2x64xf32, #tpu.memory_space<vmem>>, vector<1x1x64xf32>,
    %28 = arith.mulf %22, %22 : vector<64x64xf32>
    %cst_10 = arith.constant dense<0.000000e+00> : vector<64xf32>
    %29 = vector.multi_reduction <add>, %28, %cst_10 [0] : vector<64x64xf32> to vector<64xf32>
    %30 = vector.shape_cast %29 : vector<64xf32> to vector<1x64xf32>
    %c0_11 = arith.constant 0 : index
    %c1 = arith.constant 1 : index
    %c0_12 = arith.constant 0 : index
    %31 = vector.load %arg4[%c0_11, %c1, %c0_12] : memref<1x2x64xf32, #tpu.memory_space<vmem>>, vector<1x1x64xf32>
    %32 = vector.shape_cast %31 : vector<1x1x64xf32> to vector<1x64xf32>
    %33 = vector.shape_cast %30 : vector<1x64xf32> to vector<1x1x64xf32>
    tpu.vector_store %arg4[%c0_11, %c1, %c0_12], %33 {strides = array<i32>} : memref<1x2x64xf32, #tpu.memory_space<vmem>>, vector<1x1x64xf32>,
    %34 = vector.shape_cast %22 : vector<64x64xf32> to vector<1x64x64xf32>
    %35 = arith.truncf %34 : vector<1x64x64xf32> to vector<1x64x64xbf16>
    %c0_13 = arith.constant 0 : index
    %c0_14 = arith.constant 0 : index
    %c0_15 = arith.constant 0 : index
    %36 = vector.load %arg3[%c0_13, %c0_14, %c0_15] : memref<1x64x64xbf16, #tpu.memory_space<vmem>>, vector<1x64x64xbf16>
    tpu.vector_store %arg3[%c0_13, %c0_14, %c0_15], %35 {strides = array<i32>} : memref<1x64x64xbf16, #tpu.memory_space<vmem>>, vector<1x64x64xbf16>,
    return
  }
  func.func @transform_0(%arg0: i32) -> (i32, i32, i32) {
    %c0_i32 = arith.constant 0 : i32
    %c0_i32_0 = arith.constant 0 : i32
    %c0_i32_1 = arith.constant 0 : i32
    return %arg0, %c0_i32, %c0_i32_0 : i32, i32, i32
  }
  func.func @transform_1(%arg0: i32) -> (i32, i32) {
    %c0_i32 = arith.constant 0 : i32
    %c0_i32_0 = arith.constant 0 : i32
    %c0_i32_1 = arith.constant 0 : i32
    return %c0_i32, %c0_i32_0 : i32, i32
  }
  func.func @transform_2(%arg0: i32) -> (i32, i32, i32) {
    %c0_i32 = arith.constant 0 : i32
    %c0_i32_0 = arith.constant 0 : i32
    %c0_i32_1 = arith.constant 0 : i32
    return %arg0, %c0_i32, %c0_i32_0 : i32, i32, i32
  }
  func.func @transform_3(%arg0: i32) -> (i32, i32, i32) {
    %c0_i32 = arith.constant 0 : i32
    %c0_i32_0 = arith.constant 0 : i32
    %c0_i32_1 = arith.constant 0 : i32
    return %arg0, %c0_i32, %c0_i32_0 : i32, i32, i32
  }
}

module attributes {stable_mosaic.version = 11 : i64} {
  func.func @conv_bn_kernel(%arg0: i32, %arg1: memref<1x64x64xbf16, #tpu.memory_space<vmem>>, %arg2: memref<2x64xf32, #tpu.memory_space<vmem>>, %arg3: memref<64x192xbf16, #tpu.memory_space<vmem>>, %arg4: memref<1x64x64xbf16, #tpu.memory_space<vmem>>, %arg5: memref<1x2x64xf32, #tpu.memory_space<vmem>>) attributes {dimension_semantics = [#tpu.dimension_semantics<parallel>], iteration_bounds = array<i64: 2>, scalar_prefetch = 0 : i64, scratch_operands = 0 : i64, tpu.core_type = #tpu.core_type<tc>, window_params = [{transform_indices = @transform_0, window_bounds = array<i64: 1, 64, 64>}, {pipeline_mode = #tpu.pipeline_mode<synchronous>, transform_indices = @transform_1, window_bounds = array<i64: 2, 64>}, {pipeline_mode = #tpu.pipeline_mode<synchronous>, transform_indices = @transform_2, window_bounds = array<i64: 64, 192>}, {transform_indices = @transform_3, window_bounds = array<i64: 1, 64, 64>}, {transform_indices = @transform_4, window_bounds = array<i64: 1, 2, 64>}]} {
    %c0 = arith.constant 0 : index
    %c0_0 = arith.constant 0 : index
    %c0_1 = arith.constant 0 : index
    %0 = vector.load %arg1[%c0, %c0_0, %c0_1] : memref<1x64x64xbf16, #tpu.memory_space<vmem>>, vector<1x64x64xbf16>
    %1 = vector.shape_cast %0 : vector<1x64x64xbf16> to vector<64x64xbf16>
    %2 = arith.extf %1 : vector<64x64xbf16> to vector<64x64xf32>
    %c0_2 = arith.constant 0 : index
    %c0_3 = arith.constant 0 : index
    %3 = vector.load %arg2[%c0_2, %c0_3] : memref<2x64xf32, #tpu.memory_space<vmem>>, vector<2x64xf32>
    %4 = vector.extract_strided_slice %3 {offsets = [0, 0], sizes = [1, 64], strides = [1, 1]} : vector<2x64xf32> to vector<1x64xf32>
    %5 = vector.broadcast %4 : vector<1x64xf32> to vector<64x64xf32>
    %6 = arith.mulf %2, %5 : vector<64x64xf32>
    %7 = vector.extract_strided_slice %3 {offsets = [1, 0], sizes = [1, 64], strides = [1, 1]} : vector<2x64xf32> to vector<1x64xf32>
    %8 = vector.broadcast %7 : vector<1x64xf32> to vector<64x64xf32>
    %9 = arith.addf %6, %8 : vector<64x64xf32>
    %cst = arith.constant 0.000000e+00 : f32
    %10 = vector.broadcast %cst : f32 to vector<64x64xf32>
    %11 = arith.maximumf %9, %10 : vector<64x64xf32>
    %12 = arith.truncf %11 : vector<64x64xf32> to vector<64x64xbf16>
    %c0_4 = arith.constant 0 : index
    %c0_5 = arith.constant 0 : index
    %13 = vector.load %arg3[%c0_4, %c0_5] : memref<64x192xbf16, #tpu.memory_space<vmem>>, vector<64x192xbf16>
    %cst_6 = arith.constant dense<0.000000e+00> : vector<64x192xf32>
    %14 = tpu.matmul %12, %13, %cst_6 {dimension_numbers = #tpu.dot_dimension_numbers<[1], [0], [0], [1], [0, 0, 1, 1], [], []>} : vector<64x64xbf16>, vector<64x192xbf16>, vector<64x192xf32> -> vector<64x192xf32>
    %15 = tpu.iota {dimensions = array<i32: 1>} : vector<1x64x64xi32>
    %16 = vector.shape_cast %15 : vector<1x64x64xi32> to vector<64x64xi32>
    %17 = vector.extract_strided_slice %14 {offsets = [0, 64], sizes = [64, 64], strides = [1, 1]} : vector<64x192xf32> to vector<64x64xf32>
    %18 = vector.extract_strided_slice %14 {offsets = [0, 0], sizes = [64, 64], strides = [1, 1]} : vector<64x192xf32> to vector<64x64xf32>
    %c1_i32 = arith.constant 1 : i32
    %19 = tpu.dynamic_rotate %18 by %c1_i32 dim 0 : vector<64x64xf32>, i32 -> vector<64x64xf32>
    %c0_i32 = arith.constant 0 : i32
    %20 = vector.broadcast %c0_i32 : i32 to vector<64x64xi32>
    %21 = arith.cmpi eq, %16, %20 : vector<64x64xi32>
    %cst_7 = arith.constant 0.000000e+00 : f32
    %22 = vector.broadcast %cst_7 : f32 to vector<64x64xf32>
    %23 = arith.select %21, %22, %19 : vector<64x64xi1>, vector<64x64xf32>
    %24 = arith.addf %17, %23 : vector<64x64xf32>
    %25 = vector.extract_strided_slice %14 {offsets = [0, 128], sizes = [64, 64], strides = [1, 1]} : vector<64x192xf32> to vector<64x64xf32>
    %c63_i32 = arith.constant 63 : i32
    %26 = tpu.dynamic_rotate %25 by %c63_i32 dim 0 : vector<64x64xf32>, i32 -> vector<64x64xf32>
    %c63_i32_8 = arith.constant 63 : i32
    %27 = vector.broadcast %c63_i32_8 : i32 to vector<64x64xi32>
    %28 = arith.cmpi eq, %16, %27 : vector<64x64xi32>
    %cst_9 = arith.constant 0.000000e+00 : f32
    %29 = vector.broadcast %cst_9 : f32 to vector<64x64xf32>
    %30 = arith.select %28, %29, %26 : vector<64x64xi1>, vector<64x64xf32>
    %31 = arith.addf %24, %30 : vector<64x64xf32>
    %cst_10 = arith.constant dense<0.000000e+00> : vector<64xf32>
    %32 = vector.multi_reduction <add>, %31, %cst_10 [0] : vector<64x64xf32> to vector<64xf32>
    %33 = vector.shape_cast %32 : vector<64xf32> to vector<1x64xf32>
    %c0_11 = arith.constant 0 : index
    %c0_12 = arith.constant 0 : index
    %c0_13 = arith.constant 0 : index
    %34 = vector.load %arg5[%c0_11, %c0_12, %c0_13] : memref<1x2x64xf32, #tpu.memory_space<vmem>>, vector<1x1x64xf32>
    %35 = vector.shape_cast %34 : vector<1x1x64xf32> to vector<1x64xf32>
    %36 = vector.shape_cast %33 : vector<1x64xf32> to vector<1x1x64xf32>
    tpu.vector_store %arg5[%c0_11, %c0_12, %c0_13], %36 {strides = array<i32>} : memref<1x2x64xf32, #tpu.memory_space<vmem>>, vector<1x1x64xf32>,
    %37 = arith.mulf %31, %31 : vector<64x64xf32>
    %cst_14 = arith.constant dense<0.000000e+00> : vector<64xf32>
    %38 = vector.multi_reduction <add>, %37, %cst_14 [0] : vector<64x64xf32> to vector<64xf32>
    %39 = vector.shape_cast %38 : vector<64xf32> to vector<1x64xf32>
    %c0_15 = arith.constant 0 : index
    %c1 = arith.constant 1 : index
    %c0_16 = arith.constant 0 : index
    %40 = vector.load %arg5[%c0_15, %c1, %c0_16] : memref<1x2x64xf32, #tpu.memory_space<vmem>>, vector<1x1x64xf32>
    %41 = vector.shape_cast %40 : vector<1x1x64xf32> to vector<1x64xf32>
    %42 = vector.shape_cast %39 : vector<1x64xf32> to vector<1x1x64xf32>
    tpu.vector_store %arg5[%c0_15, %c1, %c0_16], %42 {strides = array<i32>} : memref<1x2x64xf32, #tpu.memory_space<vmem>>, vector<1x1x64xf32>,
    %43 = vector.shape_cast %31 : vector<64x64xf32> to vector<1x64x64xf32>
    %44 = arith.truncf %43 : vector<1x64x64xf32> to vector<1x64x64xbf16>
    %c0_17 = arith.constant 0 : index
    %c0_18 = arith.constant 0 : index
    %c0_19 = arith.constant 0 : index
    %45 = vector.load %arg4[%c0_17, %c0_18, %c0_19] : memref<1x64x64xbf16, #tpu.memory_space<vmem>>, vector<1x64x64xbf16>
    tpu.vector_store %arg4[%c0_17, %c0_18, %c0_19], %44 {strides = array<i32>} : memref<1x64x64xbf16, #tpu.memory_space<vmem>>, vector<1x64x64xbf16>,
    return
  }
  func.func @transform_0(%arg0: i32) -> (i32, i32, i32) {
    %c0_i32 = arith.constant 0 : i32
    %c0_i32_0 = arith.constant 0 : i32
    %c0_i32_1 = arith.constant 0 : i32
    return %arg0, %c0_i32, %c0_i32_0 : i32, i32, i32
  }
  func.func @transform_1(%arg0: i32) -> (i32, i32) {
    %c0_i32 = arith.constant 0 : i32
    %c0_i32_0 = arith.constant 0 : i32
    %c0_i32_1 = arith.constant 0 : i32
    return %c0_i32, %c0_i32_0 : i32, i32
  }
  func.func @transform_2(%arg0: i32) -> (i32, i32) {
    %c0_i32 = arith.constant 0 : i32
    %c0_i32_0 = arith.constant 0 : i32
    %c0_i32_1 = arith.constant 0 : i32
    return %c0_i32, %c0_i32_0 : i32, i32
  }
  func.func @transform_3(%arg0: i32) -> (i32, i32, i32) {
    %c0_i32 = arith.constant 0 : i32
    %c0_i32_0 = arith.constant 0 : i32
    %c0_i32_1 = arith.constant 0 : i32
    return %arg0, %c0_i32, %c0_i32_0 : i32, i32, i32
  }
  func.func @transform_4(%arg0: i32) -> (i32, i32, i32) {
    %c0_i32 = arith.constant 0 : i32
    %c0_i32_0 = arith.constant 0 : i32
    %c0_i32_1 = arith.constant 0 : i32
    return %arg0, %c0_i32, %c0_i32_0 : i32, i32, i32
  }
}

module attributes {stable_mosaic.version = 11 : i64} {
  func.func @conv_bn_kernel(%arg0: i32, %arg1: memref<1x32x128xbf16, #tpu.memory_space<vmem>>, %arg2: memref<2x64xf32, #tpu.memory_space<vmem>>, %arg3: memref<64x384xbf16, #tpu.memory_space<vmem>>, %arg4: memref<1x32x128xbf16, #tpu.memory_space<vmem>>, %arg5: memref<1x2x128xf32, #tpu.memory_space<vmem>>) attributes {dimension_semantics = [#tpu.dimension_semantics<parallel>], iteration_bounds = array<i64: 2>, scalar_prefetch = 0 : i64, scratch_operands = 0 : i64, tpu.core_type = #tpu.core_type<tc>, window_params = [{transform_indices = @transform_0, window_bounds = array<i64: 1, 32, 128>}, {pipeline_mode = #tpu.pipeline_mode<synchronous>, transform_indices = @transform_1, window_bounds = array<i64: 2, 64>}, {pipeline_mode = #tpu.pipeline_mode<synchronous>, transform_indices = @transform_2, window_bounds = array<i64: 64, 384>}, {transform_indices = @transform_3, window_bounds = array<i64: 1, 32, 128>}, {transform_indices = @transform_4, window_bounds = array<i64: 1, 2, 128>}]} {
    %c0 = arith.constant 0 : index
    %c0_0 = arith.constant 0 : index
    %c0_1 = arith.constant 0 : index
    %0 = vector.load %arg1[%c0, %c0_0, %c0_1] : memref<1x32x128xbf16, #tpu.memory_space<vmem>>, vector<1x32x128xbf16>
    %1 = vector.shape_cast %0 : vector<1x32x128xbf16> to vector<32x128xbf16>
    %2 = arith.extf %1 : vector<32x128xbf16> to vector<32x128xf32>
    %3 = vector.extract_strided_slice %2 {offsets = [0, 0], sizes = [32, 64], strides = [1, 1]} : vector<32x128xf32> to vector<32x64xf32>
    %4 = vector.extract_strided_slice %2 {offsets = [0, 64], sizes = [32, 64], strides = [1, 1]} : vector<32x128xf32> to vector<32x64xf32>
    %5 = arith.maximumf %3, %4 : vector<32x64xf32>
    %c0_2 = arith.constant 0 : index
    %c0_3 = arith.constant 0 : index
    %6 = vector.load %arg2[%c0_2, %c0_3] : memref<2x64xf32, #tpu.memory_space<vmem>>, vector<2x64xf32>
    %7 = vector.extract_strided_slice %6 {offsets = [0, 0], sizes = [1, 64], strides = [1, 1]} : vector<2x64xf32> to vector<1x64xf32>
    %8 = vector.broadcast %7 : vector<1x64xf32> to vector<32x64xf32>
    %9 = arith.mulf %5, %8 : vector<32x64xf32>
    %10 = vector.extract_strided_slice %6 {offsets = [1, 0], sizes = [1, 64], strides = [1, 1]} : vector<2x64xf32> to vector<1x64xf32>
    %11 = vector.broadcast %10 : vector<1x64xf32> to vector<32x64xf32>
    %12 = arith.addf %9, %11 : vector<32x64xf32>
    %cst = arith.constant 0.000000e+00 : f32
    %13 = vector.broadcast %cst : f32 to vector<32x64xf32>
    %14 = arith.maximumf %12, %13 : vector<32x64xf32>
    %15 = arith.truncf %14 : vector<32x64xf32> to vector<32x64xbf16>
    %c0_4 = arith.constant 0 : index
    %c0_5 = arith.constant 0 : index
    %16 = vector.load %arg3[%c0_4, %c0_5] : memref<64x384xbf16, #tpu.memory_space<vmem>>, vector<64x384xbf16>
    %cst_6 = arith.constant dense<0.000000e+00> : vector<32x384xf32>
    %17 = tpu.matmul %15, %16, %cst_6 {dimension_numbers = #tpu.dot_dimension_numbers<[1], [0], [0], [1], [0, 0, 1, 1], [], []>} : vector<32x64xbf16>, vector<64x384xbf16>, vector<32x384xf32> -> vector<32x384xf32>
    %18 = tpu.iota {dimensions = array<i32: 1>} : vector<1x32x128xi32>
    %19 = vector.shape_cast %18 : vector<1x32x128xi32> to vector<32x128xi32>
    %20 = vector.extract_strided_slice %17 {offsets = [0, 128], sizes = [32, 128], strides = [1, 1]} : vector<32x384xf32> to vector<32x128xf32>
    %21 = vector.extract_strided_slice %17 {offsets = [0, 0], sizes = [32, 128], strides = [1, 1]} : vector<32x384xf32> to vector<32x128xf32>
    %c1_i32 = arith.constant 1 : i32
    %22 = tpu.dynamic_rotate %21 by %c1_i32 dim 0 : vector<32x128xf32>, i32 -> vector<32x128xf32>
    %c0_i32 = arith.constant 0 : i32
    %23 = vector.broadcast %c0_i32 : i32 to vector<32x128xi32>
    %24 = arith.cmpi eq, %19, %23 : vector<32x128xi32>
    %cst_7 = arith.constant 0.000000e+00 : f32
    %25 = vector.broadcast %cst_7 : f32 to vector<32x128xf32>
    %26 = arith.select %24, %25, %22 : vector<32x128xi1>, vector<32x128xf32>
    %27 = arith.addf %20, %26 : vector<32x128xf32>
    %28 = vector.extract_strided_slice %17 {offsets = [0, 256], sizes = [32, 128], strides = [1, 1]} : vector<32x384xf32> to vector<32x128xf32>
    %c31_i32 = arith.constant 31 : i32
    %29 = tpu.dynamic_rotate %28 by %c31_i32 dim 0 : vector<32x128xf32>, i32 -> vector<32x128xf32>
    %c31_i32_8 = arith.constant 31 : i32
    %30 = vector.broadcast %c31_i32_8 : i32 to vector<32x128xi32>
    %31 = arith.cmpi eq, %19, %30 : vector<32x128xi32>
    %cst_9 = arith.constant 0.000000e+00 : f32
    %32 = vector.broadcast %cst_9 : f32 to vector<32x128xf32>
    %33 = arith.select %31, %32, %29 : vector<32x128xi1>, vector<32x128xf32>
    %34 = arith.addf %27, %33 : vector<32x128xf32>
    %cst_10 = arith.constant dense<0.000000e+00> : vector<128xf32>
    %35 = vector.multi_reduction <add>, %34, %cst_10 [0] : vector<32x128xf32> to vector<128xf32>
    %36 = vector.shape_cast %35 : vector<128xf32> to vector<1x128xf32>
    %c0_11 = arith.constant 0 : index
    %c0_12 = arith.constant 0 : index
    %c0_13 = arith.constant 0 : index
    %37 = vector.load %arg5[%c0_11, %c0_12, %c0_13] : memref<1x2x128xf32, #tpu.memory_space<vmem>>, vector<1x1x128xf32>
    %38 = vector.shape_cast %37 : vector<1x1x128xf32> to vector<1x128xf32>
    %39 = vector.shape_cast %36 : vector<1x128xf32> to vector<1x1x128xf32>
    tpu.vector_store %arg5[%c0_11, %c0_12, %c0_13], %39 {strides = array<i32>} : memref<1x2x128xf32, #tpu.memory_space<vmem>>, vector<1x1x128xf32>,
    %40 = arith.mulf %34, %34 : vector<32x128xf32>
    %cst_14 = arith.constant dense<0.000000e+00> : vector<128xf32>
    %41 = vector.multi_reduction <add>, %40, %cst_14 [0] : vector<32x128xf32> to vector<128xf32>
    %42 = vector.shape_cast %41 : vector<128xf32> to vector<1x128xf32>
    %c0_15 = arith.constant 0 : index
    %c1 = arith.constant 1 : index
    %c0_16 = arith.constant 0 : index
    %43 = vector.load %arg5[%c0_15, %c1, %c0_16] : memref<1x2x128xf32, #tpu.memory_space<vmem>>, vector<1x1x128xf32>
    %44 = vector.shape_cast %43 : vector<1x1x128xf32> to vector<1x128xf32>
    %45 = vector.shape_cast %42 : vector<1x128xf32> to vector<1x1x128xf32>
    tpu.vector_store %arg5[%c0_15, %c1, %c0_16], %45 {strides = array<i32>} : memref<1x2x128xf32, #tpu.memory_space<vmem>>, vector<1x1x128xf32>,
    %46 = vector.shape_cast %34 : vector<32x128xf32> to vector<1x32x128xf32>
    %47 = arith.truncf %46 : vector<1x32x128xf32> to vector<1x32x128xbf16>
    %c0_17 = arith.constant 0 : index
    %c0_18 = arith.constant 0 : index
    %c0_19 = arith.constant 0 : index
    %48 = vector.load %arg4[%c0_17, %c0_18, %c0_19] : memref<1x32x128xbf16, #tpu.memory_space<vmem>>, vector<1x32x128xbf16>
    tpu.vector_store %arg4[%c0_17, %c0_18, %c0_19], %47 {strides = array<i32>} : memref<1x32x128xbf16, #tpu.memory_space<vmem>>, vector<1x32x128xbf16>,
    return
  }
  func.func @transform_0(%arg0: i32) -> (i32, i32, i32) {
    %c0_i32 = arith.constant 0 : i32
    %c0_i32_0 = arith.constant 0 : i32
    %c0_i32_1 = arith.constant 0 : i32
    return %arg0, %c0_i32, %c0_i32_0 : i32, i32, i32
  }
  func.func @transform_1(%arg0: i32) -> (i32, i32) {
    %c0_i32 = arith.constant 0 : i32
    %c0_i32_0 = arith.constant 0 : i32
    %c0_i32_1 = arith.constant 0 : i32
    return %c0_i32, %c0_i32_0 : i32, i32
  }
  func.func @transform_2(%arg0: i32) -> (i32, i32) {
    %c0_i32 = arith.constant 0 : i32
    %c0_i32_0 = arith.constant 0 : i32
    %c0_i32_1 = arith.constant 0 : i32
    return %c0_i32, %c0_i32_0 : i32, i32
  }
  func.func @transform_3(%arg0: i32) -> (i32, i32, i32) {
    %c0_i32 = arith.constant 0 : i32
    %c0_i32_0 = arith.constant 0 : i32
    %c0_i32_1 = arith.constant 0 : i32
    return %arg0, %c0_i32, %c0_i32_0 : i32, i32, i32
  }
  func.func @transform_4(%arg0: i32) -> (i32, i32, i32) {
    %c0_i32 = arith.constant 0 : i32
    %c0_i32_0 = arith.constant 0 : i32
    %c0_i32_1 = arith.constant 0 : i32
    return %arg0, %c0_i32, %c0_i32_0 : i32, i32, i32
  }
}

module attributes {stable_mosaic.version = 11 : i64} {
  func.func @conv_bn_kernel(%arg0: i32, %arg1: memref<1x32x128xbf16, #tpu.memory_space<vmem>>, %arg2: memref<2x128xf32, #tpu.memory_space<vmem>>, %arg3: memref<128x384xbf16, #tpu.memory_space<vmem>>, %arg4: memref<1x32x128xbf16, #tpu.memory_space<vmem>>, %arg5: memref<1x2x128xf32, #tpu.memory_space<vmem>>) attributes {dimension_semantics = [#tpu.dimension_semantics<parallel>], iteration_bounds = array<i64: 2>, scalar_prefetch = 0 : i64, scratch_operands = 0 : i64, tpu.core_type = #tpu.core_type<tc>, window_params = [{transform_indices = @transform_0, window_bounds = array<i64: 1, 32, 128>}, {pipeline_mode = #tpu.pipeline_mode<synchronous>, transform_indices = @transform_1, window_bounds = array<i64: 2, 128>}, {pipeline_mode = #tpu.pipeline_mode<synchronous>, transform_indices = @transform_2, window_bounds = array<i64: 128, 384>}, {transform_indices = @transform_3, window_bounds = array<i64: 1, 32, 128>}, {transform_indices = @transform_4, window_bounds = array<i64: 1, 2, 128>}]} {
    %c0 = arith.constant 0 : index
    %c0_0 = arith.constant 0 : index
    %c0_1 = arith.constant 0 : index
    %0 = vector.load %arg1[%c0, %c0_0, %c0_1] : memref<1x32x128xbf16, #tpu.memory_space<vmem>>, vector<1x32x128xbf16>
    %1 = vector.shape_cast %0 : vector<1x32x128xbf16> to vector<32x128xbf16>
    %2 = arith.extf %1 : vector<32x128xbf16> to vector<32x128xf32>
    %c0_2 = arith.constant 0 : index
    %c0_3 = arith.constant 0 : index
    %3 = vector.load %arg2[%c0_2, %c0_3] : memref<2x128xf32, #tpu.memory_space<vmem>>, vector<2x128xf32>
    %4 = vector.extract_strided_slice %3 {offsets = [0, 0], sizes = [1, 128], strides = [1, 1]} : vector<2x128xf32> to vector<1x128xf32>
    %5 = vector.broadcast %4 : vector<1x128xf32> to vector<32x128xf32>
    %6 = arith.mulf %2, %5 : vector<32x128xf32>
    %7 = vector.extract_strided_slice %3 {offsets = [1, 0], sizes = [1, 128], strides = [1, 1]} : vector<2x128xf32> to vector<1x128xf32>
    %8 = vector.broadcast %7 : vector<1x128xf32> to vector<32x128xf32>
    %9 = arith.addf %6, %8 : vector<32x128xf32>
    %cst = arith.constant 0.000000e+00 : f32
    %10 = vector.broadcast %cst : f32 to vector<32x128xf32>
    %11 = arith.maximumf %9, %10 : vector<32x128xf32>
    %12 = arith.truncf %11 : vector<32x128xf32> to vector<32x128xbf16>
    %c0_4 = arith.constant 0 : index
    %c0_5 = arith.constant 0 : index
    %13 = vector.load %arg3[%c0_4, %c0_5] : memref<128x384xbf16, #tpu.memory_space<vmem>>, vector<128x384xbf16>
    %cst_6 = arith.constant dense<0.000000e+00> : vector<32x384xf32>
    %14 = tpu.matmul %12, %13, %cst_6 {dimension_numbers = #tpu.dot_dimension_numbers<[1], [0], [0], [1], [0, 0, 1, 1], [], []>} : vector<32x128xbf16>, vector<128x384xbf16>, vector<32x384xf32> -> vector<32x384xf32>
    %15 = tpu.iota {dimensions = array<i32: 1>} : vector<1x32x128xi32>
    %16 = vector.shape_cast %15 : vector<1x32x128xi32> to vector<32x128xi32>
    %17 = vector.extract_strided_slice %14 {offsets = [0, 128], sizes = [32, 128], strides = [1, 1]} : vector<32x384xf32> to vector<32x128xf32>
    %18 = vector.extract_strided_slice %14 {offsets = [0, 0], sizes = [32, 128], strides = [1, 1]} : vector<32x384xf32> to vector<32x128xf32>
    %c1_i32 = arith.constant 1 : i32
    %19 = tpu.dynamic_rotate %18 by %c1_i32 dim 0 : vector<32x128xf32>, i32 -> vector<32x128xf32>
    %c0_i32 = arith.constant 0 : i32
    %20 = vector.broadcast %c0_i32 : i32 to vector<32x128xi32>
    %21 = arith.cmpi eq, %16, %20 : vector<32x128xi32>
    %cst_7 = arith.constant 0.000000e+00 : f32
    %22 = vector.broadcast %cst_7 : f32 to vector<32x128xf32>
    %23 = arith.select %21, %22, %19 : vector<32x128xi1>, vector<32x128xf32>
    %24 = arith.addf %17, %23 : vector<32x128xf32>
    %25 = vector.extract_strided_slice %14 {offsets = [0, 256], sizes = [32, 128], strides = [1, 1]} : vector<32x384xf32> to vector<32x128xf32>
    %c31_i32 = arith.constant 31 : i32
    %26 = tpu.dynamic_rotate %25 by %c31_i32 dim 0 : vector<32x128xf32>, i32 -> vector<32x128xf32>
    %c31_i32_8 = arith.constant 31 : i32
    %27 = vector.broadcast %c31_i32_8 : i32 to vector<32x128xi32>
    %28 = arith.cmpi eq, %16, %27 : vector<32x128xi32>
    %cst_9 = arith.constant 0.000000e+00 : f32
    %29 = vector.broadcast %cst_9 : f32 to vector<32x128xf32>
    %30 = arith.select %28, %29, %26 : vector<32x128xi1>, vector<32x128xf32>
    %31 = arith.addf %24, %30 : vector<32x128xf32>
    %cst_10 = arith.constant dense<0.000000e+00> : vector<128xf32>
    %32 = vector.multi_reduction <add>, %31, %cst_10 [0] : vector<32x128xf32> to vector<128xf32>
    %33 = vector.shape_cast %32 : vector<128xf32> to vector<1x128xf32>
    %c0_11 = arith.constant 0 : index
    %c0_12 = arith.constant 0 : index
    %c0_13 = arith.constant 0 : index
    %34 = vector.load %arg5[%c0_11, %c0_12, %c0_13] : memref<1x2x128xf32, #tpu.memory_space<vmem>>, vector<1x1x128xf32>
    %35 = vector.shape_cast %34 : vector<1x1x128xf32> to vector<1x128xf32>
    %36 = vector.shape_cast %33 : vector<1x128xf32> to vector<1x1x128xf32>
    tpu.vector_store %arg5[%c0_11, %c0_12, %c0_13], %36 {strides = array<i32>} : memref<1x2x128xf32, #tpu.memory_space<vmem>>, vector<1x1x128xf32>,
    %37 = arith.mulf %31, %31 : vector<32x128xf32>
    %cst_14 = arith.constant dense<0.000000e+00> : vector<128xf32>
    %38 = vector.multi_reduction <add>, %37, %cst_14 [0] : vector<32x128xf32> to vector<128xf32>
    %39 = vector.shape_cast %38 : vector<128xf32> to vector<1x128xf32>
    %c0_15 = arith.constant 0 : index
    %c1 = arith.constant 1 : index
    %c0_16 = arith.constant 0 : index
    %40 = vector.load %arg5[%c0_15, %c1, %c0_16] : memref<1x2x128xf32, #tpu.memory_space<vmem>>, vector<1x1x128xf32>
    %41 = vector.shape_cast %40 : vector<1x1x128xf32> to vector<1x128xf32>
    %42 = vector.shape_cast %39 : vector<1x128xf32> to vector<1x1x128xf32>
    tpu.vector_store %arg5[%c0_15, %c1, %c0_16], %42 {strides = array<i32>} : memref<1x2x128xf32, #tpu.memory_space<vmem>>, vector<1x1x128xf32>,
    %43 = vector.shape_cast %31 : vector<32x128xf32> to vector<1x32x128xf32>
    %44 = arith.truncf %43 : vector<1x32x128xf32> to vector<1x32x128xbf16>
    %c0_17 = arith.constant 0 : index
    %c0_18 = arith.constant 0 : index
    %c0_19 = arith.constant 0 : index
    %45 = vector.load %arg4[%c0_17, %c0_18, %c0_19] : memref<1x32x128xbf16, #tpu.memory_space<vmem>>, vector<1x32x128xbf16>
    tpu.vector_store %arg4[%c0_17, %c0_18, %c0_19], %44 {strides = array<i32>} : memref<1x32x128xbf16, #tpu.memory_space<vmem>>, vector<1x32x128xbf16>,
    return
  }
  func.func @transform_0(%arg0: i32) -> (i32, i32, i32) {
    %c0_i32 = arith.constant 0 : i32
    %c0_i32_0 = arith.constant 0 : i32
    %c0_i32_1 = arith.constant 0 : i32
    return %arg0, %c0_i32, %c0_i32_0 : i32, i32, i32
  }
  func.func @transform_1(%arg0: i32) -> (i32, i32) {
    %c0_i32 = arith.constant 0 : i32
    %c0_i32_0 = arith.constant 0 : i32
    %c0_i32_1 = arith.constant 0 : i32
    return %c0_i32, %c0_i32_0 : i32, i32
  }
  func.func @transform_2(%arg0: i32) -> (i32, i32) {
    %c0_i32 = arith.constant 0 : i32
    %c0_i32_0 = arith.constant 0 : i32
    %c0_i32_1 = arith.constant 0 : i32
    return %c0_i32, %c0_i32_0 : i32, i32
  }
  func.func @transform_3(%arg0: i32) -> (i32, i32, i32) {
    %c0_i32 = arith.constant 0 : i32
    %c0_i32_0 = arith.constant 0 : i32
    %c0_i32_1 = arith.constant 0 : i32
    return %arg0, %c0_i32, %c0_i32_0 : i32, i32, i32
  }
  func.func @transform_4(%arg0: i32) -> (i32, i32, i32) {
    %c0_i32 = arith.constant 0 : i32
    %c0_i32_0 = arith.constant 0 : i32
    %c0_i32_1 = arith.constant 0 : i32
    return %arg0, %c0_i32, %c0_i32_0 : i32, i32, i32
  }
}

module attributes {stable_mosaic.version = 11 : i64} {
  func.func @conv_bn_kernel(%arg0: i32, %arg1: memref<1x16x256xbf16, #tpu.memory_space<vmem>>, %arg2: memref<2x128xf32, #tpu.memory_space<vmem>>, %arg3: memref<128x768xbf16, #tpu.memory_space<vmem>>, %arg4: memref<1x16x256xbf16, #tpu.memory_space<vmem>>, %arg5: memref<1x2x256xf32, #tpu.memory_space<vmem>>) attributes {dimension_semantics = [#tpu.dimension_semantics<parallel>], iteration_bounds = array<i64: 2>, scalar_prefetch = 0 : i64, scratch_operands = 0 : i64, tpu.core_type = #tpu.core_type<tc>, window_params = [{transform_indices = @transform_0, window_bounds = array<i64: 1, 16, 256>}, {pipeline_mode = #tpu.pipeline_mode<synchronous>, transform_indices = @transform_1, window_bounds = array<i64: 2, 128>}, {pipeline_mode = #tpu.pipeline_mode<synchronous>, transform_indices = @transform_2, window_bounds = array<i64: 128, 768>}, {transform_indices = @transform_3, window_bounds = array<i64: 1, 16, 256>}, {transform_indices = @transform_4, window_bounds = array<i64: 1, 2, 256>}]} {
    %c0 = arith.constant 0 : index
    %c0_0 = arith.constant 0 : index
    %c0_1 = arith.constant 0 : index
    %0 = vector.load %arg1[%c0, %c0_0, %c0_1] : memref<1x16x256xbf16, #tpu.memory_space<vmem>>, vector<1x16x256xbf16>
    %1 = vector.shape_cast %0 : vector<1x16x256xbf16> to vector<16x256xbf16>
    %2 = arith.extf %1 : vector<16x256xbf16> to vector<16x256xf32>
    %3 = vector.extract_strided_slice %2 {offsets = [0, 0], sizes = [16, 128], strides = [1, 1]} : vector<16x256xf32> to vector<16x128xf32>
    %4 = vector.extract_strided_slice %2 {offsets = [0, 128], sizes = [16, 128], strides = [1, 1]} : vector<16x256xf32> to vector<16x128xf32>
    %5 = arith.maximumf %3, %4 : vector<16x128xf32>
    %c0_2 = arith.constant 0 : index
    %c0_3 = arith.constant 0 : index
    %6 = vector.load %arg2[%c0_2, %c0_3] : memref<2x128xf32, #tpu.memory_space<vmem>>, vector<2x128xf32>
    %7 = vector.extract_strided_slice %6 {offsets = [0, 0], sizes = [1, 128], strides = [1, 1]} : vector<2x128xf32> to vector<1x128xf32>
    %8 = vector.broadcast %7 : vector<1x128xf32> to vector<16x128xf32>
    %9 = arith.mulf %5, %8 : vector<16x128xf32>
    %10 = vector.extract_strided_slice %6 {offsets = [1, 0], sizes = [1, 128], strides = [1, 1]} : vector<2x128xf32> to vector<1x128xf32>
    %11 = vector.broadcast %10 : vector<1x128xf32> to vector<16x128xf32>
    %12 = arith.addf %9, %11 : vector<16x128xf32>
    %cst = arith.constant 0.000000e+00 : f32
    %13 = vector.broadcast %cst : f32 to vector<16x128xf32>
    %14 = arith.maximumf %12, %13 : vector<16x128xf32>
    %15 = arith.truncf %14 : vector<16x128xf32> to vector<16x128xbf16>
    %c0_4 = arith.constant 0 : index
    %c0_5 = arith.constant 0 : index
    %16 = vector.load %arg3[%c0_4, %c0_5] : memref<128x768xbf16, #tpu.memory_space<vmem>>, vector<128x768xbf16>
    %cst_6 = arith.constant dense<0.000000e+00> : vector<16x768xf32>
    %17 = tpu.matmul %15, %16, %cst_6 {dimension_numbers = #tpu.dot_dimension_numbers<[1], [0], [0], [1], [0, 0, 1, 1], [], []>} : vector<16x128xbf16>, vector<128x768xbf16>, vector<16x768xf32> -> vector<16x768xf32>
    %18 = tpu.iota {dimensions = array<i32: 1>} : vector<1x16x256xi32>
    %19 = vector.shape_cast %18 : vector<1x16x256xi32> to vector<16x256xi32>
    %20 = vector.extract_strided_slice %17 {offsets = [0, 256], sizes = [16, 256], strides = [1, 1]} : vector<16x768xf32> to vector<16x256xf32>
    %21 = vector.extract_strided_slice %17 {offsets = [0, 0], sizes = [16, 256], strides = [1, 1]} : vector<16x768xf32> to vector<16x256xf32>
    %c1_i32 = arith.constant 1 : i32
    %22 = tpu.dynamic_rotate %21 by %c1_i32 dim 0 : vector<16x256xf32>, i32 -> vector<16x256xf32>
    %c0_i32 = arith.constant 0 : i32
    %23 = vector.broadcast %c0_i32 : i32 to vector<16x256xi32>
    %24 = arith.cmpi eq, %19, %23 : vector<16x256xi32>
    %cst_7 = arith.constant 0.000000e+00 : f32
    %25 = vector.broadcast %cst_7 : f32 to vector<16x256xf32>
    %26 = arith.select %24, %25, %22 : vector<16x256xi1>, vector<16x256xf32>
    %27 = arith.addf %20, %26 : vector<16x256xf32>
    %28 = vector.extract_strided_slice %17 {offsets = [0, 512], sizes = [16, 256], strides = [1, 1]} : vector<16x768xf32> to vector<16x256xf32>
    %c15_i32 = arith.constant 15 : i32
    %29 = tpu.dynamic_rotate %28 by %c15_i32 dim 0 : vector<16x256xf32>, i32 -> vector<16x256xf32>
    %c15_i32_8 = arith.constant 15 : i32
    %30 = vector.broadcast %c15_i32_8 : i32 to vector<16x256xi32>
    %31 = arith.cmpi eq, %19, %30 : vector<16x256xi32>
    %cst_9 = arith.constant 0.000000e+00 : f32
    %32 = vector.broadcast %cst_9 : f32 to vector<16x256xf32>
    %33 = arith.select %31, %32, %29 : vector<16x256xi1>, vector<16x256xf32>
    %34 = arith.addf %27, %33 : vector<16x256xf32>
    %cst_10 = arith.constant dense<0.000000e+00> : vector<256xf32>
    %35 = vector.multi_reduction <add>, %34, %cst_10 [0] : vector<16x256xf32> to vector<256xf32>
    %36 = vector.shape_cast %35 : vector<256xf32> to vector<1x256xf32>
    %c0_11 = arith.constant 0 : index
    %c0_12 = arith.constant 0 : index
    %c0_13 = arith.constant 0 : index
    %37 = vector.load %arg5[%c0_11, %c0_12, %c0_13] : memref<1x2x256xf32, #tpu.memory_space<vmem>>, vector<1x1x256xf32>
    %38 = vector.shape_cast %37 : vector<1x1x256xf32> to vector<1x256xf32>
    %39 = vector.shape_cast %36 : vector<1x256xf32> to vector<1x1x256xf32>
    tpu.vector_store %arg5[%c0_11, %c0_12, %c0_13], %39 {strides = array<i32>} : memref<1x2x256xf32, #tpu.memory_space<vmem>>, vector<1x1x256xf32>,
    %40 = arith.mulf %34, %34 : vector<16x256xf32>
    %cst_14 = arith.constant dense<0.000000e+00> : vector<256xf32>
    %41 = vector.multi_reduction <add>, %40, %cst_14 [0] : vector<16x256xf32> to vector<256xf32>
    %42 = vector.shape_cast %41 : vector<256xf32> to vector<1x256xf32>
    %c0_15 = arith.constant 0 : index
    %c1 = arith.constant 1 : index
    %c0_16 = arith.constant 0 : index
    %43 = vector.load %arg5[%c0_15, %c1, %c0_16] : memref<1x2x256xf32, #tpu.memory_space<vmem>>, vector<1x1x256xf32>
    %44 = vector.shape_cast %43 : vector<1x1x256xf32> to vector<1x256xf32>
    %45 = vector.shape_cast %42 : vector<1x256xf32> to vector<1x1x256xf32>
    tpu.vector_store %arg5[%c0_15, %c1, %c0_16], %45 {strides = array<i32>} : memref<1x2x256xf32, #tpu.memory_space<vmem>>, vector<1x1x256xf32>,
    %46 = vector.shape_cast %34 : vector<16x256xf32> to vector<1x16x256xf32>
    %47 = arith.truncf %46 : vector<1x16x256xf32> to vector<1x16x256xbf16>
    %c0_17 = arith.constant 0 : index
    %c0_18 = arith.constant 0 : index
    %c0_19 = arith.constant 0 : index
    %48 = vector.load %arg4[%c0_17, %c0_18, %c0_19] : memref<1x16x256xbf16, #tpu.memory_space<vmem>>, vector<1x16x256xbf16>
    tpu.vector_store %arg4[%c0_17, %c0_18, %c0_19], %47 {strides = array<i32>} : memref<1x16x256xbf16, #tpu.memory_space<vmem>>, vector<1x16x256xbf16>,
    return
  }
  func.func @transform_0(%arg0: i32) -> (i32, i32, i32) {
    %c0_i32 = arith.constant 0 : i32
    %c0_i32_0 = arith.constant 0 : i32
    %c0_i32_1 = arith.constant 0 : i32
    return %arg0, %c0_i32, %c0_i32_0 : i32, i32, i32
  }
  func.func @transform_1(%arg0: i32) -> (i32, i32) {
    %c0_i32 = arith.constant 0 : i32
    %c0_i32_0 = arith.constant 0 : i32
    %c0_i32_1 = arith.constant 0 : i32
    return %c0_i32, %c0_i32_0 : i32, i32
  }
  func.func @transform_2(%arg0: i32) -> (i32, i32) {
    %c0_i32 = arith.constant 0 : i32
    %c0_i32_0 = arith.constant 0 : i32
    %c0_i32_1 = arith.constant 0 : i32
    return %c0_i32, %c0_i32_0 : i32, i32
  }
  func.func @transform_3(%arg0: i32) -> (i32, i32, i32) {
    %c0_i32 = arith.constant 0 : i32
    %c0_i32_0 = arith.constant 0 : i32
    %c0_i32_1 = arith.constant 0 : i32
    return %arg0, %c0_i32, %c0_i32_0 : i32, i32, i32
  }
  func.func @transform_4(%arg0: i32) -> (i32, i32, i32) {
    %c0_i32 = arith.constant 0 : i32
    %c0_i32_0 = arith.constant 0 : i32
    %c0_i32_1 = arith.constant 0 : i32
    return %arg0, %c0_i32, %c0_i32_0 : i32, i32, i32
  }
}

module attributes {stable_mosaic.version = 11 : i64} {
  func.func @conv_bn_kernel(%arg0: i32, %arg1: memref<1x16x256xbf16, #tpu.memory_space<vmem>>, %arg2: memref<2x256xf32, #tpu.memory_space<vmem>>, %arg3: memref<256x768xbf16, #tpu.memory_space<vmem>>, %arg4: memref<1x1x256xf32, #tpu.memory_space<vmem>>, %arg5: memref<1x2x256xf32, #tpu.memory_space<vmem>>) attributes {dimension_semantics = [#tpu.dimension_semantics<parallel>], iteration_bounds = array<i64: 2>, scalar_prefetch = 0 : i64, scratch_operands = 0 : i64, tpu.core_type = #tpu.core_type<tc>, window_params = [{transform_indices = @transform_0, window_bounds = array<i64: 1, 16, 256>}, {pipeline_mode = #tpu.pipeline_mode<synchronous>, transform_indices = @transform_1, window_bounds = array<i64: 2, 256>}, {pipeline_mode = #tpu.pipeline_mode<synchronous>, transform_indices = @transform_2, window_bounds = array<i64: 256, 768>}, {transform_indices = @transform_3, window_bounds = array<i64: 1, 1, 256>}, {transform_indices = @transform_4, window_bounds = array<i64: 1, 2, 256>}]} {
    %c0 = arith.constant 0 : index
    %c0_0 = arith.constant 0 : index
    %c0_1 = arith.constant 0 : index
    %0 = vector.load %arg1[%c0, %c0_0, %c0_1] : memref<1x16x256xbf16, #tpu.memory_space<vmem>>, vector<1x16x256xbf16>
    %1 = vector.shape_cast %0 : vector<1x16x256xbf16> to vector<16x256xbf16>
    %2 = arith.extf %1 : vector<16x256xbf16> to vector<16x256xf32>
    %c0_2 = arith.constant 0 : index
    %c0_3 = arith.constant 0 : index
    %3 = vector.load %arg2[%c0_2, %c0_3] : memref<2x256xf32, #tpu.memory_space<vmem>>, vector<2x256xf32>
    %4 = vector.extract_strided_slice %3 {offsets = [0, 0], sizes = [1, 256], strides = [1, 1]} : vector<2x256xf32> to vector<1x256xf32>
    %5 = vector.broadcast %4 : vector<1x256xf32> to vector<16x256xf32>
    %6 = arith.mulf %2, %5 : vector<16x256xf32>
    %7 = vector.extract_strided_slice %3 {offsets = [1, 0], sizes = [1, 256], strides = [1, 1]} : vector<2x256xf32> to vector<1x256xf32>
    %8 = vector.broadcast %7 : vector<1x256xf32> to vector<16x256xf32>
    %9 = arith.addf %6, %8 : vector<16x256xf32>
    %cst = arith.constant 0.000000e+00 : f32
    %10 = vector.broadcast %cst : f32 to vector<16x256xf32>
    %11 = arith.maximumf %9, %10 : vector<16x256xf32>
    %12 = arith.truncf %11 : vector<16x256xf32> to vector<16x256xbf16>
    %c0_4 = arith.constant 0 : index
    %c0_5 = arith.constant 0 : index
    %13 = vector.load %arg3[%c0_4, %c0_5] : memref<256x768xbf16, #tpu.memory_space<vmem>>, vector<256x768xbf16>
    %cst_6 = arith.constant dense<0.000000e+00> : vector<16x768xf32>
    %14 = tpu.matmul %12, %13, %cst_6 {dimension_numbers = #tpu.dot_dimension_numbers<[1], [0], [0], [1], [0, 0, 1, 1], [], []>} : vector<16x256xbf16>, vector<256x768xbf16>, vector<16x768xf32> -> vector<16x768xf32>
    %15 = tpu.iota {dimensions = array<i32: 1>} : vector<1x16x256xi32>
    %16 = vector.shape_cast %15 : vector<1x16x256xi32> to vector<16x256xi32>
    %17 = vector.extract_strided_slice %14 {offsets = [0, 256], sizes = [16, 256], strides = [1, 1]} : vector<16x768xf32> to vector<16x256xf32>
    %18 = vector.extract_strided_slice %14 {offsets = [0, 0], sizes = [16, 256], strides = [1, 1]} : vector<16x768xf32> to vector<16x256xf32>
    %c1_i32 = arith.constant 1 : i32
    %19 = tpu.dynamic_rotate %18 by %c1_i32 dim 0 : vector<16x256xf32>, i32 -> vector<16x256xf32>
    %c0_i32 = arith.constant 0 : i32
    %20 = vector.broadcast %c0_i32 : i32 to vector<16x256xi32>
    %21 = arith.cmpi eq, %16, %20 : vector<16x256xi32>
    %cst_7 = arith.constant 0.000000e+00 : f32
    %22 = vector.broadcast %cst_7 : f32 to vector<16x256xf32>
    %23 = arith.select %21, %22, %19 : vector<16x256xi1>, vector<16x256xf32>
    %24 = arith.addf %17, %23 : vector<16x256xf32>
    %25 = vector.extract_strided_slice %14 {offsets = [0, 512], sizes = [16, 256], strides = [1, 1]} : vector<16x768xf32> to vector<16x256xf32>
    %c15_i32 = arith.constant 15 : i32
    %26 = tpu.dynamic_rotate %25 by %c15_i32 dim 0 : vector<16x256xf32>, i32 -> vector<16x256xf32>
    %c15_i32_8 = arith.constant 15 : i32
    %27 = vector.broadcast %c15_i32_8 : i32 to vector<16x256xi32>
    %28 = arith.cmpi eq, %16, %27 : vector<16x256xi32>
    %cst_9 = arith.constant 0.000000e+00 : f32
    %29 = vector.broadcast %cst_9 : f32 to vector<16x256xf32>
    %30 = arith.select %28, %29, %26 : vector<16x256xi1>, vector<16x256xf32>
    %31 = arith.addf %24, %30 : vector<16x256xf32>
    %cst_10 = arith.constant dense<0.000000e+00> : vector<256xf32>
    %32 = vector.multi_reduction <add>, %31, %cst_10 [0] : vector<16x256xf32> to vector<256xf32>
    %33 = vector.shape_cast %32 : vector<256xf32> to vector<1x256xf32>
    %c0_11 = arith.constant 0 : index
    %c0_12 = arith.constant 0 : index
    %c0_13 = arith.constant 0 : index
    %34 = vector.load %arg5[%c0_11, %c0_12, %c0_13] : memref<1x2x256xf32, #tpu.memory_space<vmem>>, vector<1x1x256xf32>
    %35 = vector.shape_cast %34 : vector<1x1x256xf32> to vector<1x256xf32>
    %36 = vector.shape_cast %33 : vector<1x256xf32> to vector<1x1x256xf32>
    tpu.vector_store %arg5[%c0_11, %c0_12, %c0_13], %36 {strides = array<i32>} : memref<1x2x256xf32, #tpu.memory_space<vmem>>, vector<1x1x256xf32>,
    %37 = arith.mulf %31, %31 : vector<16x256xf32>
    %cst_14 = arith.constant dense<0.000000e+00> : vector<256xf32>
    %38 = vector.multi_reduction <add>, %37, %cst_14 [0] : vector<16x256xf32> to vector<256xf32>
    %39 = vector.shape_cast %38 : vector<256xf32> to vector<1x256xf32>
    %c0_15 = arith.constant 0 : index
    %c1 = arith.constant 1 : index
    %c0_16 = arith.constant 0 : index
    %40 = vector.load %arg5[%c0_15, %c1, %c0_16] : memref<1x2x256xf32, #tpu.memory_space<vmem>>, vector<1x1x256xf32>
    %41 = vector.shape_cast %40 : vector<1x1x256xf32> to vector<1x256xf32>
    %42 = vector.shape_cast %39 : vector<1x256xf32> to vector<1x1x256xf32>
    tpu.vector_store %arg5[%c0_15, %c1, %c0_16], %42 {strides = array<i32>} : memref<1x2x256xf32, #tpu.memory_space<vmem>>, vector<1x1x256xf32>,
    %43 = vector.shape_cast %31 : vector<16x256xf32> to vector<1x16x256xf32>
    %cst_17 = arith.constant dense<0xFF800000> : vector<1x256xf32>
    %44 = vector.multi_reduction <maximumf>, %43, %cst_17 [1] : vector<1x16x256xf32> to vector<1x256xf32>
    %45 = vector.shape_cast %44 : vector<1x256xf32> to vector<1x1x256xf32>
    %c0_18 = arith.constant 0 : index
    %c0_19 = arith.constant 0 : index
    %c0_20 = arith.constant 0 : index
    %46 = vector.load %arg4[%c0_18, %c0_19, %c0_20] : memref<1x1x256xf32, #tpu.memory_space<vmem>>, vector<1x1x256xf32>
    tpu.vector_store %arg4[%c0_18, %c0_19, %c0_20], %45 {strides = array<i32>} : memref<1x1x256xf32, #tpu.memory_space<vmem>>, vector<1x1x256xf32>,
    return
  }
  func.func @transform_0(%arg0: i32) -> (i32, i32, i32) {
    %c0_i32 = arith.constant 0 : i32
    %c0_i32_0 = arith.constant 0 : i32
    %c0_i32_1 = arith.constant 0 : i32
    return %arg0, %c0_i32, %c0_i32_0 : i32, i32, i32
  }
  func.func @transform_1(%arg0: i32) -> (i32, i32) {
    %c0_i32 = arith.constant 0 : i32
    %c0_i32_0 = arith.constant 0 : i32
    %c0_i32_1 = arith.constant 0 : i32
    return %c0_i32, %c0_i32_0 : i32, i32
  }
  func.func @transform_2(%arg0: i32) -> (i32, i32) {
    %c0_i32 = arith.constant 0 : i32
    %c0_i32_0 = arith.constant 0 : i32
    %c0_i32_1 = arith.constant 0 : i32
    return %c0_i32, %c0_i32_0 : i32, i32
  }
  func.func @transform_3(%arg0: i32) -> (i32, i32, i32) {
    %c0_i32 = arith.constant 0 : i32
    %c0_i32_0 = arith.constant 0 : i32
    %c0_i32_1 = arith.constant 0 : i32
    return %arg0, %c0_i32, %c0_i32_0 : i32, i32, i32
  }
  func.func @transform_4(%arg0: i32) -> (i32, i32, i32) {
    %c0_i32 = arith.constant 0 : i32
    %c0_i32_0 = arith.constant 0 : i32
    %c0_i32_1 = arith.constant 0 : i32
    return %arg0, %c0_i32, %c0_i32_0 : i32, i32, i32
  }
}

module attributes {stable_mosaic.version = 11 : i64} {
  func.func @head_kernel(%arg0: memref<2x256xf32, #tpu.memory_space<vmem>>, %arg1: memref<2x256xf32, #tpu.memory_space<vmem>>, %arg2: memref<2x256xf32, #tpu.memory_space<vmem>>, %arg3: memref<256x256xf32, #tpu.memory_space<vmem>>, %arg4: memref<1x256xf32, #tpu.memory_space<vmem>>, %arg5: memref<256x10xf32, #tpu.memory_space<vmem>>, %arg6: memref<256x10xf32, #tpu.memory_space<vmem>>, %arg7: memref<1x10xf32, #tpu.memory_space<vmem>>, %arg8: memref<2x10xf32, #tpu.memory_space<vmem>>, %arg9: memref<2x256xf32, #tpu.memory_space<vmem>>, %arg10: memref<2x256xf32, #tpu.memory_space<vmem>>) attributes {dimension_semantics = [], scalar_prefetch = 0 : i64, scratch_operands = 0 : i64, tpu.core_type = #tpu.core_type<tc>} {
    %c0 = arith.constant 0 : index
    %c0_0 = arith.constant 0 : index
    %0 = vector.load %arg1[%c0, %c0_0] : memref<2x256xf32, #tpu.memory_space<vmem>>, vector<2x256xf32>
    %c0_1 = arith.constant 0 : index
    %c0_2 = arith.constant 0 : index
    %1 = vector.load %arg0[%c0_1, %c0_2] : memref<2x256xf32, #tpu.memory_space<vmem>>, vector<2x256xf32>
    %2 = vector.extract_strided_slice %0 {offsets = [0, 0], sizes = [1, 256], strides = [1, 1]} : vector<2x256xf32> to vector<1x256xf32>
    %3 = vector.broadcast %2 : vector<1x256xf32> to vector<2x256xf32>
    %4 = arith.mulf %1, %3 : vector<2x256xf32>
    %5 = vector.extract_strided_slice %0 {offsets = [1, 0], sizes = [1, 256], strides = [1, 1]} : vector<2x256xf32> to vector<1x256xf32>
    %6 = vector.broadcast %5 : vector<1x256xf32> to vector<2x256xf32>
    %7 = arith.addf %4, %6 : vector<2x256xf32>
    %cst = arith.constant 0.000000e+00 : f32
    %8 = vector.broadcast %cst : f32 to vector<2x256xf32>
    %9 = arith.maximumf %7, %8 : vector<2x256xf32>
    %c0_3 = arith.constant 0 : index
    %c0_4 = arith.constant 0 : index
    %10 = vector.load %arg2[%c0_3, %c0_4] : memref<2x256xf32, #tpu.memory_space<vmem>>, vector<2x256xf32>
    %c0_5 = arith.constant 0 : index
    %c0_6 = arith.constant 0 : index
    %11 = vector.load %arg3[%c0_5, %c0_6] : memref<256x256xf32, #tpu.memory_space<vmem>>, vector<256x256xf32>
    %cst_7 = arith.constant dense<0.000000e+00> : vector<2x256xf32>
    %12 = tpu.matmul %10, %11, %cst_7 {dimension_numbers = #tpu.dot_dimension_numbers<[1], [0], [0], [1], [0, 0, 1, 1], [], []>} : vector<2x256xf32>, vector<256x256xf32>, vector<2x256xf32> -> vector<2x256xf32>
    %c0_8 = arith.constant 0 : index
    %c0_9 = arith.constant 0 : index
    %13 = vector.load %arg4[%c0_8, %c0_9] : memref<1x256xf32, #tpu.memory_space<vmem>>, vector<1x256xf32>
    %14 = vector.broadcast %13 : vector<1x256xf32> to vector<2x256xf32>
    %15 = arith.addf %12, %14 : vector<2x256xf32>
    %cst_10 = arith.constant dense<0.000000e+00> : vector<256xf32>
    %16 = vector.multi_reduction <add>, %15, %cst_10 [0] : vector<2x256xf32> to vector<256xf32>
    %17 = vector.shape_cast %16 : vector<256xf32> to vector<1x256xf32>
    %cst_11 = arith.constant 2.000000e+00 : f32
    %18 = vector.broadcast %cst_11 : f32 to vector<1x256xf32>
    %19 = arith.divf %17, %18 : vector<1x256xf32>
    %20 = arith.mulf %15, %15 : vector<2x256xf32>
    %cst_12 = arith.constant dense<0.000000e+00> : vector<256xf32>
    %21 = vector.multi_reduction <add>, %20, %cst_12 [0] : vector<2x256xf32> to vector<256xf32>
    %22 = vector.shape_cast %21 : vector<256xf32> to vector<1x256xf32>
    %cst_13 = arith.constant 2.000000e+00 : f32
    %23 = vector.broadcast %cst_13 : f32 to vector<1x256xf32>
    %24 = arith.divf %22, %23 : vector<1x256xf32>
    %25 = arith.mulf %19, %19 : vector<1x256xf32>
    %26 = arith.subf %24, %25 : vector<1x256xf32>
    %cst_14 = arith.constant 0.000000e+00 : f32
    %27 = vector.broadcast %cst_14 : f32 to vector<1x256xf32>
    %28 = arith.maximumf %26, %27 : vector<1x256xf32>
    %29 = vector.broadcast %19 : vector<1x256xf32> to vector<2x256xf32>
    %30 = arith.subf %15, %29 : vector<2x256xf32>
    %cst_15 = arith.constant 9.99999974E-6 : f32
    %31 = vector.broadcast %cst_15 : f32 to vector<1x256xf32>
    %32 = arith.addf %28, %31 : vector<1x256xf32>
    %33 = math.rsqrt %32 : vector<1x256xf32>
    %34 = vector.broadcast %33 : vector<1x256xf32> to vector<2x256xf32>
    %35 = arith.mulf %30, %34 : vector<2x256xf32>
    %cst_16 = arith.constant 0.000000e+00 : f32
    %36 = vector.broadcast %cst_16 : f32 to vector<2x256xf32>
    %37 = arith.maximumf %35, %36 : vector<2x256xf32>
    %c0_17 = arith.constant 0 : index
    %c0_18 = arith.constant 0 : index
    %38 = vector.load %arg5[%c0_17, %c0_18] : memref<256x10xf32, #tpu.memory_space<vmem>>, vector<256x10xf32>
    %cst_19 = arith.constant dense<0.000000e+00> : vector<2x10xf32>
    %39 = tpu.matmul %9, %38, %cst_19 {dimension_numbers = #tpu.dot_dimension_numbers<[1], [0], [0], [1], [0, 0, 1, 1], [], []>} : vector<2x256xf32>, vector<256x10xf32>, vector<2x10xf32> -> vector<2x10xf32>
    %c0_20 = arith.constant 0 : index
    %c0_21 = arith.constant 0 : index
    %40 = vector.load %arg6[%c0_20, %c0_21] : memref<256x10xf32, #tpu.memory_space<vmem>>, vector<256x10xf32>
    %cst_22 = arith.constant dense<0.000000e+00> : vector<2x10xf32>
    %41 = tpu.matmul %37, %40, %cst_22 {dimension_numbers = #tpu.dot_dimension_numbers<[1], [0], [0], [1], [0, 0, 1, 1], [], []>} : vector<2x256xf32>, vector<256x10xf32>, vector<2x10xf32> -> vector<2x10xf32>
    %42 = arith.addf %39, %41 : vector<2x10xf32>
    %c0_23 = arith.constant 0 : index
    %c0_24 = arith.constant 0 : index
    %43 = vector.load %arg7[%c0_23, %c0_24] : memref<1x10xf32, #tpu.memory_space<vmem>>, vector<1x10xf32>
    %44 = vector.broadcast %43 : vector<1x10xf32> to vector<2x10xf32>
    %45 = arith.addf %42, %44 : vector<2x10xf32>
    %46 = math.absf %45 : vector<2x10xf32>
    %cst_25 = arith.constant 0.000000e+00 : f32
    %47 = vector.broadcast %cst_25 : f32 to vector<2x10xf32>
    %48 = arith.subf %47, %46 : vector<2x10xf32>
    %49 = math.exp %48 : vector<2x10xf32>
    %cst_26 = arith.constant 0.000000e+00 : f32
    %50 = vector.broadcast %cst_26 : f32 to vector<2x10xf32>
    %51 = arith.cmpf oge, %45, %50 : vector<2x10xf32>
    %cst_27 = arith.constant 1.000000e+00 : f32
    %52 = vector.broadcast %cst_27 : f32 to vector<2x10xf32>
    %53 = arith.addf %52, %49 : vector<2x10xf32>
    %cst_28 = arith.constant 1.000000e+00 : f32
    %54 = vector.broadcast %cst_28 : f32 to vector<2x10xf32>
    %55 = arith.divf %54, %53 : vector<2x10xf32>
    %cst_29 = arith.constant 1.000000e+00 : f32
    %56 = vector.broadcast %cst_29 : f32 to vector<2x10xf32>
    %57 = arith.addf %56, %49 : vector<2x10xf32>
    %58 = arith.divf %49, %57 : vector<2x10xf32>
    %59 = arith.select %51, %55, %58 : vector<2x10xi1>, vector<2x10xf32>
    %c0_30 = arith.constant 0 : index
    %c0_31 = arith.constant 0 : index
    %60 = vector.load %arg8[%c0_30, %c0_31] : memref<2x10xf32, #tpu.memory_space<vmem>>, vector<2x10xf32>
    tpu.vector_store %arg8[%c0_30, %c0_31], %59 {strides = array<i32>} : memref<2x10xf32, #tpu.memory_space<vmem>>, vector<2x10xf32>,
    %c0_32 = arith.constant 0 : index
    %c0_33 = arith.constant 0 : index
    %61 = vector.load %arg9[%c0_32, %c0_33] : memref<2x256xf32, #tpu.memory_space<vmem>>, vector<2x256xf32>
    tpu.vector_store %arg9[%c0_32, %c0_33], %9 {strides = array<i32>} : memref<2x256xf32, #tpu.memory_space<vmem>>, vector<2x256xf32>,
    %c0_34 = arith.constant 0 : index
    %c0_35 = arith.constant 0 : index
    %62 = vector.load %arg10[%c0_34, %c0_35] : memref<2x256xf32, #tpu.memory_space<vmem>>, vector<2x256xf32>
    tpu.vector_store %arg10[%c0_34, %c0_35], %37 {strides = array<i32>} : memref<2x256xf32, #tpu.memory_space<vmem>>, vector<2x256xf32>,
    return
  }
}

</mosaic_0001>

<bundles_post_ra>
// kernel: sbfusion_forward.9
= control target key start
LH: loop header
LB: loop body
LE: loop exit
PB: predicated region body
PF: predicated region fallthrough
CT: control target
= control target key end

     0   :  { %10 = vsyncpa [#allocation3], 0  ;;  %s851_s15 = smov 0   ;;  %s937_s0 = inlined_call_operand.vmem [shape: bf16[2,32,128], index: 0, kind: input, shape index: {}]   ;;  %s938_s1 = inlined_call_operand.vmem [shape: f32[2,64], index: 1, kind: input, shape index: {}]   ;;  %s939_s2 = inlined_call_operand.hbm [shape: bf16[64,384], index: 2, kind: input, shape index: {}]   ;;  %s940_s3 = inlined_call_operand.vmem [shape: bf16[2,32,128], index: 3, kind: output, shape index: {0}]   ;;  %s941_s4 = inlined_call_operand.vmem [shape: f32[2,2,128], index: 4, kind: output, shape index: {1}]  }
   0x1 LB: > { %s857_s16 = sadd.s32 4294967295, %s819_s15   ;;  %p656_p0 = scmp.ge.s32.totalorder %s819_s15, 1  ;;  %s819_s15 = sphi %s851_s15, %s16_s15  }
   0x2   : > { %p141_p1 = scmp.lt.s32.totalorder %s819_s15, 3  ;;  %s821_s17 = smov [#allocation2]  }
   0x3   : > { %s156_s18 = sshll.u32 %s821_s17, 4  ;;  %p942_p3 = scmp.eq.s32.totalorder %s857_s16, 0  ;;  %s157_s18 = int_to_ptr.vmem [resolvable:$true] %s156_s18 }
   0x4   : > { %p861_p2 = pnand %p656_p0, %p141_p1  ;;  %s781_s23 = scalar_lea.hbm %s939_s2, 1536 }
   0x5   : > { %p782_p6 = scmp.ne.s32.totalorder %s939_s2, %s781_s23  ;;  %p788_p10 = scmp.lt.u32.totalorder %s781_s23, %s939_s2 }
   0x6   : > { %s944_s19 = scalar_select %p861_p2, 1, 0 }
   0x7   : > { %p736_p4 = pneg %p861_p2 }
   0x9   : > { %p870_p5 = pnand %p942_p3, %p736_p4 }
   0xb   : > { %p783_p7 = pneg %p870_p5 }
   0xd   : > { %p784_p8 = pnand %p783_p7, %p782_p6 }
   0xf   : > { %p785_p9 = pneg %p784_p8 }
  0x11   : > { %p790_p11 = pnand %p788_p10, %p785_p9 }
  0x13   : > { %793 = shalt.err (!%p790_p11)
}
  0x14   : > { %s794_s28 = scalar_lea.vmem %s157_s18, 1536  ;;  %p802_p1 = scmp.lt.s32.totalorder %s157_s18, %s157_s18 }
  0x15   : > { %p795_p12 = scmp.ne.s32.totalorder %s157_s18, %s794_s28  ;;  %p803_p4 = scmp.lt.s32.totalorder %s794_s28, %s794_s28 }
  0x17   : > { %p797_p13 = pnand %p795_p12, %p783_p7  ;;  %p804_p3 = por %p803_p4, %p802_p1 }
  0x19   : > { %p798_p0 = pneg %p797_p13 }
  0x1b   : > { %p805_p2 = pnand %p804_p3, %p798_p0 }
  0x1d   : > { %808 = shalt.err (!%p805_p2)
}
  0x1e   : > { %s822_s29 = smov 192   ;;  %s823_s30 = smov 12  }
  0x1f   : > { %739 = dma.hbm_to_vmem [thread:$0]  (!%p870_p5), %s939_s2, 1536, %s157_s18, [#allocation3], %s822_s29, %s822_s29, %s823_s30  }
  0x20   : > { %p946_p6 = scmp.ne.s32.totalorder %s944_s19, 0 }
  0x21   : > { %p947_p8 = scmp.eq.s32.totalorder (!%p946_p6), %s857_s16, 0 }
  0x22   : > { %180 = sbr.rel (%p946_p6) target bundleno = 430 (0x1ae), region = 32 }
  0x29   : > { %814 = dma.done.wait (%p947_p8), [#allocation3], 1536   ;;  %p948_p7 = pmov %p947_p8 }
  0x2a   : > { %p210_p2 = scmp.lt.s32.totalorder %s857_s16, 1  ;;  %v765_v6 = vld [vmem:[#allocation2 + $0x4] ss:$12 sps:$4 sm:$0xff]   ;;  %v767_v7 = vld [vmem:[#allocation2] ss:$12 sps:$4 sm:$0xff]   ;;  %v824_v12 = vmov 0   ;;  %v254_v21 = vlaneseq }
  0x2b   : > { %816 = vsyncadd (%p948_p7), [#allocation3], 4294965760  ;;  %363 = vmatprep.subr.bf16.mxu0 %v765_v6  ;;  %v768_v9 = vld [vmem:[#allocation2 + $0x1c] ss:$12 sps:$4 sm:$0xff]   ;;  %v771_v11 = vld [vmem:[#allocation2 + $0x18] ss:$12 sps:$4 sm:$0xff]   ;;  %395 = vmatprep.mubr.bf16.mxu0 %v824_v12 }
  0x2c   : > { %s950_s16 = smov (!%p210_p2, %s857_s16), 1  ;;  %364 = vmatpush1.bf16.msra.mxu0 %v767_v7  ;;  %v770_v10 = vld [vmem:[#allocation2 + $0x8] ss:$12 sps:$4 sm:$0xff]   ;;  %s825_s11 = smov 64   ;;  %v774_v15 = vld [vmem:[#allocation2 + $0x20] ss:$12 sps:$4 sm:$0xff]  }
  0x2d   : > { %s688_s7 = sshll.u32 %s950_s16, 4  ;;  %365 = vmatprep.subr.bf16.mxu0 %v768_v9  ;;  %v772_v14 = vld [vmem:[#allocation2 + $0x34] ss:$12 sps:$4 sm:$0xff]   ;;  %720 = vmatprep.subr.bf16.mxu1 %v770_v10  ;;  %v775_v16 = vld [vmem:[#allocation2 + $0x30] ss:$12 sps:$4 sm:$0xff]   ;;  %v906_v22 = vshrl.u32 %v254_v21, 7 }
  0x2e   : > { %s214_s10 = scalar_lea.vmem %s937_s0, %s688_s7  ;;  %721 = vmatpush3.bf16.msra.mxu1 %v770_v10  ;;  %v778_v17 = vld [vmem:[#allocation2 + $0x38] ss:$12 sps:$4 sm:$0xff]   ;;  %v779_v19 = vld [vmem:[#allocation2 + $0x48] ss:$12 sps:$4 sm:$0xff]   ;;  %v780_v20 = vld [vmem:[#allocation2 + $0x50] ss:$12 sps:$4 sm:$0xff]   ;;  %s219_s18 = scalar_lea.vmem %s940_s3, %s688_s7 }
  0x2f   : > { %v695_v0 = vld [vmem:[%s214_s10] sm:$0xff]   ;;  %v712_v1 = vld [vmem:[%s214_s10 + $0x8] sm:$0xff]   ;;  %722 = vmatprep.subr.bf16.mxu1 %v774_v15  ;;  %v256_v23 = vsub.s32 0, %v906_v22  ;;  %v264_v25 = vsub.s32 1, %v906_v22  ;;  %vm356_vm0 = vcmask 523264   ;;  %vm474_vm1 = vcmp.lt.s32.totalorder %v906_v22, 1 }
  0x30   : > { %v696_v2 = vunpack.c.l.bf16 %v695_v0  ;;  %v697_v3 = vunpack.c.h.bf16 %v695_v0  ;;  %v700_v4 = vunpack.c.l.bf16 %v712_v1  ;;  %v701_v5 = vunpack.c.h.bf16 %v712_v1  ;;  %366 = vmatpush1.bf16.msra.mxu0 %v771_v11  ;;  %v776_v18 = vld [vmem:[#allocation2 + $0x4c] ss:$12 sps:$4 sm:$0xff]   ;;  %v253_v24 = vld [vmem:[%s938_s1] sm:$0x3]  ;;  %s665_s19 = sshll.u32 %s950_s16, 1 }
  0x31   : > { %367 = vmatprep.subr.bf16.mxu0 %v772_v14  ;;  %v257_v27 = vrot.slane %v253_v24, %v256_v23  ;;  %v265_v30 = vrot.slane %v253_v24, %v264_v25  ;;  %vm495_vm2 = vcmp.lt.s32.totalorder %v906_v22, 7  ;;  %vm479_vm3 = vcmp.eq.s32.totalorder %v906_v22, 0  ;;  %s223_s22 = scalar_lea.vmem %s941_s4, %s665_s19 }
  0x32   : > { %v755_v8 = vpack.i.bf16 %v697_v3, %v696_v2  ;;  %v760_v13 = vpack.i.bf16 %v701_v5, %v700_v4  ;;  %723 = vmatpush3.bf16.msra.mxu1 %v774_v15 }
  0x33   : > { %724 = vmatprep.subr.bf16.mxu1 %v778_v17 }
  0x34   : > { %756 = vrot.lane.b32.xlu0 %v755_v8, %s825_s11  ;;  %368 = vmatpush1.bf16.msra.mxu0 %v775_v16 }
  0x35   : > { %369 = vmatprep.subr.bf16.mxu0 %v776_v18 }
  0x36   : > { %725 = vmatpush3.bf16.msra.mxu1 %v778_v17 }
  0x37   : > { %726 = vmatprep.subr.bf16.mxu1 %v780_v20 }
  0x38   : > { %761 = vrot.lane.b32.xlu0 %v760_v13, %s825_s11  ;;  %370 = vmatpush1.bf16.msra.mxu0 %v779_v19 }
  0x3a   : > { %727 = vmatpush3.bf16.msra.mxu1 %v780_v20 }
  0xa6   : > { %v757_v26 = vpop.permute.xlu0 %756 }
  0xa7   : > { %v759_v28 = vunpack.i.h.bf16 %v757_v26  ;;  %v758_v29 = vunpack.i.l.bf16 %v757_v26 }
  0xa9   : > { %v250_v31 = vmax.f32 %v697_v3, %v759_v28  ;;  %v249_v32 = vmax.f32 %v696_v2, %v758_v29 }
  0xaa   : > { %v762_v33 = vpop.permute.xlu0 %761 }
  0xab   : > { %v259_v34 = vmul.f32 %v257_v27, %v250_v31  ;;  %v258_v35 = vmul.f32 %v257_v27, %v249_v32  ;;  %v764_v36 = vunpack.i.h.bf16 %v762_v33  ;;  %v763_v37 = vunpack.i.l.bf16 %v762_v33 }
  0xad   : > { %v267_v38 = vadd.f32 %v265_v30, %v259_v34  ;;  %v266_v39 = vadd.f32 %v265_v30, %v258_v35  ;;  %v252_v40 = vmax.f32 %v701_v5, %v764_v36  ;;  %v251_v41 = vmax.f32 %v700_v4, %v763_v37 }
  0xae   : > { %v469_v5 = vadd.s32 24, %v906_v22 }
  0xaf   : > { %v271_v42 = vmax.f32 %v267_v38, 0.0  ;;  %v270_v43 = vmax.f32 %v266_v39, 0.0  ;;  %v261_v44 = vmul.f32 %v257_v27, %v252_v40  ;;  %v260_v45 = vmul.f32 %v257_v27, %v251_v41 }
  0xb0   : > { %vm503_vm4 = vcmp.eq.s32.totalorder %v469_v5, 31 }
  0xb1   : > { %v269_v46 = vadd.f32 %v265_v30, %v261_v44  ;;  %v268_v47 = vadd.f32 %v265_v30, %v260_v45  ;;  %v274_v48 = vpack.c.bf16 %v271_v42, %v270_v43 }
  0xb3   : > { %v273_v49 = vmax.f32 %v269_v46, 0.0  ;;  %v272_v50 = vmax.f32 %v268_v47, 0.0  ;;  %678 = vmatmul.mubr.msk.bf16.vlgmr.msra.gmra.mrb[0].mxu0 %vm356_vm0, %v274_v48  ;;  %728 = vmatprep.mubr.msk.bf16.mxu1 %vm356_vm0, %v274_v48 }
  0xb4   : > { %405 = vmatprep.mubr.bf16.mxu0 %v824_v12 }
  0xb5   : > { %v275_v51 = vpack.c.bf16 %v273_v49, %v272_v50 }
  0xb7   : > { %729 = vmatmul.mubr.msk.bf16.vlgmr.msra.gmra.mrb[0].mxu1 %vm356_vm0, %v275_v51 }
  0xbb   : > { %679 = vmatmul.mubr.msk.bf16.gmra.mrb[4].mxu0 %vm356_vm0, %v275_v51 }
 0x186   : > { %v397_v52 = vpop.f32.mrb[0].mxu0 }
 0x187   : > { %v399_v53 = vpop.f32.mrb[1].mxu0  ;;  %v470_v55 = vrot.slane %v397_v52, 7 }
 0x188   : > { %v401_v54 = vpop.f32.mrb[2].mxu0 }
 0x189   : > { %v471_v56 = vrot.slane %v401_v54, 7  ;;  %v403_v57 = vpop.f32.mrb[3].mxu0 }
 0x18a   : > { %v730_v58 = vpop.f32.mrb[0].mxu1 }
 0x18b   : > { %v477_v59 = vsel %vm474_vm1, %v470_v55, %v471_v56  ;;  %v493_v60 = vrot.slane %v730_v58, 1  ;;  %v450_v61 = vpop.f32.mrb[1].mxu1 }
 0x18c   : > { %v488_v62 = vadd.f32 %v477_v59, %v403_v57  ;;  %v491_v63 = vrot.slane %v450_v61, 1  ;;  %v731_v0 = vpop.f32.mrb[2].mxu1 }
 0x18d   : > { %v494_v1 = vrot.slane %v731_v0, 1  ;;  %v453_v2 = vpop.f32.mrb[3].mxu1 }
 0x18e   : > { %v492_v3 = vrot.slane %v453_v2, 1  ;;  %v407_v4 = vpop.f32.mrb[4].mxu0 }
 0x18f   : > { %v472_v6 = vrot.slane %v407_v4, 7  ;;  %v409_v7 = vpop.f32.mrb[5].mxu0  ;;  %v496_v8 = vsel %vm495_vm2, %v493_v60, %v494_v1  ;;  %v499_v9 = vsel %vm495_vm2, %v494_v1, %v491_v63 }
 0x190   : > { %v497_v10 = vsel %vm495_vm2, %v492_v3, %v493_v60  ;;  %v498_v11 = vsel %vm495_vm2, %v491_v63, %v492_v3  ;;  %v411_v12 = vpop.f32.mrb[6].mxu0  ;;  %v507_v25 = vsel %vm503_vm4, 0.0, %v499_v9 }
 0x191   : > { %v509_v13 = vadd.f32 %v497_v10, %v488_v62  ;;  %v476_v14 = vsel %vm474_vm1, %v471_v56, %v472_v6  ;;  %v473_v15 = vrot.slane %v411_v12, 7  ;;  %v413_v16 = vpop.f32.mrb[7].mxu0 }
 0x192   : > { %v489_v17 = vadd.f32 %v476_v14, %v409_v7 }
 0x193   : > { %v478_v18 = vsel %vm474_vm1, %v473_v15, %v470_v55  ;;  %v475_v19 = vsel %vm474_vm1, %v472_v6, %v473_v15  ;;  %v523_v29 = vmul.f32 %v509_v13, %v509_v13 }
 0x194   : > { %v510_v20 = vadd.f32 %v496_v8, %v489_v17  ;;  %v483_v21 = vsel %vm479_vm3, 0.0, %v478_v18  ;;  %v490_v23 = vadd.f32 %v475_v19, %v413_v16 }
 0x195   : > { %v487_v24 = vadd.f32 %v483_v21, %v399_v53 }
 0x196   : > { %v511_v26 = vadd.f32 %v507_v25, %v490_v23  ;;  %v524_v22 = vmul.f32 %v510_v20, %v510_v20 }
 0x197   : > { %v508_v27 = vadd.f32 %v498_v11, %v487_v24 }
 0x198   : > { %v710_v28 = vpack.c.bf16 %v511_v26, %v510_v20  ;;  %v525_v36 = vmul.f32 %v511_v26, %v511_v26 }
 0x199   : > { %v522_v30 = vmul.f32 %v508_v27, %v508_v27  ;;  %v705_v31 = vpack.c.bf16 %v509_v13, %v508_v27  ;;  %v512_v32 = vadd.f32 %v509_v13, %v508_v27 }
 0x19a   : > { %713 = vst [vmem:[%s219_s18 + $0x8] sm:$0xff] %v710_v28  }
 0x19b   : > { %706 = vst [vmem:[%s219_s18] sm:$0xff] %v705_v31   ;;  %v513_v33 = vadd.f32 %v512_v32, %v510_v20  ;;  %v526_v34 = vadd.f32 %v523_v29, %v522_v30 }
 0x19d   : > { %v514_v35 = vadd.f32 %v513_v33, %v511_v26  ;;  %v527_v37 = vadd.f32 %v526_v34, %v524_v22 }
 0x19f   : > { %v515_v38 = vrot.slane %v514_v35, 4  ;;  %v528_v39 = vadd.f32 %v527_v37, %v525_v36 }
 0x1a1   : > { %v516_v40 = vadd.f32 %v515_v38, %v514_v35  ;;  %v529_v41 = vrot.slane %v528_v39, 4 }
 0x1a3   : > { %v517_v42 = vrot.slane %v516_v40, 2  ;;  %v530_v43 = vadd.f32 %v529_v41, %v528_v39 }
 0x1a5   : > { %v518_v44 = vadd.f32 %v517_v42, %v516_v40  ;;  %v531_v45 = vrot.slane %v530_v43, 2 }
 0x1a7   : > { %v519_v46 = vrot.slane %v518_v44, 1  ;;  %v532_v47 = vadd.f32 %v531_v45, %v530_v43 }
 0x1a9   : > { %v520_v48 = vadd.f32 %v519_v46, %v518_v44  ;;  %v533_v49 = vrot.slane %v532_v47, 1 }
 0x1ab   : > { %521 = vst [vmem:[%s223_s22] sm:$0x1] %v520_v48  ;;  %v534_v50 = vadd.f32 %v533_v49, %v532_v47 }
 0x1ad   : > { %535 = vst [vmem:[%s223_s22 + $0x1] sm:$0x1] %v534_v50 }
 0x1ae PF: > { %s16_s15 = sadd.s32 1, %s819_s15  }
 0x1af   : > { %p13_p3 = scmp.ge.s32.totalorder %s16_s15, 4  }
 0x1b1   :  { %15 = sbr.rel (!%p13_p3) target bundleno = 1 (0x1), region = 79 }
 0x1b8   :  { %591 = vsyncpa [#allocation3], 1 }
 0x1b9   :  { %593 = vsyncpa [#allocation3 + $0x1], 1 }

// kernel: sbfusion_forward.7
= control target key start
LH: loop header
LB: loop body
LE: loop exit
PB: predicated region body
PF: predicated region fallthrough
CT: control target
= control target key end

     0   :  { %9 = vsyncpa [#allocation3], 0  ;;  %s761_s12 = smov 0   ;;  %s950_s0 = inlined_call_operand.vmem [shape: f32[2,64,1], index: 0, kind: input, shape index: {}]   ;;  %s951_s1 = inlined_call_operand.hbm [shape: f32[1,192], index: 1, kind: input, shape index: {}]   ;;  %s952_s2 = inlined_call_operand.vmem [shape: bf16[2,64,64], index: 2, kind: output, shape index: {0}]   ;;  %s953_s3 = inlined_call_operand.vmem [shape: f32[2,2,64], index: 3, kind: output, shape index: {1}]  }
   0x1 LB: > { %s767_s13 = sadd.s32 4294967295, %s736_s12   ;;  %p645_p0 = scmp.ge.s32.totalorder %s736_s12, 1  ;;  %s736_s12 = sphi %s761_s12, %s15_s12  }
   0x2   : > { %p119_p1 = scmp.lt.s32.totalorder %s736_s12, 3  ;;  %p954_p3 = scmp.eq.s32.totalorder %s767_s13, 0 }
   0x3   : > { %s738_s15 = smov [#allocation2]   ;;  %s698_s20 = scalar_lea.hbm %s951_s1, 32 }
   0x4   : > { %p771_p2 = pnand %p645_p0, %p119_p1  ;;  %s132_s16 = sshll.u32 %s738_s15, 4  ;;  %s133_s16 = int_to_ptr.vmem [resolvable:$true] %s132_s16 }
   0x5   : > { %p699_p6 = scmp.ne.s32.totalorder %s951_s1, %s698_s20  ;;  %p705_p10 = scmp.lt.u32.totalorder %s698_s20, %s951_s1 }
   0x6   : > { %s956_s14 = scalar_select %p771_p2, 1, 0 }
   0x7   : > { %p679_p4 = pneg %p771_p2 }
   0x9   : > { %p780_p5 = pnand %p954_p3, %p679_p4 }
   0xb   : > { %p700_p7 = pneg %p780_p5 }
   0xd   : > { %p701_p8 = pnand %p700_p7, %p699_p6 }
   0xf   : > { %p702_p9 = pneg %p701_p8 }
  0x11   : > { %p707_p11 = pnand %p705_p10, %p702_p9 }
  0x13   : > { %710 = shalt.err (!%p707_p11)
}
  0x14   : > { %s711_s25 = scalar_lea.vmem %s133_s16, 32  ;;  %p719_p1 = scmp.lt.s32.totalorder %s133_s16, %s133_s16 }
  0x15   : > { %p712_p12 = scmp.ne.s32.totalorder %s133_s16, %s711_s25  ;;  %p720_p4 = scmp.lt.s32.totalorder %s711_s25, %s711_s25 }
  0x17   : > { %p714_p13 = pnand %p712_p12, %p700_p7  ;;  %p721_p3 = por %p720_p4, %p719_p1 }
  0x19   : > { %p715_p0 = pneg %p714_p13 }
  0x1b   : > { %p722_p2 = pnand %p721_p3, %p715_p0 }
  0x1d   : > { %725 = shalt.err (!%p722_p2)
}
  0x1e   : > { %682 = dma.hbm_to_vmem [thread:$0]  (!%p780_p5), %s951_s1, 32, %s133_s16, [#allocation3]  }
  0x1f   : > { %p958_p6 = scmp.ne.s32.totalorder %s956_s14, 0 }
  0x20   : > { %p959_p8 = scmp.eq.s32.totalorder (!%p958_p6), %s767_s13, 0 }
  0x21   : > { %153 = sbr.rel (%p958_p6) target bundleno = 468 (0x1d4), region = 28 }
  0x28   : > { %731 = dma.done.wait (%p959_p8), [#allocation3], 32   ;;  %p960_p7 = pmov %p959_p8 }
  0x29   : > { %p181_p9 = scmp.lt.s32.totalorder %s767_s13, 1  ;;  %v739_v0 = vmov 0   ;;  %v245_v9 = vlaneseq  ;;  %v203_v12 = vld [vmem:[#allocation2] sm:$0x3]  ;;  %s740_s5 = smov 64   ;;  %vm426_vm4 = vcmask 1048064  }
  0x2a   : > { %733 = vsyncadd (%p960_p7), [#allocation3], 4294967264  ;;  %697 = vset.pattern.permute.xlu1 %v739_v0  ;;  %696 = vset.pattern.permute.xlu0 %v739_v0  ;;  %vm536_vm5 = vcmask 519168   ;;  %vm452_vm6 = vcmask 516096  }
  0x2b   : > { %s962_s13 = smov (!%p181_p9, %s767_s13), 1  ;;  %v814_v10 = vshrl.u32 %v245_v9, 7 }
  0x2c   : > { %s665_s28 = sshll.u32 %s962_s13, 6  ;;  %s666_s6 = sshll.u32 %s962_s13, 5 }
  0x2d   : > { %s185_s4 = scalar_lea.vmem %s950_s0, %s665_s28  ;;  %v247_v11 = vsub.s32 0, %v814_v10  ;;  %v251_v13 = vsub.s32 1, %v814_v10  ;;  %vm288_vm0 = vcmp.lt.s32.totalorder %v814_v10, 1  ;;  %vm361_vm1 = vcmp.lt.s32.totalorder %v814_v10, 7  ;;  %s190_s9 = scalar_lea.vmem %s952_s2, %s666_s6 }
  0x2e   : > { %v196_v1 = vld [vmem:[%s185_s4 + $0x8] sm:$0xff]  ;;  %v195_v2 = vld [vmem:[%s185_s4] sm:$0xff]  ;;  %v197_v3 = vld [vmem:[%s185_s4 + $0x10] sm:$0xff]  ;;  %vm297_vm2 = vcmp.eq.s32.totalorder %v814_v10, 0  ;;  %s654_s10 = sshll.u32 %s962_s13, 1 }
  0x2f   : > { %211 = vperm.xlu1 %697, %v196_v1   ;;  %206 = vperm.xlu0 %696, %v195_v2   ;;  %v202_v4 = vld [vmem:[%s185_s4 + $0x38] sm:$0xff]  ;;  %v199_v5 = vld [vmem:[%s185_s4 + $0x20] sm:$0xff]  ;;  %v201_v7 = vld [vmem:[%s185_s4 + $0x30] sm:$0xff]  ;;  %v248_v14 = vrot.slane %v203_v12, %v247_v11  ;;  %v252_v15 = vrot.slane %v203_v12, %v251_v13  ;;  %s194_s15 = scalar_lea.vmem %s953_s3, %s654_s10 }
  0x30   : > { %v198_v6 = vld [vmem:[%s185_s4 + $0x18] sm:$0xff]  ;;  %v200_v8 = vld [vmem:[%s185_s4 + $0x28] sm:$0xff] }
  0x33   : > { %216 = vperm.xlu1 %697, %v197_v3   ;;  %241 = vperm.xlu0 %696, %v202_v4   ;;  %v279_v3 = vadd.s32 56, %v814_v10 }
  0x35   : > { %vm377_vm3 = vcmp.eq.s32.totalorder %v279_v3, 63 }
  0x37   : > { %226 = vperm.xlu1 %697, %v199_v5   ;;  %221 = vperm.xlu0 %696, %v198_v6  }
  0x3b   : > { %236 = vperm.xlu1 %697, %v201_v7   ;;  %231 = vperm.xlu0 %696, %v200_v8  }
  0xae   : > { %v212_v16 = vpop.permute.xlu1 %211  ;;  %v207_v17 = vpop.permute.xlu0 %206 }
  0xaf   : > { %v818_v18 = vmul.f32 %v248_v14, %v212_v16  ;;  %v820_v19 = vmul.f32 %v248_v14, %v207_v17  ;;  %v258_v20 = vmul.f32 %v252_v15, %v212_v16  ;;  %v822_v21 = vmul.f32 %v252_v15, %v207_v17 }
  0xb1   : > { %v281_v22 = vrot.slane %v818_v18, 7  ;;  %v280_v23 = vrot.slane %v820_v19, 7  ;;  %v354_v28 = vrot.slane %v258_v20, 1  ;;  %v353_v29 = vrot.slane %v822_v21, 1 }
  0xb2   : > { %v217_v24 = vpop.permute.xlu1 %216  ;;  %v242_v25 = vpop.permute.xlu0 %241 }
  0xb3   : > { %v827_v26 = vmul.f32 %v248_v14, %v217_v24  ;;  %v260_v27 = vmul.f32 %v252_v15, %v217_v24  ;;  %v295_v30 = vsel %vm288_vm0, %v280_v23, %v281_v22  ;;  %v368_v39 = vsel %vm361_vm1, %v353_v29, %v354_v28 }
  0xb4   : > { %323 = vrot.lane.b32.xlu1 %v295_v30, %s740_s5  ;;  %v853_v48 = vmul.f32 %v248_v14, %v242_v25  ;;  %v270_v60 = vmul.f32 %v252_v15, %v242_v25 }
  0xb5   : > { %v282_v31 = vrot.slane %v827_v26, 7  ;;  %v355_v34 = vrot.slane %v260_v27, 1 }
  0xb6   : > { %v227_v32 = vpop.permute.xlu1 %226  ;;  %v222_v33 = vpop.permute.xlu0 %221  ;;  %v287_v55 = vrot.slane %v853_v48, 7  ;;  %v360_v2 = vrot.slane %v270_v60, 1 }
  0xb7   : > { %v835_v35 = vmul.f32 %v248_v14, %v222_v33  ;;  %v837_v36 = vmul.f32 %v248_v14, %v227_v32  ;;  %v262_v37 = vmul.f32 %v252_v15, %v222_v33  ;;  %v294_v38 = vsel %vm288_vm0, %v281_v22, %v282_v31 }
  0xb8   : > { %325 = vrot.lane.b32.xlu0 %v294_v38, %s740_s5  ;;  %394 = vrot.lane.b32.xlu1 %v368_v39, %s740_s5  ;;  %v264_v42 = vmul.f32 %v252_v15, %v227_v32  ;;  %v367_v43 = vsel %vm361_vm1, %v354_v28, %v355_v34  ;;  %v296_v61 = vsel %vm288_vm0, %v287_v55, %v280_v23 }
  0xb9   : > { %v283_v40 = vrot.slane %v835_v35, 7  ;;  %v284_v44 = vrot.slane %v837_v36, 7  ;;  %v356_v45 = vrot.slane %v262_v37, 1  ;;  %v305_v0 = vsel %vm297_vm2, 0.0, %v296_v61 }
  0xba   : > { %v232_v41 = vpop.permute.xlu0 %231  ;;  %v237_v49 = vpop.permute.xlu1 %236  ;;  %v357_v50 = vrot.slane %v264_v42, 1  ;;  %v369_v7 = vsel %vm361_vm1, %v360_v2, %v353_v29 }
  0xbb   : > { %v849_v46 = vmul.f32 %v248_v14, %v232_v41  ;;  %v293_v47 = vsel %vm288_vm0, %v282_v31, %v283_v40  ;;  %v857_v51 = vmul.f32 %v248_v14, %v237_v49  ;;  %v366_v53 = vsel %vm361_vm1, %v355_v34, %v356_v45 }
  0xbc   : > { %396 = vrot.lane.b32.xlu0 %v367_v43, %s740_s5  ;;  %327 = vrot.lane.b32.xlu1 %v293_v47, %s740_s5  ;;  %v292_v54 = vsel %vm288_vm0, %v283_v40, %v284_v44  ;;  %v266_v57 = vmul.f32 %v252_v15, %v232_v41  ;;  %v365_v58 = vsel %vm361_vm1, %v356_v45, %v357_v50  ;;  %v385_v9 = vsel %vm377_vm3, 0.0, %v369_v7 }
  0xbd   : > { %v285_v52 = vrot.slane %v849_v46, 7  ;;  %v286_v56 = vrot.slane %v857_v51, 7  ;;  %v268_v62 = vmul.f32 %v252_v15, %v237_v49 }
  0xbe   : > { %v358_v63 = vrot.slane %v266_v57, 1 }
  0xbf   : > { %v291_v59 = vsel %vm288_vm0, %v284_v44, %v285_v52  ;;  %v290_v1 = vsel %vm288_vm0, %v285_v52, %v286_v56  ;;  %v359_v4 = vrot.slane %v268_v62, 1  ;;  %v289_v6 = vsel %vm288_vm0, %v286_v56, %v287_v55 }
  0xc0   : > { %398 = vrot.lane.b32.xlu0 %v366_v53, %s740_s5  ;;  %329 = vrot.lane.b32.xlu1 %v292_v54, %s740_s5  ;;  %v364_v5 = vsel %vm361_vm1, %v357_v50, %v358_v63 }
  0xc1   : > { %v363_v8 = vsel %vm361_vm1, %v358_v63, %v359_v4  ;;  %v362_v11 = vsel %vm361_vm1, %v359_v4, %v360_v2 }
  0xc4   : > { %400 = vrot.lane.b32.xlu0 %v365_v58, %s740_s5  ;;  %331 = vrot.lane.b32.xlu1 %v291_v59, %s740_s5 }
  0xc8   : > { %321 = vrot.lane.b32.xlu0 %v305_v0, %s740_s5  ;;  %333 = vrot.lane.b32.xlu1 %v290_v1, %s740_s5 }
  0xcc   : > { %402 = vrot.lane.b32.xlu0 %v364_v5, %s740_s5  ;;  %335 = vrot.lane.b32.xlu1 %v289_v6, %s740_s5 }
  0xd0   : > { %404 = vrot.lane.b32.xlu0 %v363_v8, %s740_s5  ;;  %408 = vrot.lane.b32.xlu1 %v385_v9, %s740_s5 }
  0xd4   : > { %406 = vrot.lane.b32.xlu0 %v362_v11, %s740_s5 }
 0x126   : > { %v324_v12 = vpop.permute.xlu1 %323 }
 0x127   : > { %v346_v15 = vadd.f32 %v324_v12, %v818_v18 }
 0x12a   : > { %v395_v13 = vpop.permute.xlu1 %394  ;;  %v326_v14 = vpop.permute.xlu0 %325 }
 0x12b   : > { %v347_v21 = vadd.f32 %v326_v14, %v827_v26 }
 0x12e   : > { %v328_v16 = vpop.permute.xlu1 %327  ;;  %v397_v17 = vpop.permute.xlu0 %396 }
 0x12f   : > { %v419_v20 = vadd.f32 %v397_v17, %v346_v15  ;;  %v348_v10 = vadd.f32 %v328_v16, %v835_v35 }
 0x131   : > { %v668_v22 = vpack.c.bf16 %v419_v20, %v419_v20  ;;  %v455_v26 = vmul.f32 %v419_v20, %v419_v20  ;;  %v428_v40 = vsel %vm426_vm4, %v419_v20, 0.0 }
 0x132   : > { %v330_v23 = vpop.permute.xlu1 %329  ;;  %v399_v24 = vpop.permute.xlu0 %398 }
 0x133   : > { %v420_v25 = vadd.f32 %v399_v24, %v347_v21  ;;  %514 = vrot.lane.b32.xlu1 %v668_v22, %s740_s5  ;;  %v349_v34 = vadd.f32 %v330_v23, %v837_v36  ;;  %v463_v44 = vsel %vm426_vm4, %v455_v26, 0.0 }
 0x135   : > { %v669_v27 = vpack.c.bf16 %v420_v25, %v420_v25  ;;  %v456_v38 = vmul.f32 %v420_v25, %v420_v25  ;;  %v430_v47 = vsel %vm426_vm4, %v420_v25, 0.0 }
 0x136   : > { %v332_v28 = vpop.permute.xlu1 %331  ;;  %v401_v29 = vpop.permute.xlu0 %400 }
 0x137   : > { %v421_v30 = vadd.f32 %v401_v29, %v348_v10  ;;  %516 = vrot.lane.b32.xlu0 %v669_v27, %s740_s5  ;;  %v350_v49 = vadd.f32 %v332_v28, %v849_v46  ;;  %v465_v52 = vsel %vm426_vm4, %v456_v38, 0.0 }
 0x139   : > { %v670_v18 = vpack.c.bf16 %v421_v30, %v421_v30  ;;  %v457_v45 = vmul.f32 %v421_v30, %v421_v30  ;;  %v432_v57 = vsel %vm426_vm4, %v421_v30, 0.0 }
 0x13a   : > { %v334_v31 = vpop.permute.xlu1 %333  ;;  %v322_v32 = vpop.permute.xlu0 %321 }
 0x13b   : > { %v345_v33 = vadd.f32 %v322_v32, %v820_v19  ;;  %518 = vrot.lane.b32.xlu1 %v670_v18, %s740_s5  ;;  %v467_v61 = vsel %vm426_vm4, %v457_v45, 0.0  ;;  %v351_v46 = vadd.f32 %v334_v31, %v857_v51 }
 0x13d   : > { %v418_v37 = vadd.f32 %v395_v13, %v345_v33 }
 0x13e   : > { %v336_v35 = vpop.permute.xlu1 %335  ;;  %v403_v39 = vpop.permute.xlu0 %402 }
 0x13f   : > { %v427_v41 = vsel %vm426_vm4, %v418_v37, 0.0  ;;  %v454_v42 = vmul.f32 %v418_v37, %v418_v37  ;;  %v422_v43 = vadd.f32 %v403_v39, %v349_v34  ;;  %v352_v58 = vadd.f32 %v336_v35, %v853_v48 }
 0x140   : > { %v429_v19 = vadd.f32 %v428_v40, %v427_v41  ;;  %v667_v3 = vpack.c.bf16 %v418_v37, %v418_v37 }
 0x141   : > { %v462_v36 = vsel %vm426_vm4, %v454_v42, 0.0  ;;  %v671_v50 = vpack.c.bf16 %v422_v43, %v422_v43  ;;  %v458_v59 = vmul.f32 %v422_v43, %v422_v43  ;;  %v434_v0 = vsel %vm426_vm4, %v422_v43, 0.0 }
 0x142   : > { %v464_v53 = vadd.f32 %v463_v44, %v462_v36  ;;  %v431_v54 = vadd.f32 %v430_v47, %v429_v19  ;;  %v409_v55 = vpop.permute.xlu1 %408  ;;  %v405_v56 = vpop.permute.xlu0 %404 }
 0x143   : > { %v423_v60 = vadd.f32 %v405_v56, %v350_v49  ;;  %520 = vrot.lane.b32.xlu0 %v671_v50, %s740_s5  ;;  %v425_v1 = vadd.f32 %v409_v55, %v352_v58  ;;  %v469_v48 = vsel %vm426_vm4, %v458_v59, 0.0 }
 0x144   : > { %v433_v62 = vadd.f32 %v432_v57, %v431_v54  ;;  %v466_v63 = vadd.f32 %v465_v52, %v464_v53 }
 0x145   : > { %v459_v2 = vmul.f32 %v423_v60, %v423_v60  ;;  %v672_v7 = vpack.c.bf16 %v423_v60, %v423_v60  ;;  %v436_v8 = vsel %vm426_vm4, %v423_v60, 0.0  ;;  %v461_v12 = vmul.f32 %v425_v1, %v425_v1 }
 0x146   : > { %v468_v4 = vadd.f32 %v467_v61, %v466_v63  ;;  %v435_v5 = vadd.f32 %v434_v0, %v433_v62  ;;  %v407_v6 = vpop.permute.xlu0 %406  ;;  %v440_v20 = vsel %vm426_vm4, %v425_v1, 0.0  ;;  %v674_v35 = vpack.c.bf16 %v425_v1, %v425_v1 }
 0x147   : > { %v424_v9 = vadd.f32 %v407_v6, %v351_v46  ;;  %512 = vrot.lane.b32.xlu0 %v667_v3, %s740_s5  ;;  %522 = vrot.lane.b32.xlu1 %v672_v7, %s740_s5  ;;  %v471_v13 = vsel %vm426_vm4, %v459_v2, 0.0  ;;  %v475_v24 = vsel %vm426_vm4, %v461_v12, 0.0 }
 0x148   : > { %v470_v11 = vadd.f32 %v469_v48, %v468_v4  ;;  %v437_v51 = vadd.f32 %v436_v8, %v435_v5 }
 0x149   : > { %v438_v14 = vsel %vm426_vm4, %v424_v9, 0.0  ;;  %v460_v15 = vmul.f32 %v424_v9, %v424_v9  ;;  %v673_v38 = vpack.c.bf16 %v424_v9, %v424_v9 }
 0x14a   : > { %v472_v16 = vadd.f32 %v471_v13, %v470_v11  ;;  %v439_v17 = vadd.f32 %v438_v14, %v437_v51 }
 0x14b   : > { %v473_v21 = vsel %vm426_vm4, %v460_v15, 0.0 }
 0x14c   : > { %v441_v22 = vadd.f32 %v440_v20, %v439_v17  ;;  %v474_v23 = vadd.f32 %v473_v21, %v472_v16 }
 0x14e   : > { %v442_v25 = vrot.slane %v441_v22, 4  ;;  %v476_v10 = vadd.f32 %v475_v24, %v474_v23 }
 0x150   : > { %v443_v27 = vadd.f32 %v442_v25, %v441_v22  ;;  %v477_v28 = vrot.slane %v476_v10, 4 }
 0x152   : > { %v444_v29 = vrot.slane %v443_v27, 2  ;;  %v478_v30 = vadd.f32 %v477_v28, %v476_v10 }
 0x154   : > { %v445_v18 = vadd.f32 %v444_v29, %v443_v27  ;;  %v479_v31 = vrot.slane %v478_v30, 2 }
 0x156   : > { %v446_v32 = vrot.slane %v445_v18, 1  ;;  %v480_v33 = vadd.f32 %v479_v31, %v478_v30 }
 0x158   : > { %v447_v26 = vadd.f32 %v446_v32, %v445_v18  ;;  %v481_v34 = vrot.slane %v480_v33, 1 }
 0x15a   : > { %449 = vrot.lane.b32.xlu0 %v447_v26, %s740_s5  ;;  %v482_v37 = vadd.f32 %v481_v34, %v480_v33 }
 0x15c   : > { %484 = vrot.lane.b32.xlu1 %v482_v37, %s740_s5 }
 0x15e   : > { %524 = vrot.lane.b32.xlu0 %v673_v38, %s740_s5 }
 0x160   : > { %526 = vrot.lane.b32.xlu1 %v674_v35, %s740_s5 }
 0x1a5   : > { %v515_v39 = vpop.permute.xlu1 %514 }
 0x1a6   : > { %538 = vst.msk [vmem:[%s190_s9 + $0x4] sm:$0xf] %vm536_vm5, %v515_v39 }
 0x1a9   : > { %v517_v40 = vpop.permute.xlu0 %516 }
 0x1aa   : > { %539 = vst.msk [vmem:[%s190_s9 + $0x8] sm:$0xf] %vm536_vm5, %v517_v40 }
 0x1ad   : > { %v519_v41 = vpop.permute.xlu1 %518 }
 0x1ae   : > { %540 = vst.msk [vmem:[%s190_s9 + $0xc] sm:$0xf] %vm536_vm5, %v519_v41 }
 0x1b5   : > { %v521_v42 = vpop.permute.xlu0 %520 }
 0x1b6   : > { %541 = vst.msk [vmem:[%s190_s9 + $0x10] sm:$0xf] %vm536_vm5, %v521_v42 }
 0x1b9   : > { %v513_v43 = vpop.permute.xlu0 %512  ;;  %v523_v44 = vpop.permute.xlu1 %522 }
 0x1ba   : > { %537 = vst.msk [vmem:[%s190_s9] sm:$0xf] %vm536_vm5, %v513_v43  ;;  %542 = vst.msk [vmem:[%s190_s9 + $0x14] sm:$0xf] %vm536_vm5, %v523_v44 }
 0x1cc   : > { %v450_v45 = vpop.permute.xlu0 %449 }
 0x1cd   : > { %453 = vst.msk [vmem:[%s194_s15] sm:$0x1] %vm452_vm6, %v450_v45 }
 0x1ce   : > { %v485_v19 = vpop.permute.xlu1 %484 }
 0x1cf   : > { %487 = vst.msk [vmem:[%s194_s15 + $0x1] sm:$0x1] %vm452_vm6, %v485_v19 }
 0x1d0   : > { %v525_v47 = vpop.permute.xlu0 %524 }
 0x1d1   : > { %543 = vst.msk [vmem:[%s190_s9 + $0x18] sm:$0xf] %vm536_vm5, %v525_v47 }
 0x1d2   : > { %v527_v49 = vpop.permute.xlu1 %526 }
 0x1d3   : > { %544 = vst.msk [vmem:[%s190_s9 + $0x1c] sm:$0xf] %vm536_vm5, %v527_v49 }
 0x1d4 PF: > { %s15_s12 = sadd.s32 1, %s736_s12  }
 0x1d5   : > { %p12_p2 = scmp.ge.s32.totalorder %s15_s12, 4  }
 0x1d7   :  { %14 = sbr.rel (!%p12_p2) target bundleno = 1 (0x1), region = 75 }
 0x1de   :  { %580 = vsyncpa [#allocation3], 1 }
 0x1df   :  { %582 = vsyncpa [#allocation3 + $0x1], 1 }

// kernel: sbfusion_forward.8
= control target key start
LH: loop header
LB: loop body
LE: loop exit
PB: predicated region body
PF: predicated region fallthrough
CT: control target
= control target key end

     0   :  { %10 = vsyncpa [#allocation3], 0  ;;  %s960_s15 = smov 0   ;;  %s1148_s0 = inlined_call_operand.vmem [shape: bf16[2,64,64], index: 0, kind: input, shape index: {}]   ;;  %s1149_s1 = inlined_call_operand.vmem [shape: f32[2,64], index: 1, kind: input, shape index: {}]   ;;  %s1150_s2 = inlined_call_operand.hbm [shape: bf16[64,192], index: 2, kind: input, shape index: {}]   ;;  %s1151_s3 = inlined_call_operand.vmem [shape: bf16[2,64,64], index: 3, kind: output, shape index: {0}]   ;;  %s1152_s4 = inlined_call_operand.vmem [shape: f32[2,2,64], index: 4, kind: output, shape index: {1}]  }
   0x1 LB: > { %s966_s16 = sadd.s32 4294967295, %s928_s15   ;;  %p786_p0 = scmp.ge.s32.totalorder %s928_s15, 1  ;;  %s928_s15 = sphi %s960_s15, %s16_s15  }
   0x2   : > { %p141_p1 = scmp.lt.s32.totalorder %s928_s15, 3  ;;  %s930_s17 = smov [#allocation2]  }
   0x3   : > { %s156_s18 = sshll.u32 %s930_s17, 4  ;;  %p1153_p3 = scmp.eq.s32.totalorder %s966_s16, 0  ;;  %s157_s18 = int_to_ptr.vmem [resolvable:$true] %s156_s18 }
   0x4   : > { %p970_p2 = pnand %p786_p0, %p141_p1  ;;  %s890_s23 = scalar_lea.hbm %s1150_s2, 1024 }
   0x5   : > { %p891_p6 = scmp.ne.s32.totalorder %s1150_s2, %s890_s23  ;;  %p897_p10 = scmp.lt.u32.totalorder %s890_s23, %s1150_s2 }
   0x6   : > { %s1155_s19 = scalar_select %p970_p2, 1, 0 }
   0x7   : > { %p859_p4 = pneg %p970_p2 }
   0x9   : > { %p979_p5 = pnand %p1153_p3, %p859_p4 }
   0xb   : > { %p892_p7 = pneg %p979_p5 }
   0xd   : > { %p893_p8 = pnand %p892_p7, %p891_p6 }
   0xf   : > { %p894_p9 = pneg %p893_p8 }
  0x11   : > { %p899_p11 = pnand %p897_p10, %p894_p9 }
  0x13   : > { %902 = shalt.err (!%p899_p11)
}
  0x14   : > { %s903_s28 = scalar_lea.vmem %s157_s18, 1024  ;;  %p911_p1 = scmp.lt.s32.totalorder %s157_s18, %s157_s18 }
  0x15   : > { %p904_p12 = scmp.ne.s32.totalorder %s157_s18, %s903_s28  ;;  %p912_p4 = scmp.lt.s32.totalorder %s903_s28, %s903_s28 }
  0x17   : > { %p906_p13 = pnand %p904_p12, %p892_p7  ;;  %p913_p3 = por %p912_p4, %p911_p1 }
  0x19   : > { %p907_p0 = pneg %p906_p13 }
  0x1b   : > { %p914_p2 = pnand %p913_p3, %p907_p0 }
  0x1d   : > { %917 = shalt.err (!%p914_p2)
}
  0x1e   : > { %s931_s29 = smov 128   ;;  %s932_s30 = smov 8  }
  0x1f   : > { %862 = dma.hbm_to_vmem [thread:$0]  (!%p979_p5), %s1150_s2, 1024, %s157_s18, [#allocation3], %s931_s29, %s931_s29, %s932_s30  }
  0x20   : > { %p1157_p6 = scmp.ne.s32.totalorder %s1155_s19, 0 }
  0x21   : > { %p1158_p8 = scmp.eq.s32.totalorder (!%p1157_p6), %s966_s16, 0 }
  0x22   : > { %180 = sbr.rel (%p1157_p6) target bundleno = 561 (0x231), region = 32 }
  0x29   : > { %923 = dma.done.wait (%p1158_p8), [#allocation3], 1024   ;;  %p1159_p7 = pmov %p1158_p8 }
  0x2a   : > { %p210_p2 = scmp.lt.s32.totalorder %s966_s16, 1  ;;  %v933_v0 = vmov 0   ;;  %v242_v1 = vlaneseq  ;;  %v878_v3 = vld [vmem:[#allocation2 + $0x4] ss:$8 sps:$4 sm:$0xff]   ;;  %v880_v4 = vld [vmem:[#allocation2] ss:$8 sps:$4 sm:$0xff]  }
  0x2b   : > { %925 = vsyncadd (%p1159_p7), [#allocation3], 4294966272  ;;  %371 = vmatprep.mubr.bf16.mxu0 %v933_v0  ;;  %391 = vmatprep.mubr.bf16.mxu1 %v933_v0  ;;  %v881_v5 = vld [vmem:[#allocation2 + $0x14] ss:$8 sps:$4 sm:$0xff]   ;;  %v883_v8 = vld [vmem:[#allocation2 + $0x10] ss:$8 sps:$4 sm:$0xff]  }
  0x2c   : > { %s1161_s16 = smov (!%p210_p2, %s966_s16), 1  ;;  %v1011_v2 = vshrl.u32 %v242_v1, 7  ;;  %339 = vmatprep.subr.bf16.mxu0 %v878_v3  ;;  %847 = vmatprep.subr.bf16.mxu1 %v878_v3  ;;  %v884_v9 = vld [vmem:[#allocation2 + $0x24] ss:$8 sps:$4 sm:$0xff]   ;;  %v241_v11 = vld [vmem:[%s1149_s1] sm:$0x3] }
  0x2d   : > { %s818_s7 = sshll.u32 %s1161_s16, 5  ;;  %340 = vmatpush1.bf16.msra.mxu0 %v880_v4  ;;  %851 = vmatpush1.bf16.msra.mxu1 %v880_v4  ;;  %v886_v19 = vld [vmem:[#allocation2 + $0x20] ss:$8 sps:$4 sm:$0xff]   ;;  %v887_v24 = vld [vmem:[#allocation2 + $0x34] ss:$8 sps:$4 sm:$0xff]   ;;  %vm326_vm0 = vcmask 523264  }
  0x2e   : > { %s214_s10 = scalar_lea.vmem %s1148_s0, %s818_s7  ;;  %v244_v6 = vsub.s32 0, %v1011_v2  ;;  %v256_v7 = vsub.s32 1, %v1011_v2  ;;  %341 = vmatprep.subr.bf16.mxu0 %v881_v5  ;;  %848 = vmatprep.subr.bf16.mxu1 %v881_v5  ;;  %v889_v37 = vld [vmem:[#allocation2 + $0x30] ss:$8 sps:$4 sm:$0xff]   ;;  %vm429_vm1 = vcmp.lt.s32.totalorder %v1011_v2, 1  ;;  %vm502_vm2 = vcmp.lt.s32.totalorder %v1011_v2, 7  ;;  %s219_s18 = scalar_lea.vmem %s1151_s3, %s818_s7 }
  0x2f   : > { %v829_v10 = vld [vmem:[%s214_s10] sm:$0xff]   ;;  %v845_v16 = vld [vmem:[%s214_s10 + $0x10] sm:$0xff]   ;;  %v844_v17 = vld [vmem:[%s214_s10 + $0x8] sm:$0xff]   ;;  %s934_s13 = smov 64   ;;  %vm438_vm3 = vcmp.eq.s32.totalorder %v1011_v2, 0  ;;  %vm567_vm5 = vcmask 1048064  }
  0x30   : > { %v830_v12 = vunpack.c.l.bf16 %v829_v10  ;;  %v831_v13 = vunpack.c.h.bf16 %v829_v10  ;;  %v245_v14 = vrot.slane %v241_v11, %v244_v6  ;;  %v257_v15 = vrot.slane %v241_v11, %v256_v7  ;;  %v846_v18 = vld [vmem:[%s214_s10 + $0x18] sm:$0xff]   ;;  %s795_s19 = sshll.u32 %s1161_s16, 1 }
  0x31   : > { %342 = vmatpush1.bf16.msra.mxu0 %v883_v8  ;;  %852 = vmatpush1.bf16.msra.mxu1 %v883_v8  ;;  %v838_v20 = vunpack.c.l.bf16 %v845_v16  ;;  %v839_v21 = vunpack.c.h.bf16 %v845_v16  ;;  %v834_v22 = vunpack.c.l.bf16 %v844_v17  ;;  %v835_v23 = vunpack.c.h.bf16 %v844_v17  ;;  %s223_s22 = scalar_lea.vmem %s1152_s4, %s795_s19 }
  0x32   : > { %343 = vmatprep.subr.bf16.mxu0 %v884_v9  ;;  %849 = vmatprep.subr.bf16.mxu1 %v884_v9  ;;  %v246_v25 = vmul.f32 %v830_v12, %v245_v14  ;;  %v247_v26 = vmul.f32 %v831_v13, %v245_v14  ;;  %v842_v27 = vunpack.c.l.bf16 %v846_v18  ;;  %v843_v28 = vunpack.c.h.bf16 %v846_v18 }
  0x33   : > { %v250_v29 = vmul.f32 %v838_v20, %v245_v14  ;;  %v251_v30 = vmul.f32 %v839_v21, %v245_v14  ;;  %v248_v31 = vmul.f32 %v834_v22, %v245_v14  ;;  %v249_v32 = vmul.f32 %v835_v23, %v245_v14 }
  0x34   : > { %v258_v33 = vadd.f32 %v257_v15, %v246_v25  ;;  %v259_v34 = vadd.f32 %v257_v15, %v247_v26  ;;  %v252_v35 = vmul.f32 %v842_v27, %v245_v14  ;;  %v253_v36 = vmul.f32 %v843_v28, %v245_v14 }
  0x35   : > { %344 = vmatpush1.bf16.msra.mxu0 %v886_v19  ;;  %853 = vmatpush1.bf16.msra.mxu1 %v886_v19  ;;  %v262_v38 = vadd.f32 %v257_v15, %v250_v29  ;;  %v263_v39 = vadd.f32 %v257_v15, %v251_v30  ;;  %v260_v44 = vadd.f32 %v257_v15, %v248_v31  ;;  %vm677_vm6 = vcmask 519168  }
  0x36   : > { %345 = vmatprep.subr.bf16.mxu0 %v887_v24  ;;  %850 = vmatprep.subr.bf16.mxu1 %v887_v24  ;;  %v266_v40 = vmax.f32 %v258_v33, 0.0  ;;  %v267_v41 = vmax.f32 %v259_v34, 0.0  ;;  %v261_v46 = vadd.f32 %v257_v15, %v249_v32  ;;  %v264_v47 = vadd.f32 %v257_v15, %v252_v35 }
  0x37   : > { %v270_v42 = vmax.f32 %v262_v38, 0.0  ;;  %v271_v43 = vmax.f32 %v263_v39, 0.0  ;;  %v265_v48 = vadd.f32 %v257_v15, %v253_v36  ;;  %v268_v50 = vmax.f32 %v260_v44, 0.0 }
  0x38   : > { %v274_v45 = vpack.c.bf16 %v267_v41, %v266_v40  ;;  %v269_v51 = vmax.f32 %v261_v46, 0.0  ;;  %v272_v52 = vmax.f32 %v264_v47, 0.0  ;;  %vm593_vm7 = vcmask 516096  }
  0x39   : > { %346 = vmatpush1.bf16.msra.mxu0 %v889_v37  ;;  %854 = vmatpush1.bf16.msra.mxu1 %v889_v37  ;;  %v276_v49 = vpack.c.bf16 %v271_v43, %v270_v42  ;;  %v273_v53 = vmax.f32 %v265_v48, 0.0  ;;  %v420_v42 = vadd.s32 56, %v1011_v2 }
  0x3a   : > { %v275_v54 = vpack.c.bf16 %v269_v51, %v268_v50 }
  0x3b   : > { %v277_v55 = vpack.c.bf16 %v273_v53, %v272_v52  ;;  %vm518_vm4 = vcmp.eq.s32.totalorder %v420_v42, 63 }
  0x3c   : > { %804 = vmatmul.mubr.msk.bf16.vlgmr.msra.gmra.mrb[0].mxu0 %vm326_vm0, %v274_v45  ;;  %806 = vmatmul.mubr.msk.bf16.vlgmr.msra.gmra.mrb[0].mxu1 %vm326_vm0, %v276_v49 }
  0x3d   : > { %381 = vmatprep.mubr.bf16.mxu0 %v933_v0  ;;  %401 = vmatprep.mubr.bf16.mxu1 %v933_v0 }
  0x44   : > { %805 = vmatmul.mubr.msk.bf16.gmra.mrb[4].mxu0 %vm326_vm0, %v275_v54  ;;  %807 = vmatmul.mubr.msk.bf16.gmra.mrb[4].mxu1 %vm326_vm0, %v277_v55 }
 0x10f   : > { %v1026_v56 = vpop.f32.mrb[0].mxu0  ;;  %v1028_v57 = vpop.f32.mrb[0].mxu1 }
 0x110   : > { %v425_v58 = vrot.slane %v1028_v57, 7  ;;  %v375_v59 = vpop.f32.mrb[1].mxu0  ;;  %v395_v60 = vpop.f32.mrb[1].mxu1  ;;  %v421_v0 = vrot.slane %v1026_v56, 7 }
 0x111   : > { %v498_v61 = vrot.slane %v395_v60, 1  ;;  %v1031_v62 = vpop.f32.mrb[2].mxu0  ;;  %v1033_v63 = vpop.f32.mrb[2].mxu1  ;;  %v494_v6 = vrot.slane %v375_v59, 1 }
 0x112   : > { %v422_v1 = vrot.slane %v1031_v62, 7  ;;  %v426_v3 = vrot.slane %v1033_v63, 7  ;;  %v379_v4 = vpop.f32.mrb[3].mxu0  ;;  %v399_v5 = vpop.f32.mrb[3].mxu1 }
 0x113   : > { %v495_v7 = vrot.slane %v379_v4, 1  ;;  %v499_v8 = vrot.slane %v399_v5, 1 }
 0x114   : > { %v432_v9 = vsel %vm429_vm1, %v425_v58, %v426_v3  ;;  %v436_v10 = vsel %vm429_vm1, %v421_v0, %v422_v1 }
 0x115   : > { %472 = vrot.lane.b32.xlu1 %v432_v9, %s934_s13  ;;  %464 = vrot.lane.b32.xlu0 %v436_v10, %s934_s13  ;;  %v505_v11 = vsel %vm502_vm2, %v498_v61, %v499_v8  ;;  %v509_v12 = vsel %vm502_vm2, %v494_v6, %v495_v7 }
 0x117   : > { %v383_v13 = vpop.f32.mrb[4].mxu0  ;;  %v1050_v14 = vpop.f32.mrb[4].mxu1 }
 0x118   : > { %v423_v15 = vrot.slane %v383_v13, 7  ;;  %v427_v16 = vrot.slane %v1050_v14, 7  ;;  %v385_v17 = vpop.f32.mrb[5].mxu0  ;;  %v405_v18 = vpop.f32.mrb[5].mxu1 }
 0x119   : > { %v496_v19 = vrot.slane %v385_v17, 1  ;;  %v500_v20 = vrot.slane %v405_v18, 1  ;;  %v1053_v21 = vpop.f32.mrb[6].mxu1  ;;  %543 = vrot.lane.b32.xlu0 %v505_v11, %s934_s13  ;;  %535 = vrot.lane.b32.xlu1 %v509_v12, %s934_s13  ;;  %v387_v22 = vpop.f32.mrb[6].mxu0 }
 0x11a   : > { %v428_v23 = vrot.slane %v1053_v21, 7  ;;  %v424_v24 = vrot.slane %v387_v22, 7  ;;  %v389_v25 = vpop.f32.mrb[7].mxu0  ;;  %v409_v26 = vpop.f32.mrb[7].mxu1  ;;  %v435_v27 = vsel %vm429_vm1, %v422_v1, %v423_v15  ;;  %v431_v28 = vsel %vm429_vm1, %v426_v3, %v427_v16 }
 0x11b   : > { %v497_v29 = vrot.slane %v389_v25, 1  ;;  %v501_v30 = vrot.slane %v409_v26, 1  ;;  %v508_v31 = vsel %vm502_vm2, %v495_v7, %v496_v19  ;;  %v504_v32 = vsel %vm502_vm2, %v499_v8, %v500_v20 }
 0x11c   : > { %v437_v33 = vsel %vm429_vm1, %v428_v23, %v421_v0  ;;  %v434_v34 = vsel %vm429_vm1, %v423_v15, %v424_v24  ;;  %v433_v35 = vsel %vm429_vm1, %v424_v24, %v425_v58  ;;  %v430_v36 = vsel %vm429_vm1, %v427_v16, %v428_v23 }
 0x11d   : > { %466 = vrot.lane.b32.xlu1 %v435_v27, %s934_s13  ;;  %537 = vrot.lane.b32.xlu0 %v508_v31, %s934_s13  ;;  %v507_v37 = vsel %vm502_vm2, %v496_v19, %v497_v29  ;;  %v506_v38 = vsel %vm502_vm2, %v497_v29, %v498_v61  ;;  %v510_v39 = vsel %vm502_vm2, %v501_v30, %v494_v6  ;;  %v446_v41 = vsel %vm438_vm3, 0.0, %v437_v33 }
 0x11e   : > { %v503_v40 = vsel %vm502_vm2, %v500_v20, %v501_v30  ;;  %v526_v43 = vsel %vm518_vm4, 0.0, %v510_v39 }
 0x121   : > { %474 = vrot.lane.b32.xlu1 %v431_v28, %s934_s13  ;;  %462 = vrot.lane.b32.xlu0 %v446_v41, %s934_s13 }
 0x125   : > { %468 = vrot.lane.b32.xlu1 %v434_v34, %s934_s13  ;;  %539 = vrot.lane.b32.xlu0 %v507_v37, %s934_s13 }
 0x129   : > { %470 = vrot.lane.b32.xlu1 %v433_v35, %s934_s13  ;;  %541 = vrot.lane.b32.xlu0 %v506_v38, %s934_s13 }
 0x12d   : > { %476 = vrot.lane.b32.xlu1 %v430_v36, %s934_s13  ;;  %545 = vrot.lane.b32.xlu0 %v504_v32, %s934_s13 }
 0x131   : > { %549 = vrot.lane.b32.xlu1 %v526_v43, %s934_s13  ;;  %547 = vrot.lane.b32.xlu0 %v503_v40, %s934_s13 }
 0x187   : > { %v473_v44 = vpop.permute.xlu1 %472  ;;  %v465_v45 = vpop.permute.xlu0 %464 }
 0x188   : > { %v487_v48 = vadd.f32 %v465_v45, %v1031_v62  ;;  %v491_v23 = vadd.f32 %v473_v44, %v1033_v63 }
 0x18b   : > { %v544_v46 = vpop.permute.xlu0 %543  ;;  %v536_v47 = vpop.permute.xlu1 %535 }
 0x18f   : > { %v467_v49 = vpop.permute.xlu1 %466  ;;  %v538_v50 = vpop.permute.xlu0 %537 }
 0x190   : > { %v560_v51 = vadd.f32 %v538_v50, %v487_v48  ;;  %v488_v58 = vadd.f32 %v467_v49, %v383_v13 }
 0x192   : > { %v821_v2 = vpack.c.bf16 %v560_v51, %v560_v51  ;;  %v596_v55 = vmul.f32 %v560_v51, %v560_v51  ;;  %v569_v0 = vsel %vm567_vm5, %v560_v51, 0.0 }
 0x193   : > { %v475_v52 = vpop.permute.xlu1 %474  ;;  %v463_v53 = vpop.permute.xlu0 %462 }
 0x194   : > { %v486_v54 = vadd.f32 %v463_v53, %v1026_v56  ;;  %655 = vrot.lane.b32.xlu1 %v821_v2, %s934_s13  ;;  %v604_v4 = vsel %vm567_vm5, %v596_v55, 0.0  ;;  %v492_v33 = vadd.f32 %v475_v52, %v1050_v14 }
 0x196   : > { %v559_v59 = vadd.f32 %v536_v47, %v486_v54 }
 0x197   : > { %v469_v60 = vpop.permute.xlu1 %468  ;;  %v540_v61 = vpop.permute.xlu0 %539 }
 0x198   : > { %v568_v62 = vsel %vm567_vm5, %v559_v59, 0.0  ;;  %v595_v1 = vmul.f32 %v559_v59, %v559_v59  ;;  %v561_v3 = vadd.f32 %v540_v61, %v488_v58  ;;  %v489_v5 = vadd.f32 %v469_v60, %v387_v22 }
 0x199   : > { %v570_v6 = vadd.f32 %v569_v0, %v568_v62  ;;  %v820_v14 = vpack.c.bf16 %v559_v59, %v559_v59 }
 0x19a   : > { %v603_v56 = vsel %vm567_vm5, %v595_v1, 0.0  ;;  %v571_v7 = vsel %vm567_vm5, %v561_v3, 0.0  ;;  %v597_v8 = vmul.f32 %v561_v3, %v561_v3  ;;  %v822_v9 = vpack.c.bf16 %v561_v3, %v561_v3 }
 0x19b   : > { %v605_v10 = vadd.f32 %v604_v4, %v603_v56  ;;  %v572_v11 = vadd.f32 %v571_v7, %v570_v6  ;;  %v471_v12 = vpop.permute.xlu1 %470  ;;  %v542_v13 = vpop.permute.xlu0 %541 }
 0x19c   : > { %v606_v15 = vsel %vm567_vm5, %v597_v8, 0.0  ;;  %v490_v16 = vadd.f32 %v471_v12, %v1028_v57  ;;  %v562_v17 = vadd.f32 %v542_v13, %v489_v5  ;;  %657 = vrot.lane.b32.xlu0 %v822_v9, %s934_s13 }
 0x19d   : > { %v607_v18 = vadd.f32 %v606_v15, %v605_v10 }
 0x19e   : > { %v563_v19 = vadd.f32 %v544_v46, %v490_v16  ;;  %v573_v20 = vsel %vm567_vm5, %v562_v17, 0.0  ;;  %v598_v22 = vmul.f32 %v562_v17, %v562_v17  ;;  %v823_v49 = vpack.c.bf16 %v562_v17, %v562_v17 }
 0x19f   : > { %v574_v24 = vadd.f32 %v573_v20, %v572_v11  ;;  %v477_v25 = vpop.permute.xlu1 %476  ;;  %v546_v26 = vpop.permute.xlu0 %545 }
 0x1a0   : > { %v575_v27 = vsel %vm567_vm5, %v563_v19, 0.0  ;;  %v599_v28 = vmul.f32 %v563_v19, %v563_v19  ;;  %v608_v29 = vsel %vm567_vm5, %v598_v22, 0.0  ;;  %v564_v31 = vadd.f32 %v546_v26, %v491_v23 }
 0x1a1   : > { %v609_v30 = vadd.f32 %v608_v29, %v607_v18  ;;  %v576_v57 = vadd.f32 %v575_v27, %v574_v24  ;;  %v824_v32 = vpack.c.bf16 %v563_v19, %v563_v19  ;;  %v493_v35 = vadd.f32 %v477_v25, %v1053_v21 }
 0x1a2   : > { %v610_v34 = vsel %vm567_vm5, %v599_v28, 0.0  ;;  %v577_v63 = vsel %vm567_vm5, %v564_v31, 0.0  ;;  %v600_v37 = vmul.f32 %v564_v31, %v564_v31  ;;  %v825_v40 = vpack.c.bf16 %v564_v31, %v564_v31 }
 0x1a3   : > { %v611_v36 = vadd.f32 %v610_v34, %v609_v30  ;;  %661 = vrot.lane.b32.xlu0 %v824_v32, %s934_s13  ;;  %v550_v38 = vpop.permute.xlu1 %549  ;;  %v548_v39 = vpop.permute.xlu0 %547  ;;  %v578_v41 = vadd.f32 %v577_v63, %v576_v57 }
 0x1a4   : > { %v566_v42 = vadd.f32 %v550_v38, %v493_v35  ;;  %v565_v43 = vadd.f32 %v548_v39, %v492_v33  ;;  %v612_v44 = vsel %vm567_vm5, %v600_v37, 0.0  ;;  %663 = vrot.lane.b32.xlu1 %v825_v40, %s934_s13 }
 0x1a5   : > { %v613_v45 = vadd.f32 %v612_v44, %v611_v36 }
 0x1a6   : > { %v579_v21 = vsel %vm567_vm5, %v565_v43, 0.0  ;;  %v602_v46 = vmul.f32 %v566_v42, %v566_v42  ;;  %v601_v48 = vmul.f32 %v565_v43, %v565_v43  ;;  %v581_v50 = vsel %vm567_vm5, %v566_v42, 0.0 }
 0x1a7   : > { %v580_v47 = vadd.f32 %v579_v21, %v578_v41  ;;  %653 = vrot.lane.b32.xlu0 %v820_v14, %s934_s13  ;;  %v826_v56 = vpack.c.bf16 %v565_v43, %v565_v43  ;;  %v827_v7 = vpack.c.bf16 %v566_v42, %v566_v42 }
 0x1a8   : > { %v614_v2 = vsel %vm567_vm5, %v601_v48, 0.0  ;;  %659 = vrot.lane.b32.xlu1 %v823_v49, %s934_s13  ;;  %v616_v53 = vsel %vm567_vm5, %v602_v46, 0.0 }
 0x1a9   : > { %v582_v51 = vadd.f32 %v581_v50, %v580_v47  ;;  %v615_v52 = vadd.f32 %v614_v2, %v613_v45 }
 0x1ab   : > { %v583_v54 = vrot.slane %v582_v51, 4  ;;  %v617_v55 = vadd.f32 %v616_v53, %v615_v52 }
 0x1ad   : > { %v584_v58 = vadd.f32 %v583_v54, %v582_v51  ;;  %v618_v59 = vrot.slane %v617_v55, 4 }
 0x1af   : > { %v585_v60 = vrot.slane %v584_v58, 2  ;;  %v619_v61 = vadd.f32 %v618_v59, %v617_v55 }
 0x1b1   : > { %v586_v0 = vadd.f32 %v585_v60, %v584_v58  ;;  %v620_v62 = vrot.slane %v619_v61, 2 }
 0x1b3   : > { %v587_v1 = vrot.slane %v586_v0, 1  ;;  %v621_v3 = vadd.f32 %v620_v62, %v619_v61 }
 0x1b5   : > { %v588_v4 = vadd.f32 %v587_v1, %v586_v0  ;;  %v622_v5 = vrot.slane %v621_v3, 1 }
 0x1b7   : > { %590 = vrot.lane.b32.xlu0 %v588_v4, %s934_s13  ;;  %v623_v6 = vadd.f32 %v622_v5, %v621_v3 }
 0x1b9   : > { %625 = vrot.lane.b32.xlu1 %v623_v6, %s934_s13 }
 0x1bb   : > { %665 = vrot.lane.b32.xlu0 %v826_v56, %s934_s13 }
 0x1bd   : > { %667 = vrot.lane.b32.xlu1 %v827_v7, %s934_s13 }
 0x206   : > { %v656_v8 = vpop.permute.xlu1 %655 }
 0x207   : > { %679 = vst.msk [vmem:[%s219_s18 + $0x4] sm:$0xf] %vm677_vm6, %v656_v8 }
 0x20e   : > { %v658_v9 = vpop.permute.xlu0 %657 }
 0x20f   : > { %680 = vst.msk [vmem:[%s219_s18 + $0x8] sm:$0xf] %vm677_vm6, %v658_v9 }
 0x215   : > { %v662_v10 = vpop.permute.xlu0 %661 }
 0x216   : > { %682 = vst.msk [vmem:[%s219_s18 + $0x10] sm:$0xf] %vm677_vm6, %v662_v10  ;;  %v664_v11 = vpop.permute.xlu1 %663 }
 0x217   : > { %683 = vst.msk [vmem:[%s219_s18 + $0x14] sm:$0xf] %vm677_vm6, %v664_v11 }
 0x219   : > { %v654_v12 = vpop.permute.xlu0 %653 }
 0x21a   : > { %678 = vst.msk [vmem:[%s219_s18] sm:$0xf] %vm677_vm6, %v654_v12  ;;  %v660_v13 = vpop.permute.xlu1 %659 }
 0x21b   : > { %681 = vst.msk [vmem:[%s219_s18 + $0xc] sm:$0xf] %vm677_vm6, %v660_v13 }
 0x229   : > { %v591_v15 = vpop.permute.xlu0 %590 }
 0x22a   : > { %594 = vst.msk [vmem:[%s223_s22] sm:$0x1] %vm593_vm7, %v591_v15 }
 0x22b   : > { %v626_v16 = vpop.permute.xlu1 %625 }
 0x22c   : > { %628 = vst.msk [vmem:[%s223_s22 + $0x1] sm:$0x1] %vm593_vm7, %v626_v16 }
 0x22d   : > { %v666_v17 = vpop.permute.xlu0 %665 }
 0x22e   : > { %684 = vst.msk [vmem:[%s219_s18 + $0x18] sm:$0xf] %vm677_vm6, %v666_v17 }
 0x22f   : > { %v668_v18 = vpop.permute.xlu1 %667 }
 0x230   : > { %685 = vst.msk [vmem:[%s219_s18 + $0x1c] sm:$0xf] %vm677_vm6, %v668_v18 }
 0x231 PF: > { %s16_s15 = sadd.s32 1, %s928_s15  }
 0x232   : > { %p13_p3 = scmp.ge.s32.totalorder %s16_s15, 4  }
 0x234   :  { %15 = sbr.rel (!%p13_p3) target bundleno = 1 (0x1), region = 79 }
 0x23b   :  { %721 = vsyncpa [#allocation3], 1 }
 0x23c   :  { %723 = vsyncpa [#allocation3 + $0x1], 1 }

// kernel: sbfusion_forward.10
= control target key start
LH: loop header
LB: loop body
LE: loop exit
PB: predicated region body
PF: predicated region fallthrough
CT: control target
= control target key end

     0   :  { %10 = vsyncpa [#allocation3], 0  ;;  %s928_s15 = smov 0   ;;  %s1016_s0 = inlined_call_operand.vmem [shape: bf16[2,32,128], index: 0, kind: input, shape index: {}]   ;;  %s1017_s1 = inlined_call_operand.vmem [shape: f32[2,128], index: 1, kind: input, shape index: {}]   ;;  %s1018_s2 = inlined_call_operand.hbm [shape: bf16[128,384], index: 2, kind: input, shape index: {}]   ;;  %s1019_s3 = inlined_call_operand.vmem [shape: bf16[2,32,128], index: 3, kind: output, shape index: {0}]   ;;  %s1020_s4 = inlined_call_operand.vmem [shape: f32[2,2,128], index: 4, kind: output, shape index: {1}]  }
   0x1 LB: > { %s934_s16 = sadd.s32 4294967295, %s897_s15   ;;  %p709_p0 = scmp.ge.s32.totalorder %s897_s15, 1  ;;  %s897_s15 = sphi %s928_s15, %s16_s15  }
   0x2   : > { %p141_p1 = scmp.lt.s32.totalorder %s897_s15, 3  ;;  %s899_s17 = smov [#allocation2]  }
   0x3   : > { %s156_s18 = sshll.u32 %s899_s17, 4  ;;  %p1021_p3 = scmp.eq.s32.totalorder %s934_s16, 0  ;;  %s157_s18 = int_to_ptr.vmem [resolvable:$true] %s156_s18 }
   0x4   : > { %p938_p2 = pnand %p709_p0, %p141_p1  ;;  %s859_s23 = scalar_lea.hbm %s1018_s2, 3072 }
   0x5   : > { %p860_p6 = scmp.ne.s32.totalorder %s1018_s2, %s859_s23  ;;  %p866_p10 = scmp.lt.u32.totalorder %s859_s23, %s1018_s2 }
   0x6   : > { %s1023_s19 = scalar_select %p938_p2, 1, 0 }
   0x7   : > { %p809_p4 = pneg %p938_p2 }
   0x9   : > { %p947_p5 = pnand %p1021_p3, %p809_p4 }
   0xb   : > { %p861_p7 = pneg %p947_p5 }
   0xd   : > { %p862_p8 = pnand %p861_p7, %p860_p6 }
   0xf   : > { %p863_p9 = pneg %p862_p8 }
  0x11   : > { %p868_p11 = pnand %p866_p10, %p863_p9 }
  0x13   : > { %871 = shalt.err (!%p868_p11)
}
  0x14   : > { %s872_s28 = scalar_lea.vmem %s157_s18, 3072  ;;  %p880_p1 = scmp.lt.s32.totalorder %s157_s18, %s157_s18 }
  0x15   : > { %p873_p12 = scmp.ne.s32.totalorder %s157_s18, %s872_s28  ;;  %p881_p4 = scmp.lt.s32.totalorder %s872_s28, %s872_s28 }
  0x17   : > { %p875_p13 = pnand %p873_p12, %p861_p7  ;;  %p882_p3 = por %p881_p4, %p880_p1 }
  0x19   : > { %p876_p0 = pneg %p875_p13 }
  0x1b   : > { %p883_p2 = pnand %p882_p3, %p876_p0 }
  0x1d   : > { %886 = shalt.err (!%p883_p2)
}
  0x1e   : > { %s900_s29 = smov 192   ;;  %s901_s30 = smov 12  }
  0x1f   : > { %812 = dma.hbm_to_vmem [thread:$0]  (!%p947_p5), %s1018_s2, 3072, %s157_s18, [#allocation3], %s900_s29, %s900_s29, %s901_s30  }
  0x20   : > { %p1025_p6 = scmp.ne.s32.totalorder %s1023_s19, 0 }
  0x21   : > { %p1026_p8 = scmp.eq.s32.totalorder (!%p1025_p6), %s934_s16, 0 }
  0x22   : > { %180 = sbr.rel (%p1025_p6) target bundleno = 326 (0x146), region = 32 }
  0x29   : > { %892 = dma.done.wait (%p1026_p8), [#allocation3], 3072   ;;  %p1027_p7 = pmov %p1026_p8 }
  0x2a   : > { %v902_v0 = vmov 0   ;;  %v827_v1 = vld [vmem:[#allocation2 + $0x4] ss:$12 sps:$4 sm:$0xff]   ;;  %v829_v2 = vld [vmem:[#allocation2] ss:$12 sps:$4 sm:$0xff]   ;;  %p210_p2 = scmp.lt.s32.totalorder %s934_s16, 1  ;;  %v234_v11 = vlaneseq }
  0x2b   : > { %894 = vsyncadd (%p1027_p7), [#allocation3], 4294964224  ;;  %448 = vmatprep.mubr.bf16.mxu0 %v902_v0  ;;  %416 = vmatprep.subr.bf16.mxu0 %v827_v1  ;;  %v830_v3 = vld [vmem:[#allocation2 + $0x8] ss:$12 sps:$4 sm:$0xff]   ;;  %v833_v5 = vld [vmem:[#allocation2 + $0x18] ss:$12 sps:$4 sm:$0xff]  }
  0x2c   : > { %417 = vmatpush1.bf16.msra.mxu0 %v829_v2  ;;  %v831_v4 = vld [vmem:[#allocation2 + $0x1c] ss:$12 sps:$4 sm:$0xff]   ;;  %785 = vmatprep.subr.bf16.mxu1 %v830_v3  ;;  %v834_v6 = vld [vmem:[#allocation2 + $0x20] ss:$12 sps:$4 sm:$0xff]   ;;  %v838_v8 = vld [vmem:[#allocation2 + $0x38] ss:$12 sps:$4 sm:$0xff]  }
  0x2d   : > { %786 = vmatpush3.bf16.msra.mxu1 %v830_v3  ;;  %418 = vmatprep.subr.bf16.mxu0 %v831_v4  ;;  %v835_v7 = vld [vmem:[#allocation2 + $0x34] ss:$12 sps:$4 sm:$0xff]   ;;  %v837_v9 = vld [vmem:[#allocation2 + $0x30] ss:$12 sps:$4 sm:$0xff]   ;;  %s1029_s16 = smov (!%p210_p2, %s934_s16), 1  ;;  %v979_v15 = vshrl.u32 %v234_v11, 7 }
  0x2e   : > { %787 = vmatprep.subr.bf16.mxu1 %v834_v6  ;;  %v839_v10 = vld [vmem:[#allocation2 + $0x4c] ss:$12 sps:$4 sm:$0xff]   ;;  %v842_v12 = vld [vmem:[#allocation2 + $0x50] ss:$12 sps:$4 sm:$0xff]   ;;  %v841_v13 = vld [vmem:[#allocation2 + $0x48] ss:$12 sps:$4 sm:$0xff]  }
  0x2f   : > { %v843_v14 = vld [vmem:[#allocation2 + $0x64] ss:$12 sps:$4 sm:$0xff]   ;;  %s749_s7 = sshll.u32 %s1029_s16, 4  ;;  %v846_v16 = vld [vmem:[#allocation2 + $0x68] ss:$12 sps:$4 sm:$0xff]   ;;  %v236_v19 = vsub.s32 0, %v979_v15 }
  0x30   : > { %419 = vmatpush1.bf16.msra.mxu0 %v833_v5  ;;  %v845_v17 = vld [vmem:[#allocation2 + $0x60] ss:$12 sps:$4 sm:$0xff]   ;;  %s214_s10 = scalar_lea.vmem %s1016_s0, %s749_s7  ;;  %v847_v18 = vld [vmem:[#allocation2 + $0x7c] ss:$12 sps:$4 sm:$0xff]   ;;  %v244_v20 = vsub.s32 1, %v979_v15  ;;  %vm527_vm0 = vcmp.lt.s32.totalorder %v979_v15, 1  ;;  %s219_s17 = scalar_lea.vmem %s1019_s3, %s749_s7 }
  0x31   : > { %420 = vmatprep.subr.bf16.mxu0 %v835_v7  ;;  %788 = vmatpush3.bf16.msra.mxu1 %v834_v6  ;;  %v850_v21 = vld [vmem:[#allocation2 + $0x80] ss:$12 sps:$4 sm:$0xff]   ;;  %v849_v23 = vld [vmem:[#allocation2 + $0x78] ss:$12 sps:$4 sm:$0xff]   ;;  %v853_v38 = vld [vmem:[#allocation2 + $0x90] ss:$12 sps:$4 sm:$0xff]  }
  0x32   : > { %789 = vmatprep.subr.bf16.mxu1 %v838_v8  ;;  %v756_v22 = vld [vmem:[%s214_s10] sm:$0xff]   ;;  %v773_v27 = vld [vmem:[%s214_s10 + $0x8] sm:$0xff]   ;;  %v858_v44 = vld [vmem:[#allocation2 + $0xb0] ss:$12 sps:$4 sm:$0xff]   ;;  %vm548_vm1 = vcmp.lt.s32.totalorder %v979_v15, 7  ;;  %v522_v4 = vadd.s32 24, %v979_v15 }
  0x33   : > { %v757_v24 = vunpack.c.l.bf16 %v756_v22  ;;  %v758_v25 = vunpack.c.h.bf16 %v756_v22  ;;  %v233_v26 = vld [vmem:[%s1017_s1] sm:$0x3]  ;;  %v761_v31 = vunpack.c.l.bf16 %v773_v27  ;;  %v762_v32 = vunpack.c.h.bf16 %v773_v27  ;;  %v854_v33 = vld [vmem:[#allocation2 + $0x98] ss:$12 sps:$4 sm:$0xff]   ;;  %v857_v47 = vld [vmem:[#allocation2 + $0xa8] ss:$12 sps:$4 sm:$0xff]  }
  0x34   : > { %421 = vmatpush1.bf16.msra.mxu0 %v837_v9  ;;  %v851_v28 = vld [vmem:[#allocation2 + $0x94] ss:$12 sps:$4 sm:$0xff]   ;;  %v237_v29 = vrot.slane %v233_v26, %v236_v19  ;;  %v245_v30 = vrot.slane %v233_v26, %v244_v20  ;;  %v855_v39 = vld [vmem:[#allocation2 + $0xac] ss:$12 sps:$4 sm:$0xff]   ;;  %vm556_vm2 = vcmp.eq.s32.totalorder %v522_v4, 31  ;;  %vm532_vm3 = vcmp.eq.s32.totalorder %v979_v15, 0 }
  0x35   : > { %422 = vmatprep.subr.bf16.mxu0 %v839_v10  ;;  %790 = vmatpush3.bf16.msra.mxu1 %v838_v8  ;;  %s718_s18 = sshll.u32 %s1029_s16, 1 }
  0x36   : > { %791 = vmatprep.subr.bf16.mxu1 %v842_v12  ;;  %v238_v34 = vmul.f32 %v757_v24, %v237_v29  ;;  %v239_v35 = vmul.f32 %v758_v25, %v237_v29  ;;  %v240_v36 = vmul.f32 %v761_v31, %v237_v29  ;;  %v241_v37 = vmul.f32 %v762_v32, %v237_v29  ;;  %s223_s21 = scalar_lea.vmem %s1020_s4, %s718_s18 }
  0x38   : > { %423 = vmatpush1.bf16.msra.mxu0 %v841_v13  ;;  %v246_v40 = vadd.f32 %v245_v30, %v238_v34  ;;  %v247_v41 = vadd.f32 %v245_v30, %v239_v35  ;;  %v248_v42 = vadd.f32 %v245_v30, %v240_v36  ;;  %v249_v43 = vadd.f32 %v245_v30, %v241_v37 }
  0x39   : > { %424 = vmatprep.subr.bf16.mxu0 %v843_v14  ;;  %792 = vmatpush3.bf16.msra.mxu1 %v842_v12 }
  0x3a   : > { %793 = vmatprep.subr.bf16.mxu1 %v846_v16  ;;  %v250_v45 = vmax.f32 %v246_v40, 0.0  ;;  %v251_v46 = vmax.f32 %v247_v41, 0.0  ;;  %v252_v49 = vmax.f32 %v248_v42, 0.0  ;;  %v253_v50 = vmax.f32 %v249_v43, 0.0 }
  0x3c   : > { %425 = vmatpush1.bf16.msra.mxu0 %v845_v17  ;;  %v254_v48 = vpack.c.bf16 %v251_v46, %v250_v45  ;;  %v255_v51 = vpack.c.bf16 %v253_v50, %v252_v49 }
  0x3d   : > { %426 = vmatprep.subr.bf16.mxu0 %v847_v18  ;;  %794 = vmatpush3.bf16.msra.mxu1 %v846_v16 }
  0x3e   : > { %795 = vmatprep.subr.bf16.mxu1 %v850_v21  ;;  %801 = vmatprep.mubr.bf16.mxu1 %v254_v48 }
  0x40   : > { %427 = vmatpush1.bf16.msra.mxu0 %v849_v23 }
  0x41   : > { %428 = vmatprep.subr.bf16.mxu0 %v851_v28  ;;  %796 = vmatpush3.bf16.msra.mxu1 %v850_v21 }
  0x42   : > { %797 = vmatprep.subr.bf16.mxu1 %v854_v33 }
  0x44   : > { %429 = vmatpush1.bf16.msra.mxu0 %v853_v38 }
  0x45   : > { %430 = vmatprep.subr.bf16.mxu0 %v855_v39  ;;  %798 = vmatpush3.bf16.msra.mxu1 %v854_v33 }
  0x46   : > { %799 = vmatprep.subr.bf16.mxu1 %v858_v44 }
  0x48   : > { %431 = vmatpush1.bf16.msra.mxu0 %v857_v47 }
  0x49   : > { %800 = vmatpush3.bf16.msra.mxu1 %v858_v44 }
  0x4b   : > { %449 = vmatmul.mubr.bf16.vlgmr.msra.gmra.mrb[0].mxu0 %v254_v48 }
  0x4c   : > { %458 = vmatprep.mubr.bf16.mxu0 %v902_v0  ;;  %802 = vmatmul.mubr.bf16.vlgmr.msra.gmra.mrb[0].mxu1 %v255_v51 }
  0x53   : > { %459 = vmatmul.mubr.bf16.gmra.mrb[4].mxu0 %v255_v51 }
 0x11e   : > { %v450_v52 = vpop.f32.mrb[0].mxu0 }
 0x11f   : > { %v452_v53 = vpop.f32.mrb[1].mxu0  ;;  %v803_v54 = vpop.f32.mrb[0].mxu1  ;;  %v523_v56 = vrot.slane %v450_v52, 7 }
 0x120   : > { %v454_v55 = vpop.f32.mrb[2].mxu0  ;;  %v503_v58 = vpop.f32.mrb[1].mxu1  ;;  %v546_v60 = vrot.slane %v803_v54, 1 }
 0x121   : > { %v524_v57 = vrot.slane %v454_v55, 7  ;;  %v456_v59 = vpop.f32.mrb[3].mxu0  ;;  %v544_v61 = vrot.slane %v503_v58, 1  ;;  %v804_v62 = vpop.f32.mrb[2].mxu1 }
 0x122   : > { %v547_v1 = vrot.slane %v804_v62, 1  ;;  %v506_v0 = vpop.f32.mrb[3].mxu1 }
 0x123   : > { %v530_v63 = vsel %vm527_vm0, %v523_v56, %v524_v57  ;;  %v545_v3 = vrot.slane %v506_v0, 1 }
 0x124   : > { %v541_v2 = vadd.f32 %v530_v63, %v456_v59  ;;  %v549_v5 = vsel %vm548_vm1, %v546_v60, %v547_v1  ;;  %v552_v6 = vsel %vm548_vm1, %v547_v1, %v544_v61 }
 0x125   : > { %v550_v7 = vsel %vm548_vm1, %v545_v3, %v546_v60  ;;  %v551_v8 = vsel %vm548_vm1, %v544_v61, %v545_v3  ;;  %v560_v21 = vsel %vm556_vm2, 0.0, %v552_v6 }
 0x126   : > { %v460_v9 = vpop.f32.mrb[4].mxu0  ;;  %v562_v10 = vadd.f32 %v550_v7, %v541_v2 }
 0x127   : > { %v525_v11 = vrot.slane %v460_v9, 7  ;;  %v462_v12 = vpop.f32.mrb[5].mxu0 }
 0x128   : > { %v464_v13 = vpop.f32.mrb[6].mxu0  ;;  %v576_v29 = vmul.f32 %v562_v10, %v562_v10 }
 0x129   : > { %v529_v14 = vsel %vm527_vm0, %v524_v57, %v525_v11  ;;  %v526_v16 = vrot.slane %v464_v13, 7  ;;  %v466_v17 = vpop.f32.mrb[7].mxu0 }
 0x12a   : > { %v542_v18 = vadd.f32 %v529_v14, %v462_v12 }
 0x12b   : > { %v531_v19 = vsel %vm527_vm0, %v526_v16, %v523_v56  ;;  %v528_v20 = vsel %vm527_vm0, %v525_v11, %v526_v16 }
 0x12c   : > { %v563_v22 = vadd.f32 %v549_v5, %v542_v18  ;;  %v536_v23 = vsel %vm532_vm3, 0.0, %v531_v19  ;;  %v543_v24 = vadd.f32 %v528_v20, %v466_v17 }
 0x12d   : > { %v540_v25 = vadd.f32 %v536_v23, %v452_v53 }
 0x12e   : > { %v564_v26 = vadd.f32 %v560_v21, %v543_v24  ;;  %v577_v15 = vmul.f32 %v563_v22, %v563_v22 }
 0x12f   : > { %v561_v27 = vadd.f32 %v551_v8, %v540_v25 }
 0x130   : > { %v771_v28 = vpack.c.bf16 %v564_v26, %v563_v22  ;;  %v578_v36 = vmul.f32 %v564_v26, %v564_v26 }
 0x131   : > { %v575_v30 = vmul.f32 %v561_v27, %v561_v27  ;;  %v766_v31 = vpack.c.bf16 %v562_v10, %v561_v27  ;;  %v565_v32 = vadd.f32 %v562_v10, %v561_v27 }
 0x132   : > { %774 = vst [vmem:[%s219_s17 + $0x8] sm:$0xff] %v771_v28  }
 0x133   : > { %v566_v33 = vadd.f32 %v565_v32, %v563_v22  ;;  %v579_v34 = vadd.f32 %v576_v29, %v575_v30  ;;  %767 = vst [vmem:[%s219_s17] sm:$0xff] %v766_v31  }
 0x135   : > { %v567_v35 = vadd.f32 %v566_v33, %v564_v26  ;;  %v580_v37 = vadd.f32 %v579_v34, %v577_v15 }
 0x137   : > { %v568_v38 = vrot.slane %v567_v35, 4  ;;  %v581_v39 = vadd.f32 %v580_v37, %v578_v36 }
 0x139   : > { %v569_v40 = vadd.f32 %v568_v38, %v567_v35  ;;  %v582_v41 = vrot.slane %v581_v39, 4 }
 0x13b   : > { %v570_v42 = vrot.slane %v569_v40, 2  ;;  %v583_v43 = vadd.f32 %v582_v41, %v581_v39 }
 0x13d   : > { %v571_v44 = vadd.f32 %v570_v42, %v569_v40  ;;  %v584_v45 = vrot.slane %v583_v43, 2 }
 0x13f   : > { %v572_v46 = vrot.slane %v571_v44, 1  ;;  %v585_v47 = vadd.f32 %v584_v45, %v583_v43 }
 0x141   : > { %v573_v48 = vadd.f32 %v572_v46, %v571_v44  ;;  %v586_v49 = vrot.slane %v585_v47, 1 }
 0x143   : > { %574 = vst [vmem:[%s223_s21] sm:$0x1] %v573_v48  ;;  %v587_v50 = vadd.f32 %v586_v49, %v585_v47 }
 0x145   : > { %588 = vst [vmem:[%s223_s21 + $0x1] sm:$0x1] %v587_v50 }
 0x146 PF: > { %s16_s15 = sadd.s32 1, %s897_s15  }
 0x147   : > { %p13_p3 = scmp.ge.s32.totalorder %s16_s15, 4  }
 0x149   :  { %15 = sbr.rel (!%p13_p3) target bundleno = 1 (0x1), region = 79 }
 0x150   :  { %644 = vsyncpa [#allocation3], 1 }
 0x151   :  { %646 = vsyncpa [#allocation3 + $0x1], 1 }

// kernel: sbfusion_forward.11
= control target key start
LH: loop header
LB: loop body
LE: loop exit
PB: predicated region body
PF: predicated region fallthrough
CT: control target
= control target key end

     0   :  { %10 = vsyncpa [#allocation3], 0  ;;  %s1134_s15 = smov 0   ;;  %s1218_s0 = inlined_call_operand.vmem [shape: bf16[2,16,256], index: 0, kind: input, shape index: {}]   ;;  %s1219_s1 = inlined_call_operand.vmem [shape: f32[2,128], index: 1, kind: input, shape index: {}]   ;;  %s1220_s2 = inlined_call_operand.hbm [shape: bf16[128,768], index: 2, kind: input, shape index: {}]   ;;  %s1221_s3 = inlined_call_operand.vmem [shape: bf16[2,16,256], index: 3, kind: output, shape index: {0}]   ;;  %s1222_s4 = inlined_call_operand.vmem [shape: f32[2,2,256], index: 4, kind: output, shape index: {1}]  }
   0x1 LB: > { %s1140_s16 = sadd.s32 4294967295, %s1102_s15   ;;  %p900_p0 = scmp.ge.s32.totalorder %s1102_s15, 1  ;;  %s1102_s15 = sphi %s1134_s15, %s16_s15  }
   0x2   : > { %p141_p1 = scmp.lt.s32.totalorder %s1102_s15, 3  ;;  %s1104_s17 = smov [#allocation2]  }
   0x3   : > { %s156_s18 = sshll.u32 %s1104_s17, 4  ;;  %p1223_p3 = scmp.eq.s32.totalorder %s1140_s16, 0  ;;  %s157_s18 = int_to_ptr.vmem [resolvable:$true] %s156_s18 }
   0x4   : > { %p1144_p2 = pnand %p900_p0, %p141_p1  ;;  %s1064_s23 = scalar_lea.hbm %s1220_s2, 6144 }
   0x5   : > { %p1065_p6 = scmp.ne.s32.totalorder %s1220_s2, %s1064_s23  ;;  %p1071_p10 = scmp.lt.u32.totalorder %s1064_s23, %s1220_s2 }
   0x6   : > { %s1225_s19 = scalar_select %p1144_p2, 1, 0 }
   0x7   : > { %p973_p4 = pneg %p1144_p2 }
   0x9   : > { %p1153_p5 = pnand %p1223_p3, %p973_p4 }
   0xb   : > { %p1066_p7 = pneg %p1153_p5 }
   0xd   : > { %p1067_p8 = pnand %p1066_p7, %p1065_p6 }
   0xf   : > { %p1068_p9 = pneg %p1067_p8 }
  0x11   : > { %p1073_p11 = pnand %p1071_p10, %p1068_p9 }
  0x13   : > { %1076 = shalt.err (!%p1073_p11)
}
  0x14   : > { %s1077_s28 = scalar_lea.vmem %s157_s18, 6144  ;;  %p1085_p1 = scmp.lt.s32.totalorder %s157_s18, %s157_s18 }
  0x15   : > { %p1078_p12 = scmp.ne.s32.totalorder %s157_s18, %s1077_s28  ;;  %p1086_p4 = scmp.lt.s32.totalorder %s1077_s28, %s1077_s28 }
  0x17   : > { %p1080_p13 = pnand %p1078_p12, %p1066_p7  ;;  %p1087_p3 = por %p1086_p4, %p1085_p1 }
  0x19   : > { %p1081_p0 = pneg %p1080_p13 }
  0x1b   : > { %p1088_p2 = pnand %p1087_p3, %p1081_p0 }
  0x1d   : > { %1091 = shalt.err (!%p1088_p2)
}
  0x1e   : > { %s1105_s29 = smov 384   ;;  %s1106_s30 = smov 24  }
  0x1f   : > { %976 = dma.hbm_to_vmem [thread:$0]  (!%p1153_p5), %s1220_s2, 6144, %s157_s18, [#allocation3], %s1105_s29, %s1105_s29, %s1106_s30  }
  0x20   : > { %p1227_p6 = scmp.ne.s32.totalorder %s1225_s19, 0 }
  0x21   : > { %p1228_p8 = scmp.eq.s32.totalorder (!%p1227_p6), %s1140_s16, 0 }
  0x22   : > { %180 = sbr.rel (%p1227_p6) target bundleno = 352 (0x160), region = 32 }
  0x29   : > { %1097 = dma.done.wait (%p1228_p8), [#allocation3], 6144   ;;  %p1229_p7 = pmov %p1228_p8 }
  0x2a   : > { %v1107_v0 = vmov 0   ;;  %v992_v1 = vld [vmem:[#allocation2 + $0x4] ss:$24 sps:$4 sm:$0xff]   ;;  %v994_v2 = vld [vmem:[#allocation2] ss:$24 sps:$4 sm:$0xff]   ;;  %p211_p2 = scmp.lt.s32.totalorder %s1140_s16, 1  ;;  %v236_v16 = vlaneseq }
  0x2b   : > { %1099 = vsyncadd (%p1229_p7), [#allocation3], 4294961152  ;;  %571 = vmatprep.mubr.bf16.mxu0 %v1107_v0  ;;  %614 = vmatprep.mubr.bf16.mxu1 %v1107_v0  ;;  %v995_v3 = vld [vmem:[#allocation2 + $0xc] ss:$24 sps:$4 sm:$0xff]   ;;  %v999_v5 = vld [vmem:[#allocation2 + $0x8] ss:$24 sps:$4 sm:$0xff]  }
  0x2c   : > { %539 = vmatprep.subr.bf16.mxu0 %v992_v1  ;;  %v997_v4 = vld [vmem:[#allocation2 + $0x34] ss:$24 sps:$4 sm:$0xff]   ;;  %v1000_v6 = vld [vmem:[#allocation2 + $0x30] ss:$24 sps:$4 sm:$0xff]   ;;  %582 = vmatprep.subr.bf16.mxu1 %v995_v3  ;;  %v1003_v8 = vld [vmem:[#allocation2 + $0x64] ss:$24 sps:$4 sm:$0xff]  }
  0x2d   : > { %540 = vmatpush1.bf16.msra.mxu0 %v994_v2  ;;  %v1001_v7 = vld [vmem:[#allocation2 + $0x3c] ss:$24 sps:$4 sm:$0xff]   ;;  %583 = vmatpush1.bf16.msra.mxu1 %v999_v5  ;;  %v1005_v9 = vld [vmem:[#allocation2 + $0x38] ss:$24 sps:$4 sm:$0xff]   ;;  %v1007_v11 = vld [vmem:[#allocation2 + $0x6c] ss:$24 sps:$4 sm:$0xff]  }
  0x2e   : > { %541 = vmatprep.subr.bf16.mxu0 %v997_v4  ;;  %584 = vmatprep.subr.bf16.mxu1 %v1001_v7  ;;  %v1006_v10 = vld [vmem:[#allocation2 + $0x60] ss:$24 sps:$4 sm:$0xff]   ;;  %v1009_v12 = vld [vmem:[#allocation2 + $0x94] ss:$24 sps:$4 sm:$0xff]   ;;  %v1012_v15 = vld [vmem:[#allocation2 + $0x90] ss:$24 sps:$4 sm:$0xff]  }
  0x2f   : > { %v1011_v13 = vld [vmem:[#allocation2 + $0x68] ss:$24 sps:$4 sm:$0xff]   ;;  %v1013_v14 = vld [vmem:[#allocation2 + $0x9c] ss:$24 sps:$4 sm:$0xff]   ;;  %s1231_s16 = smov (!%p211_p2, %s1140_s16), 1  ;;  %v1187_v21 = vshrl.u32 %v236_v16, 7 }
  0x30   : > { %v1015_v17 = vld [vmem:[#allocation2 + $0xc4] ss:$24 sps:$4 sm:$0xff]   ;;  %v1017_v18 = vld [vmem:[#allocation2 + $0x98] ss:$24 sps:$4 sm:$0xff]   ;;  %s964_s7 = sshll.u32 %s1231_s16, 4  ;;  %s966_s18 = sshll.u32 %s1231_s16, 2 }
  0x31   : > { %542 = vmatpush1.bf16.msra.mxu0 %v1000_v6  ;;  %585 = vmatpush1.bf16.msra.mxu1 %v1005_v9  ;;  %v1019_v19 = vld [vmem:[#allocation2 + $0xcc] ss:$24 sps:$4 sm:$0xff]   ;;  %v1018_v20 = vld [vmem:[#allocation2 + $0xc0] ss:$24 sps:$4 sm:$0xff]   ;;  %v1025_v24 = vld [vmem:[#allocation2 + $0xfc] ss:$24 sps:$4 sm:$0xff]   ;;  %s215_s10 = scalar_lea.vmem %s1218_s0, %s964_s7  ;;  %s220_s17 = scalar_lea.vmem %s1221_s3, %s964_s7 }
  0x32   : > { %543 = vmatprep.subr.bf16.mxu0 %v1003_v8  ;;  %586 = vmatprep.subr.bf16.mxu1 %v1007_v11  ;;  %v1021_v22 = vld [vmem:[#allocation2 + $0xf4] ss:$24 sps:$4 sm:$0xff]   ;;  %v1023_v23 = vld [vmem:[#allocation2 + $0xc8] ss:$24 sps:$4 sm:$0xff]   ;;  %v1027_v26 = vld [vmem:[#allocation2 + $0x124] ss:$24 sps:$4 sm:$0xff]   ;;  %s225_s21 = scalar_lea.vmem %s1222_s4, %s966_s18 }
  0x33   : > { %v1024_v25 = vld [vmem:[#allocation2 + $0xf0] ss:$24 sps:$4 sm:$0xff]   ;;  %v238_v27 = vsub.s32 0, %v1187_v21  ;;  %v244_v29 = vsub.s32 1, %v1187_v21  ;;  %v227_v30 = vld [vmem:[%s215_s10] sm:$0xff]  ;;  %vm675_vm0 = vcmp.lt.s32.totalorder %v1187_v21, 1 }
  0x34   : > { %v1029_v28 = vld [vmem:[#allocation2 + $0xf8] ss:$24 sps:$4 sm:$0xff]   ;;  %v228_v31 = vld [vmem:[%s215_s10 + $0x8] sm:$0xff]  ;;  %v235_v32 = vld [vmem:[%s1219_s1] sm:$0x3]  ;;  %v229_v34 = vunpack.c.l.bf16 %v227_v30  ;;  %v230_v35 = vunpack.c.h.bf16 %v227_v30  ;;  %vm680_vm1 = vcmp.eq.s32.totalorder %v1187_v21, 0 }
  0x35   : > { %544 = vmatpush1.bf16.msra.mxu0 %v1006_v10  ;;  %587 = vmatpush1.bf16.msra.mxu1 %v1011_v13  ;;  %v1031_v33 = vld [vmem:[#allocation2 + $0x12c] ss:$24 sps:$4 sm:$0xff]   ;;  %v231_v36 = vunpack.c.l.bf16 %v228_v31  ;;  %v232_v37 = vunpack.c.h.bf16 %v228_v31  ;;  %v1030_v38 = vld [vmem:[#allocation2 + $0x120] ss:$24 sps:$4 sm:$0xff]   ;;  %v239_v39 = vrot.slane %v235_v32, %v238_v27  ;;  %v245_v43 = vrot.slane %v235_v32, %v244_v29  ;;  %v1037_v45 = vld [vmem:[#allocation2 + $0x15c] ss:$24 sps:$4 sm:$0xff]  }
  0x36   : > { %545 = vmatprep.subr.bf16.mxu0 %v1009_v12  ;;  %588 = vmatprep.subr.bf16.mxu1 %v1013_v14  ;;  %v1033_v40 = vld [vmem:[#allocation2 + $0x154] ss:$24 sps:$4 sm:$0xff]   ;;  %v233_v41 = vmax.f32 %v229_v34, %v230_v35  ;;  %v1035_v44 = vld [vmem:[#allocation2 + $0x128] ss:$24 sps:$4 sm:$0xff]   ;;  %v1039_v52 = vld [vmem:[#allocation2 + $0x158] ss:$24 sps:$4 sm:$0xff]  }
  0x37   : > { %v234_v42 = vmax.f32 %v231_v36, %v232_v37  ;;  %v1036_v48 = vld [vmem:[#allocation2 + $0x150] ss:$24 sps:$4 sm:$0xff]   ;;  %v1042_v51 = vld [vmem:[#allocation2 + $0x14] ss:$24 sps:$4 sm:$0xff]   ;;  %v1045_v57 = vld [vmem:[#allocation2 + $0x44] ss:$24 sps:$4 sm:$0xff]  }
  0x38   : > { %v240_v46 = vmul.f32 %v239_v39, %v233_v41  ;;  %v1040_v55 = vld [vmem:[#allocation2 + $0x10] ss:$24 sps:$4 sm:$0xff]   ;;  %v1043_v58 = vld [vmem:[#allocation2 + $0x40] ss:$24 sps:$4 sm:$0xff]   ;;  %v1048_v59 = vld [vmem:[#allocation2 + $0x74] ss:$24 sps:$4 sm:$0xff]  }
  0x39   : > { %546 = vmatpush1.bf16.msra.mxu0 %v1012_v15  ;;  %589 = vmatpush1.bf16.msra.mxu1 %v1017_v18  ;;  %v241_v47 = vmul.f32 %v239_v39, %v234_v42  ;;  %v1046_v60 = vld [vmem:[#allocation2 + $0x70] ss:$24 sps:$4 sm:$0xff]   ;;  %v1051_v61 = vld [vmem:[#allocation2 + $0xa4] ss:$24 sps:$4 sm:$0xff]   ;;  %v1049_v62 = vld [vmem:[#allocation2 + $0xa0] ss:$24 sps:$4 sm:$0xff]  }
  0x3a   : > { %547 = vmatprep.subr.bf16.mxu0 %v1015_v17  ;;  %590 = vmatprep.subr.bf16.mxu1 %v1019_v19  ;;  %v246_v49 = vadd.f32 %v245_v43, %v240_v46  ;;  %v1054_v63 = vld [vmem:[#allocation2 + $0xd4] ss:$24 sps:$4 sm:$0xff]   ;;  %v1052_v1 = vld [vmem:[#allocation2 + $0xd0] ss:$24 sps:$4 sm:$0xff]   ;;  %v1057_v2 = vld [vmem:[#allocation2 + $0x104] ss:$24 sps:$4 sm:$0xff]  }
  0x3b   : > { %v247_v50 = vadd.f32 %v245_v43, %v241_v47  ;;  %v1055_v3 = vld [vmem:[#allocation2 + $0x100] ss:$24 sps:$4 sm:$0xff]   ;;  %v1060_v4 = vld [vmem:[#allocation2 + $0x134] ss:$24 sps:$4 sm:$0xff]   ;;  %v1063_v5 = vld [vmem:[#allocation2 + $0x164] ss:$24 sps:$4 sm:$0xff]  }
  0x3c   : > { %v248_v53 = vmax.f32 %v246_v49, 0.0  ;;  %v1061_v6 = vld [vmem:[#allocation2 + $0x160] ss:$24 sps:$4 sm:$0xff]   ;;  %v670_v31 = vadd.s32 8, %v1187_v21  ;;  %vm694_vm2 = vcmp.lt.s32.totalorder %v1187_v21, 7  ;;  %vm743_vm4 = vcmp.lt.s32.totalorder %v236_v16, 256 }
  0x3d   : > { %548 = vmatpush1.bf16.msra.mxu0 %v1018_v20  ;;  %591 = vmatpush1.bf16.msra.mxu1 %v1023_v23  ;;  %v249_v54 = vmax.f32 %v247_v50, 0.0 }
  0x3e   : > { %549 = vmatprep.subr.bf16.mxu0 %v1021_v22  ;;  %592 = vmatprep.subr.bf16.mxu1 %v1025_v24  ;;  %vm700_vm3 = vcmp.eq.s32.totalorder %v670_v31, 15 }
  0x3f   : > { %v250_v56 = vpack.c.bf16 %v249_v54, %v248_v53 }
  0x41   : > { %550 = vmatpush1.bf16.msra.mxu0 %v1024_v25  ;;  %593 = vmatpush1.bf16.msra.mxu1 %v1029_v28 }
  0x42   : > { %551 = vmatprep.subr.bf16.mxu0 %v1027_v26  ;;  %594 = vmatprep.subr.bf16.mxu1 %v1031_v33 }
  0x45   : > { %552 = vmatpush1.bf16.msra.mxu0 %v1030_v38  ;;  %595 = vmatpush1.bf16.msra.mxu1 %v1035_v44 }
  0x46   : > { %553 = vmatprep.subr.bf16.mxu0 %v1033_v40  ;;  %596 = vmatprep.subr.bf16.mxu1 %v1037_v45 }
  0x49   : > { %554 = vmatpush1.bf16.msra.mxu0 %v1036_v48  ;;  %597 = vmatpush1.bf16.msra.mxu1 %v1039_v52 }
  0x4a   : > { %625 = vmatprep.subr.bf16.mxu0 %v1042_v51 }
  0x4c   : > { %572 = vmatmul.mubr.bf16.vlgmr.msra.gmra.mrb[0].mxu0 %v250_v56  ;;  %615 = vmatmul.mubr.bf16.vlgmr.msra.gmra.mrb[0].mxu1 %v250_v56 }
  0x4d   : > { %626 = vmatpush1.bf16.msra.mxu0 %v1040_v55  ;;  %657 = vmatprep.mubr.bf16.mxu0 %v1107_v0  ;;  %v1058_v0 = vld [vmem:[#allocation2 + $0x130] ss:$24 sps:$4 sm:$0xff]  }
  0x4e   : > { %627 = vmatprep.subr.bf16.mxu0 %v1045_v57 }
  0x51   : > { %628 = vmatpush1.bf16.msra.mxu0 %v1043_v58 }
  0x52   : > { %629 = vmatprep.subr.bf16.mxu0 %v1048_v59 }
  0x55   : > { %630 = vmatpush1.bf16.msra.mxu0 %v1046_v60 }
  0x56   : > { %631 = vmatprep.subr.bf16.mxu0 %v1051_v61 }
  0x59   : > { %632 = vmatpush1.bf16.msra.mxu0 %v1049_v62 }
  0x5a   : > { %633 = vmatprep.subr.bf16.mxu0 %v1054_v63 }
  0x5d   : > { %634 = vmatpush1.bf16.msra.mxu0 %v1052_v1 }
  0x5e   : > { %635 = vmatprep.subr.bf16.mxu0 %v1057_v2  ;;  %v1108_v2 = vmov 1966171168  }
  0x61   : > { %636 = vmatpush1.bf16.msra.mxu0 %v1055_v3  ;;  %v727_v3 = vunpack.c.l.s4 %v1108_v2 }
  0x62   : > { %637 = vmatprep.subr.bf16.mxu0 %v1060_v4 }
  0x65   : > { %638 = vmatpush1.bf16.msra.mxu0 %v1058_v0 }
  0x66   : > { %639 = vmatprep.subr.bf16.mxu0 %v1063_v5 }
  0x69   : > { %640 = vmatpush1.bf16.msra.mxu0 %v1061_v6 }
  0x6c   : > { %658 = vmatmul.mubr.bf16.vlgmr.msra.gmra.mrb[4].mxu0 %v250_v56 }
 0x11f   : > { %v573_v7 = vpop.f32.mrb[0].mxu0  ;;  %v616_v11 = vpop.f32.mrb[0].mxu1 }
 0x120   : > { %v671_v8 = vrot.slane %v573_v7, 7  ;;  %v575_v9 = vpop.f32.mrb[1].mxu0  ;;  %v618_v14 = vpop.f32.mrb[1].mxu1 }
 0x121   : > { %v577_v10 = vpop.f32.mrb[2].mxu0  ;;  %v672_v15 = vrot.slane %v575_v9, 7  ;;  %v620_v18 = vpop.f32.mrb[2].mxu1 }
 0x122   : > { %v673_v12 = vrot.slane %v577_v10, 7  ;;  %v579_v13 = vpop.f32.mrb[3].mxu0  ;;  %v622_v22 = vpop.f32.mrb[3].mxu1 }
 0x123   : > { %v674_v17 = vrot.slane %v579_v13, 7 }
 0x124   : > { %v678_v19 = vsel %vm675_vm0, %v673_v12, %v671_v8  ;;  %v676_v20 = vsel %vm675_vm0, %v671_v8, %v673_v12 }
 0x125   : > { %v682_v23 = vsel %vm680_vm1, 0.0, %v678_v19  ;;  %v679_v24 = vsel %vm675_vm0, %v674_v17, %v672_v15  ;;  %v688_v25 = vadd.f32 %v676_v20, %v620_v18  ;;  %v677_v26 = vsel %vm675_vm0, %v672_v15, %v674_v17 }
 0x126   : > { %v686_v27 = vadd.f32 %v682_v23, %v616_v11  ;;  %v683_v28 = vsel %vm680_vm1, 0.0, %v679_v24  ;;  %v689_v29 = vadd.f32 %v677_v26, %v622_v22  ;;  %v728_v11 = vunpack.c.0.s8 %v727_v3 }
 0x127   : > { %v687_v30 = vadd.f32 %v683_v28, %v618_v14 }
 0x128   : > { %v731_v22 = vsub.s32 %v728_v11, %v1187_v21 }
 0x13f   : > { %v659_v32 = vpop.f32.mrb[4].mxu0 }
 0x140   : > { %v661_v33 = vpop.f32.mrb[5].mxu0  ;;  %v690_v35 = vrot.slane %v659_v32, 1 }
 0x141   : > { %v663_v34 = vpop.f32.mrb[6].mxu0  ;;  %v691_v38 = vrot.slane %v661_v33, 1 }
 0x142   : > { %v692_v36 = vrot.slane %v663_v34, 1  ;;  %v665_v37 = vpop.f32.mrb[7].mxu0 }
 0x143   : > { %v693_v39 = vrot.slane %v665_v37, 1 }
 0x144   : > { %v695_v40 = vsel %vm694_vm2, %v690_v35, %v692_v36  ;;  %v697_v41 = vsel %vm694_vm2, %v692_v36, %v690_v35 }
 0x145   : > { %v703_v42 = vsel %vm700_vm3, 0.0, %v697_v41  ;;  %v705_v43 = vadd.f32 %v695_v40, %v686_v27  ;;  %v696_v44 = vsel %vm694_vm2, %v691_v38, %v693_v39  ;;  %v698_v45 = vsel %vm694_vm2, %v693_v39, %v691_v38 }
 0x146   : > { %v707_v46 = vadd.f32 %v703_v42, %v688_v25  ;;  %v704_v47 = vsel %vm700_vm3, 0.0, %v698_v45  ;;  %v706_v48 = vadd.f32 %v696_v44, %v687_v30 }
 0x147   : > { %v746_v49 = vmul.f32 %v705_v43, %v705_v43  ;;  %v708_v50 = vadd.f32 %v704_v47, %v689_v29 }
 0x148   : > { %v709_v51 = vadd.f32 %v707_v46, %v705_v43  ;;  %v748_v52 = vmul.f32 %v707_v46, %v707_v46  ;;  %v747_v53 = vmul.f32 %v706_v48, %v706_v48  ;;  %v967_v54 = vpack.c.bf16 %v706_v48, %v705_v43 }
 0x149   : > { %v716_v55 = vadd.f32 %v708_v50, %v706_v48  ;;  %v749_v56 = vmul.f32 %v708_v50, %v708_v50  ;;  %v968_v57 = vpack.c.bf16 %v708_v50, %v707_v46 }
 0x14a   : > { %v710_v58 = vrot.slane %v709_v51, 4  ;;  %v750_v59 = vadd.f32 %v748_v52, %v746_v49  ;;  %796 = vst [vmem:[%s220_s17] sm:$0xff] %v967_v54 }
 0x14b   : > { %v717_v60 = vrot.slane %v716_v55, 4  ;;  %v757_v61 = vadd.f32 %v749_v56, %v747_v53  ;;  %797 = vst [vmem:[%s220_s17 + $0x8] sm:$0xff] %v968_v57 }
 0x14c   : > { %v711_v62 = vadd.f32 %v710_v58, %v709_v51  ;;  %v751_v63 = vrot.slane %v750_v59, 4 }
 0x14d   : > { %v718_v1 = vadd.f32 %v717_v60, %v716_v55  ;;  %v758_v4 = vrot.slane %v757_v61, 4 }
 0x14e   : > { %v712_v0 = vrot.slane %v711_v62, 2  ;;  %v752_v5 = vadd.f32 %v751_v63, %v750_v59 }
 0x14f   : > { %v719_v6 = vrot.slane %v718_v1, 2  ;;  %v759_v7 = vadd.f32 %v758_v4, %v757_v61 }
 0x150   : > { %v713_v8 = vadd.f32 %v712_v0, %v711_v62  ;;  %v753_v9 = vrot.slane %v752_v5, 2 }
 0x151   : > { %v720_v10 = vadd.f32 %v719_v6, %v718_v1  ;;  %v760_v12 = vrot.slane %v759_v7, 2 }
 0x152   : > { %v714_v13 = vrot.slane %v713_v8, 1  ;;  %v754_v14 = vadd.f32 %v753_v9, %v752_v5 }
 0x153   : > { %v721_v15 = vrot.slane %v720_v10, 1  ;;  %v761_v17 = vadd.f32 %v760_v12, %v759_v7 }
 0x154   : > { %v715_v18 = vadd.f32 %v714_v13, %v713_v8  ;;  %v755_v19 = vrot.slane %v754_v14, 1 }
 0x155   : > { %v722_v20 = vadd.f32 %v721_v15, %v720_v10  ;;  %v762_v23 = vrot.slane %v761_v17, 1 }
 0x156   : > { %v756_v24 = vadd.f32 %v755_v19, %v754_v14 }
 0x157   : > { %v725_v25 = vcombine.low %v715_v18, %v722_v20  ;;  %v763_v26 = vadd.f32 %v762_v23, %v761_v17 }
 0x159   : > { %v732_v27 = vrot.slane %v725_v25, %v731_v22  ;;  %v766_v28 = vcombine.low %v756_v24, %v763_v26 }
 0x15b   : > { %v739_v29 = vrot.slane %v732_v27, %v731_v22  ;;  %v773_v30 = vrot.slane %v766_v28, %v731_v22 }
 0x15d   : > { %745 = vst.msk [vmem:[%s225_s21] ss:$2 sm:$0x3] %vm743_vm4, %v739_v29  ;;  %v780_v31 = vrot.slane %v773_v30, %v731_v22 }
 0x15f   : > { %959 = vst.msk [vmem:[%s225_s21 + $0x1] ss:$2 sm:$0x3] %vm743_vm4, %v780_v31 }
 0x160 PF: > { %s16_s15 = sadd.s32 1, %s1102_s15  }
 0x161   : > { %p13_p3 = scmp.ge.s32.totalorder %s16_s15, 4  }
 0x163   :  { %15 = sbr.rel (!%p13_p3) target bundleno = 1 (0x1), region = 80 }
 0x16a   :  { %835 = vsyncpa [#allocation3], 1 }
 0x16b   :  { %837 = vsyncpa [#allocation3 + $0x1], 1 }

// kernel: sbfusion_forward.13
= control target key start
LH: loop header
LB: loop body
LE: loop exit
PB: predicated region body
PF: predicated region fallthrough
CT: control target
= control target key end

     0   :  { %16 = vsyncpa [#allocation3], 0  ;;  %s1385_s0 = inlined_call_operand.vmem [shape: f32[2,256], index: 0, kind: input, shape index: {}]   ;;  %s1386_s1 = inlined_call_operand.vmem [shape: f32[2,256], index: 1, kind: input, shape index: {}]   ;;  %s1387_s2 = inlined_call_operand.vmem [shape: f32[2,256], index: 2, kind: input, shape index: {}]   ;;  %s1388_s3 = inlined_call_operand.vmem [shape: f32[256,256], index: 3, kind: input, shape index: {}]   ;;  %s1389_s4 = inlined_call_operand.vmem [shape: f32[1,256], index: 4, kind: input, shape index: {}]   ;;  %s1390_s5 = inlined_call_operand.vmem [shape: f32[256,10], index: 5, kind: input, shape index: {}]   ;;  %s1391_s6 = inlined_call_operand.vmem [shape: f32[256,10], index: 6, kind: input, shape index: {}]   ;;  %s1392_s7 = inlined_call_operand.vmem [shape: f32[1,10], index: 7, kind: input, shape index: {}]   ;;  %s1393_s8 = inlined_call_operand.hbm [shape: f32[2,10], index: 8, kind: output, shape index: {0}]   ;;  %s1394_s9 = inlined_call_operand.hbm [shape: f32[2,256], index: 9, kind: output, shape index: {1}]   ;;  %s1395_s10 = inlined_call_operand.hbm [shape: f32[2,256], index: 10, kind: output, shape index: {2}]  }
   0x1   :  { %v100_v0 = vld [vmem:[%s1388_s3 + $0x8] sm:$0xff]  ;;  %v102_v1 = vld [vmem:[%s1388_s3 + $0x18] sm:$0xff]  ;;  %v99_v2 = vld [vmem:[%s1388_s3] sm:$0xff] }
   0x2   :  { %v671_v3 = vpack.c.bf16 %v102_v1, %v100_v0  ;;  %v101_v4 = vld [vmem:[%s1388_s3 + $0x10] sm:$0xff]  ;;  %v104_v5 = vld [vmem:[%s1388_s3 + $0x28] sm:$0xff]  ;;  %v106_v6 = vld [vmem:[%s1388_s3 + $0x38] sm:$0xff] }
   0x3   :  { %v673_v7 = vpack.c.bf16 %v101_v4, %v99_v2  ;;  %v675_v8 = vpack.c.bf16 %v106_v6, %v104_v5  ;;  %v103_v9 = vld [vmem:[%s1388_s3 + $0x20] sm:$0xff]  ;;  %v105_v10 = vld [vmem:[%s1388_s3 + $0x30] sm:$0xff]  ;;  %v108_v11 = vld [vmem:[%s1388_s3 + $0x48] sm:$0xff] }
   0x4   :  { %672 = vmatprep.subr.bf16.mxu0 %v671_v3  ;;  %v110_v12 = vld [vmem:[%s1388_s3 + $0x58] sm:$0xff]  ;;  %v677_v13 = vpack.c.bf16 %v105_v10, %v103_v9  ;;  %v107_v15 = vld [vmem:[%s1388_s3 + $0x40] sm:$0xff]  ;;  %v109_v16 = vld [vmem:[%s1388_s3 + $0x50] sm:$0xff] }
   0x5   :  { %674 = vmatpush1.bf16.msra.mxu0 %v673_v7  ;;  %v679_v14 = vpack.c.bf16 %v110_v12, %v108_v11  ;;  %v112_v17 = vld [vmem:[%s1388_s3 + $0x68] sm:$0xff]  ;;  %v114_v18 = vld [vmem:[%s1388_s3 + $0x78] sm:$0xff]  ;;  %v681_v19 = vpack.c.bf16 %v109_v16, %v107_v15  ;;  %v111_v21 = vld [vmem:[%s1388_s3 + $0x60] sm:$0xff] }
   0x6   :  { %676 = vmatprep.subr.bf16.mxu0 %v675_v8  ;;  %v683_v20 = vpack.c.bf16 %v114_v18, %v112_v17  ;;  %v113_v22 = vld [vmem:[%s1388_s3 + $0x70] sm:$0xff]  ;;  %v116_v23 = vld [vmem:[%s1388_s3 + $0x88] sm:$0xff]  ;;  %v118_v24 = vld [vmem:[%s1388_s3 + $0x98] sm:$0xff] }
   0x7   :  { %v685_v25 = vpack.c.bf16 %v113_v22, %v111_v21  ;;  %v687_v26 = vpack.c.bf16 %v118_v24, %v116_v23  ;;  %v115_v27 = vld [vmem:[%s1388_s3 + $0x80] sm:$0xff]  ;;  %v117_v28 = vld [vmem:[%s1388_s3 + $0x90] sm:$0xff]  ;;  %v120_v29 = vld [vmem:[%s1388_s3 + $0xa8] sm:$0xff] }
   0x8   :  { %v122_v30 = vld [vmem:[%s1388_s3 + $0xb8] sm:$0xff]  ;;  %v689_v31 = vpack.c.bf16 %v117_v28, %v115_v27  ;;  %v119_v33 = vld [vmem:[%s1388_s3 + $0xa0] sm:$0xff]  ;;  %v121_v34 = vld [vmem:[%s1388_s3 + $0xb0] sm:$0xff] }
   0x9   :  { %678 = vmatpush1.bf16.msra.mxu0 %v677_v13  ;;  %v691_v32 = vpack.c.bf16 %v122_v30, %v120_v29  ;;  %v124_v35 = vld [vmem:[%s1388_s3 + $0xc8] sm:$0xff]  ;;  %v126_v36 = vld [vmem:[%s1388_s3 + $0xd8] sm:$0xff]  ;;  %v693_v37 = vpack.c.bf16 %v121_v34, %v119_v33  ;;  %v123_v39 = vld [vmem:[%s1388_s3 + $0xc0] sm:$0xff] }
   0xa   :  { %680 = vmatprep.subr.bf16.mxu0 %v679_v14  ;;  %v695_v38 = vpack.c.bf16 %v126_v36, %v124_v35  ;;  %v125_v40 = vld [vmem:[%s1388_s3 + $0xd0] sm:$0xff]  ;;  %v1027_v41 = vld.sshfl [vmem:[%s1387_s2] sm:$0x33 pattern:$0x76325410]  ;;  %v128_v42 = vld [vmem:[%s1388_s3 + $0xe8] sm:$0xff] }
   0xb   :  { %v130_v43 = vld [vmem:[%s1388_s3 + $0xf8] sm:$0xff]  ;;  %v183_v44 = vcombine.high %v1027_v41, %v1027_v41 }
   0xd   :  { %682 = vmatpush1.bf16.msra.mxu0 %v681_v19 }
   0xe   :  { %684 = vmatprep.subr.bf16.mxu0 %v683_v20 }
  0x11   :  { %686 = vmatpush1.bf16.msra.mxu0 %v685_v25 }
  0x12   :  { %688 = vmatprep.subr.bf16.mxu0 %v687_v26 }
  0x15   :  { %690 = vmatpush1.bf16.msra.mxu0 %v689_v31 }
  0x16   :  { %692 = vmatprep.subr.bf16.mxu0 %v691_v32 }
  0x17   :  { %17 = vsyncpa [#allocation5], 0  ;;  %v697_v45 = vpack.c.bf16 %v125_v40, %v123_v39  ;;  %250 = vmatprep.mubr.f32.mxu0 %v183_v44  ;;  %v699_v46 = vpack.c.bf16 %v130_v43, %v128_v42  ;;  %v127_v47 = vld [vmem:[%s1388_s3 + $0xe0] sm:$0xff]  ;;  %v129_v48 = vld [vmem:[%s1388_s3 + $0xf0] sm:$0xff]  ;;  %vm257_vm0 = vcmask 1041408   ;;  %s882_s30 = smov [#allocation4]  }
  0x18   :  { %v132_v49 = vld [vmem:[%s1388_s3 + $0x108] sm:$0xff]  ;;  %v134_v50 = vld [vmem:[%s1388_s3 + $0x118] sm:$0xff]  ;;  %v701_v51 = vpack.c.bf16 %v129_v48, %v127_v47  ;;  %v131_v53 = vld [vmem:[%s1388_s3 + $0x100] sm:$0xff]  ;;  %s573_s11 = sshll.u32 %s882_s30, 4  ;;  %s574_s11 = int_to_ptr.vmem [resolvable:$true] %s573_s11 }
  0x19   :  { %694 = vmatpush1.bf16.msra.mxu0 %v693_v37  ;;  %v703_v52 = vpack.c.bf16 %v134_v50, %v132_v49  ;;  %v133_v54 = vld [vmem:[%s1388_s3 + $0x110] sm:$0xff]  ;;  %v136_v55 = vld [vmem:[%s1388_s3 + $0x128] sm:$0xff]  ;;  %v138_v56 = vld [vmem:[%s1388_s3 + $0x138] sm:$0xff]  ;;  %s811_s12 = scalar_lea.vmem %s574_s11, 64  ;;  %p816_p1 = scmp.lt.s32.totalorder %s574_s11, %s574_s11 }
  0x1a   :  { %696 = vmatprep.subr.bf16.mxu0 %v695_v38  ;;  %v705_v57 = vpack.c.bf16 %v133_v54, %v131_v53  ;;  %v707_v58 = vpack.c.bf16 %v138_v56, %v136_v55  ;;  %v135_v59 = vld [vmem:[%s1388_s3 + $0x120] sm:$0xff]  ;;  %v137_v60 = vld [vmem:[%s1388_s3 + $0x130] sm:$0xff]  ;;  %v140_v61 = vld [vmem:[%s1388_s3 + $0x148] sm:$0xff]  ;;  %p812_p0 = scmp.ne.s32.totalorder %s574_s11, %s811_s12  ;;  %p817_p2 = scmp.lt.s32.totalorder %s811_s12, %s811_s12 }
  0x1b   :  { %v142_v62 = vld [vmem:[%s1388_s3 + $0x158] sm:$0xff]  ;;  %v709_v63 = vpack.c.bf16 %v137_v60, %v135_v59  ;;  %v139_v1 = vld [vmem:[%s1388_s3 + $0x140] sm:$0xff]  ;;  %v141_v2 = vld [vmem:[%s1388_s3 + $0x150] sm:$0xff] }
  0x1c   :  { %v711_v0 = vpack.c.bf16 %v142_v62, %v140_v61  ;;  %v144_v3 = vld [vmem:[%s1388_s3 + $0x168] sm:$0xff]  ;;  %v146_v4 = vld [vmem:[%s1388_s3 + $0x178] sm:$0xff]  ;;  %v713_v5 = vpack.c.bf16 %v141_v2, %v139_v1  ;;  %v143_v7 = vld [vmem:[%s1388_s3 + $0x160] sm:$0xff]  ;;  %p818_p3 = por %p817_p2, %p816_p1 }
  0x1d   :  { %698 = vmatpush1.bf16.msra.mxu0 %v697_v45  ;;  %v715_v6 = vpack.c.bf16 %v146_v4, %v144_v3  ;;  %v145_v8 = vld [vmem:[%s1388_s3 + $0x170] sm:$0xff]  ;;  %v148_v9 = vld [vmem:[%s1388_s3 + $0x188] sm:$0xff]  ;;  %v150_v10 = vld [vmem:[%s1388_s3 + $0x198] sm:$0xff] }
  0x1e   :  { %700 = vmatprep.subr.bf16.mxu0 %v699_v46  ;;  %v717_v11 = vpack.c.bf16 %v145_v8, %v143_v7  ;;  %v719_v12 = vpack.c.bf16 %v150_v10, %v148_v9  ;;  %v147_v13 = vld [vmem:[%s1388_s3 + $0x180] sm:$0xff]  ;;  %v149_v14 = vld [vmem:[%s1388_s3 + $0x190] sm:$0xff]  ;;  %v152_v15 = vld [vmem:[%s1388_s3 + $0x1a8] sm:$0xff]  ;;  %p819_p4 = pnand %p818_p3, %p812_p0 }
  0x1f   :  { %v154_v16 = vld [vmem:[%s1388_s3 + $0x1b8] sm:$0xff]  ;;  %v721_v17 = vpack.c.bf16 %v149_v14, %v147_v13  ;;  %v151_v19 = vld [vmem:[%s1388_s3 + $0x1a0] sm:$0xff]  ;;  %v153_v20 = vld [vmem:[%s1388_s3 + $0x1b0] sm:$0xff] }
  0x20   :  { %v723_v18 = vpack.c.bf16 %v154_v16, %v152_v15  ;;  %v156_v21 = vld [vmem:[%s1388_s3 + $0x1c8] sm:$0xff]  ;;  %v158_v22 = vld [vmem:[%s1388_s3 + $0x1d8] sm:$0xff]  ;;  %v725_v23 = vpack.c.bf16 %v153_v20, %v151_v19  ;;  %v155_v25 = vld [vmem:[%s1388_s3 + $0x1c0] sm:$0xff] }
  0x21   :  { %702 = vmatpush1.bf16.msra.mxu0 %v701_v51  ;;  %v727_v24 = vpack.c.bf16 %v158_v22, %v156_v21  ;;  %v157_v26 = vld [vmem:[%s1388_s3 + $0x1d0] sm:$0xff]  ;;  %v160_v27 = vld [vmem:[%s1388_s3 + $0x1e8] sm:$0xff]  ;;  %v162_v28 = vld [vmem:[%s1388_s3 + $0x1f8] sm:$0xff]  ;;  %v37_v21 = vlaneseq }
  0x22   :  { %704 = vmatprep.subr.bf16.mxu0 %v703_v52  ;;  %v729_v29 = vpack.c.bf16 %v157_v26, %v155_v25  ;;  %v731_v30 = vpack.c.bf16 %v162_v28, %v160_v27  ;;  %v159_v31 = vld [vmem:[%s1388_s3 + $0x1e0] sm:$0xff]  ;;  %v161_v32 = vld [vmem:[%s1388_s3 + $0x1f0] sm:$0xff]  ;;  %v358_v35 = vld [vmem:[%s1391_s6 + $0x88] sm:$0xff]  ;;  %v881_v28 = vmov 1983009808  }
  0x23   :  { %v733_v33 = vpack.c.bf16 %v161_v32, %v159_v31  ;;  %v357_v34 = vld [vmem:[%s1391_s6 + $0x80] sm:$0xff]  ;;  %v342_v38 = vld [vmem:[%s1391_s6 + $0x8] sm:$0xff]  ;;  %v359_v40 = vld [vmem:[%s1391_s6 + $0x90] sm:$0xff]  ;;  %v38_v22 = vshrl.u32 %v37_v21, 7 }
  0x24   :  { %v735_v36 = vpack.c.bf16 %v358_v35, %v357_v34  ;;  %v341_v37 = vld [vmem:[%s1391_s6] sm:$0xff]  ;;  %v343_v43 = vld [vmem:[%s1391_s6 + $0x10] sm:$0xff]  ;;  %v344_v44 = vld [vmem:[%s1391_s6 + $0x18] sm:$0xff] }
  0x25   :  { %706 = vmatpush1.bf16.msra.mxu0 %v705_v57  ;;  %v737_v39 = vpack.c.bf16 %v342_v38, %v341_v37  ;;  %v741_v45 = vpack.c.bf16 %v344_v44, %v343_v43  ;;  %v361_v46 = vld [vmem:[%s1391_s6 + $0xa0] sm:$0xff]  ;;  %v362_v47 = vld [vmem:[%s1391_s6 + $0xa8] sm:$0xff]  ;;  %v363_v52 = vld [vmem:[%s1391_s6 + $0xb0] sm:$0xff]  ;;  %v69_v31 = vsub.s32 1, %v38_v22 }
  0x26   :  { %708 = vmatprep.subr.bf16.mxu0 %v707_v58  ;;  %736 = vmatprep.subr.bf16.mxu1 %v735_v36  ;;  %v743_v48 = vpack.c.bf16 %v362_v47, %v361_v46  ;;  %v345_v49 = vld [vmem:[%s1391_s6 + $0x20] sm:$0xff]  ;;  %v346_v50 = vld [vmem:[%s1391_s6 + $0x28] sm:$0xff]  ;;  %v364_v53 = vld [vmem:[%s1391_s6 + $0xb8] sm:$0xff] }
  0x27   :  { %738 = vmatpush3.bf16.msra.mxu1 %v737_v39  ;;  %v745_v51 = vpack.c.bf16 %v346_v50, %v345_v49  ;;  %v747_v54 = vpack.c.bf16 %v364_v53, %v363_v52  ;;  %v347_v55 = vld [vmem:[%s1391_s6 + $0x30] sm:$0xff]  ;;  %v348_v56 = vld [vmem:[%s1391_s6 + $0x38] sm:$0xff]  ;;  %v365_v58 = vld [vmem:[%s1391_s6 + $0xc0] sm:$0xff] }
  0x28   :  { %v749_v57 = vpack.c.bf16 %v348_v56, %v347_v55  ;;  %v366_v59 = vld [vmem:[%s1391_s6 + $0xc8] sm:$0xff]  ;;  %v349_v61 = vld [vmem:[%s1391_s6 + $0x40] sm:$0xff]  ;;  %v368_v1 = vld [vmem:[%s1391_s6 + $0xd8] sm:$0xff] }
  0x29   :  { %710 = vmatpush1.bf16.msra.mxu0 %v709_v63  ;;  %v751_v60 = vpack.c.bf16 %v366_v59, %v365_v58  ;;  %v350_v62 = vld [vmem:[%s1391_s6 + $0x48] sm:$0xff]  ;;  %v351_v2 = vld [vmem:[%s1391_s6 + $0x50] sm:$0xff]  ;;  %v352_v4 = vld [vmem:[%s1391_s6 + $0x58] sm:$0xff] }
  0x2a   :  { %712 = vmatprep.subr.bf16.mxu0 %v711_v0  ;;  %v753_v63 = vpack.c.bf16 %v350_v62, %v349_v61  ;;  %v367_v0 = vld [vmem:[%s1391_s6 + $0xd0] sm:$0xff]  ;;  %v757_v7 = vpack.c.bf16 %v352_v4, %v351_v2  ;;  %v353_v9 = vld [vmem:[%s1391_s6 + $0x60] sm:$0xff]  ;;  %v354_v10 = vld [vmem:[%s1391_s6 + $0x68] sm:$0xff] }
  0x2b   :  { %v755_v3 = vpack.c.bf16 %v368_v1, %v367_v0  ;;  %v761_v13 = vpack.c.bf16 %v354_v10, %v353_v9  ;;  %v355_v15 = vld [vmem:[%s1391_s6 + $0x70] sm:$0xff]  ;;  %v356_v16 = vld [vmem:[%s1391_s6 + $0x78] sm:$0xff]  ;;  %v326_v19 = vld [vmem:[%s1390_s5 + $0x88] sm:$0xff] }
  0x2c   :  { %v34_v25 = vld [vmem:[%s1386_s1] sm:$0xf] }
  0x2d   :  { %714 = vmatpush1.bf16.msra.mxu0 %v713_v5  ;;  %v369_v5 = vld [vmem:[%s1391_s6 + $0xe0] sm:$0xff]  ;;  %v70_v35 = vrot.slane %v34_v25, %v69_v31 }
  0x2e   :  { %716 = vmatprep.subr.bf16.mxu0 %v715_v6  ;;  %v370_v6 = vld [vmem:[%s1391_s6 + $0xe8] sm:$0xff]  ;;  %v163_v49 = vld [vmem:[%s1389_s4] sm:$0x3] }
  0x2f   :  { %v759_v8 = vpack.c.bf16 %v370_v6, %v369_v5  ;;  %v80_v39 = vrot.slane %v70_v35, %v69_v31 }
  0x31   :  { %718 = vmatpush1.bf16.msra.mxu0 %v717_v11  ;;  %v371_v11 = vld [vmem:[%s1391_s6 + $0xf0] sm:$0xff] }
  0x32   :  { %720 = vmatprep.subr.bf16.mxu0 %v719_v12  ;;  %v372_v12 = vld [vmem:[%s1391_s6 + $0xf8] sm:$0xff] }
  0x33   :  { %v763_v14 = vpack.c.bf16 %v372_v12, %v371_v11 }
  0x35   :  { %722 = vmatpush1.bf16.msra.mxu0 %v721_v17  ;;  %v765_v17 = vpack.c.bf16 %v356_v16, %v355_v15 }
  0x36   :  { %724 = vmatprep.subr.bf16.mxu0 %v723_v18  ;;  %v325_v18 = vld [vmem:[%s1390_s5 + $0x80] sm:$0xff] }
  0x37   :  { %v767_v20 = vpack.c.bf16 %v326_v19, %v325_v18 }
  0x39   :  { %726 = vmatpush1.bf16.msra.mxu0 %v725_v23  ;;  %v39_v23 = vsub.s32 0, %v38_v22 }
  0x3a   :  { %728 = vmatprep.subr.bf16.mxu0 %v727_v24  ;;  %v43_v24 = vsub.s32 2, %v38_v22 }
  0x3b   :  { %v40_v26 = vrot.slane %v34_v25, %v39_v23  ;;  %v168_v50 = vrot.slane %v163_v49, %v39_v23 }
  0x3c   :  { %v44_v27 = vrot.slane %v34_v25, %v43_v24 }
  0x3d   :  { %730 = vmatpush1.bf16.msra.mxu0 %v729_v29  ;;  %v59_v29 = vunpack.c.l.s4 %v881_v28  ;;  %v50_v32 = vrot.slane %v40_v26, %v39_v23 }
  0x3e   :  { %732 = vmatprep.subr.bf16.mxu0 %v731_v30  ;;  %v73_v30 = vsub.s32 3, %v38_v22 }
  0x3f   :  { %v60_v34 = vunpack.c.0.s8 %v59_v29 }
  0x40   :  { %v74_v36 = vrot.slane %v34_v25, %v73_v30 }
  0x41   :  { %734 = vmatpush1.bf16.msra.mxu0 %v733_v33  ;;  %v54_v33 = vrot.slane %v44_v27, %v39_v23  ;;  %v63_v38 = vsub.s32 %v60_v34, %v38_v22 }
  0x43   :  { %v57_v37 = vcombine.low %v50_v32, %v54_v33 }
  0x44   :  { %251 = vmatmul.mubr.f32.vlgmr.msra.gmra.mrb[0].mxu0 %v1027_v41  ;;  %v360_v41 = vld [vmem:[%s1391_s6 + $0x98] sm:$0xff] }
  0x45   :  { %v739_v42 = vpack.c.bf16 %v360_v41, %v359_v40  ;;  %v84_v40 = vrot.slane %v74_v36, %v69_v31  ;;  %v64_v41 = vrot.slane %v57_v37, %v63_v38 }
  0x47   :  { %740 = vmatprep.subr.bf16.mxu1 %v739_v42  ;;  %v35_v42 = vld [vmem:[%s1385_s0] sm:$0xf]  ;;  %v87_v43 = vcombine.low %v80_v39, %v84_v40  ;;  %v310_v40 = vld [vmem:[%s1390_s5 + $0x8] sm:$0xff] }
  0x48   :  { %742 = vmatpush3.bf16.msra.mxu1 %v741_v45  ;;  %v66_v44 = vmul.f32 %v64_v41, %v35_v42  ;;  %v309_v39 = vld [vmem:[%s1390_s5] sm:$0xff]  ;;  %v327_v42 = vld [vmem:[%s1390_s5 + $0x90] sm:$0xff] }
  0x49   :  { %744 = vmatprep.subr.bf16.mxu1 %v743_v48  ;;  %v94_v45 = vrot.slane %v87_v43, %v63_v38  ;;  %v328_v43 = vld [vmem:[%s1390_s5 + $0x98] sm:$0xff] }
  0x4b   :  { %v96_v46 = vadd.f32 %v94_v45, %v66_v44 }
  0x4c   :  { %746 = vmatpush3.bf16.msra.mxu1 %v745_v51  ;;  %v172_v51 = vrot.slane %v163_v49, %v69_v31  ;;  %v771_v49 = vpack.c.bf16 %v328_v43, %v327_v42 }
  0x4d   :  { %748 = vmatprep.subr.bf16.mxu1 %v747_v54  ;;  %v97_v47 = vmax.f32 %v96_v46, 0.0  ;;  %v769_v46 = vpack.c.bf16 %v310_v40, %v309_v39 }
  0x4f   :  { %v1248_v48 = vrot.slane %v97_v47, %v63_v38  ;;  %544 = vst [vmem:[#allocation4] sm:$0xf] %v97_v47 }
  0x50   :  { %750 = vmatpush3.bf16.msra.mxu1 %v749_v57 }
  0x51   :  { %752 = vmatprep.subr.bf16.mxu1 %v751_v60  ;;  %v451_v47 = vcombine.high %v1248_v48, %v1248_v48 }
  0x54   :  { %754 = vmatpush3.bf16.msra.mxu1 %v753_v63 }
  0x55   :  { %756 = vmatprep.subr.bf16.mxu1 %v755_v3 }
  0x58   :  { %758 = vmatpush3.bf16.msra.mxu1 %v757_v7 }
  0x59   :  { %760 = vmatprep.subr.bf16.mxu1 %v759_v8 }
  0x5c   :  { %762 = vmatpush3.bf16.msra.mxu1 %v761_v13 }
  0x5d   :  { %764 = vmatprep.subr.bf16.mxu1 %v763_v14 }
  0x60   :  { %766 = vmatpush3.bf16.msra.mxu1 %v765_v17 }
  0x61   :  { %768 = vmatprep.subr.bf16.mxu1 %v767_v20 }
 0x117   :  { %v252_v52 = vpop.f32.mrb[0].mxu0 }
 0x118   :  { %v253_v53 = vadd.f32 %v252_v52, %v168_v50  ;;  %v254_v54 = vpop.f32.mrb[1].mxu0  ;;  %v311_v50 = vld [vmem:[%s1390_s5 + $0x10] sm:$0xff]  ;;  %v329_v52 = vld [vmem:[%s1390_s5 + $0xa0] sm:$0xff] }
 0x119   :  { %v255_v55 = vadd.f32 %v254_v54, %v172_v51  ;;  %v312_v51 = vld [vmem:[%s1390_s5 + $0x18] sm:$0xff] }
 0x11a   :  { %v258_v56 = vsel %vm257_vm0, %v253_v53, 0.0  ;;  %v275_v57 = vmul.f32 %v253_v53, %v253_v53 }
 0x11b   :  { %v259_v58 = vrot.slane %v258_v56, 4  ;;  %v265_v59 = vsel %vm257_vm0, %v255_v55, 0.0  ;;  %v276_v60 = vmul.f32 %v255_v55, %v255_v55 }
 0x11c   :  { %v277_v61 = vsel %vm257_vm0, %v275_v57, 0.0  ;;  %v266_v62 = vrot.slane %v265_v59, 4  ;;  %v313_v57 = vld [vmem:[%s1390_s5 + $0x20] sm:$0xff] }
 0x11d   :  { %v260_v63 = vadd.f32 %v259_v58, %v258_v56  ;;  %v278_v0 = vrot.slane %v277_v61, 4  ;;  %v284_v1 = vsel %vm257_vm0, %v276_v60, 0.0  ;;  %v314_v58 = vld [vmem:[%s1390_s5 + $0x28] sm:$0xff]  ;;  %v332_v60 = vld [vmem:[%s1390_s5 + $0xb8] sm:$0xff] }
 0x11e   :  { %v267_v2 = vadd.f32 %v266_v62, %v265_v59  ;;  %v285_v3 = vrot.slane %v284_v1, 4  ;;  %v331_v59 = vld [vmem:[%s1390_s5 + $0xb0] sm:$0xff] }
 0x11f   :  { %v261_v4 = vrot.slane %v260_v63, 2  ;;  %v279_v5 = vadd.f32 %v278_v0, %v277_v61  ;;  %v777_v61 = vpack.c.bf16 %v314_v58, %v313_v57  ;;  %v779_v62 = vpack.c.bf16 %v332_v60, %v331_v59  ;;  %v316_v0 = vld [vmem:[%s1390_s5 + $0x38] sm:$0xff] }
 0x120   :  { %v268_v6 = vrot.slane %v267_v2, 2  ;;  %v286_v7 = vadd.f32 %v285_v3, %v284_v1  ;;  %v333_v1 = vld [vmem:[%s1390_s5 + $0xc0] sm:$0xff] }
 0x121   :  { %v262_v8 = vadd.f32 %v261_v4, %v260_v63  ;;  %v280_v9 = vrot.slane %v279_v5, 2  ;;  %v315_v63 = vld [vmem:[%s1390_s5 + $0x30] sm:$0xff] }
 0x122   :  { %v269_v10 = vadd.f32 %v268_v6, %v267_v2  ;;  %v287_v11 = vrot.slane %v286_v7, 2  ;;  %v334_v2 = vld [vmem:[%s1390_s5 + $0xc8] sm:$0xff]  ;;  %v781_v3 = vpack.c.bf16 %v316_v0, %v315_v63 }
 0x123   :  { %v263_v12 = vrot.slane %v262_v8, 1  ;;  %v281_v13 = vadd.f32 %v280_v9, %v279_v5  ;;  %v783_v4 = vpack.c.bf16 %v334_v2, %v333_v1  ;;  %v317_v5 = vld [vmem:[%s1390_s5 + $0x40] sm:$0xff]  ;;  %v318_v6 = vld [vmem:[%s1390_s5 + $0x48] sm:$0xff] }
 0x124   :  { %v288_v14 = vadd.f32 %v287_v11, %v286_v7  ;;  %v270_v15 = vrot.slane %v269_v10, 1  ;;  %v335_v7 = vld [vmem:[%s1390_s5 + $0xd0] sm:$0xff]  ;;  %v785_v9 = vpack.c.bf16 %v318_v6, %v317_v5 }
 0x125   :  { %v264_v16 = vadd.f32 %v263_v12, %v262_v8  ;;  %v282_v17 = vrot.slane %v281_v13, 1  ;;  %v336_v8 = vld [vmem:[%s1390_s5 + $0xd8] sm:$0xff]  ;;  %v319_v11 = vld [vmem:[%s1390_s5 + $0x50] sm:$0xff] }
 0x126   :  { %v289_v18 = vrot.slane %v288_v14, 1  ;;  %v271_v19 = vadd.f32 %v270_v15, %v269_v10  ;;  %v787_v10 = vpack.c.bf16 %v336_v8, %v335_v7  ;;  %v320_v12 = vld [vmem:[%s1390_s5 + $0x58] sm:$0xff] }
 0x127   :  { %v273_v20 = vmul.f32 0.5, %v264_v16  ;;  %v283_v21 = vadd.f32 %v282_v17, %v281_v13  ;;  %v337_v13 = vld [vmem:[%s1390_s5 + $0xe0] sm:$0xff]  ;;  %v789_v15 = vpack.c.bf16 %v320_v12, %v319_v11 }
 0x128   :  { %v290_v22 = vadd.f32 %v289_v18, %v288_v14  ;;  %v274_v23 = vmul.f32 0.5, %v271_v19  ;;  %v338_v14 = vld [vmem:[%s1390_s5 + $0xe8] sm:$0xff]  ;;  %v321_v17 = vld [vmem:[%s1390_s5 + $0x60] sm:$0xff]  ;;  %v339_v19 = vld [vmem:[%s1390_s5 + $0xf0] sm:$0xff] }
 0x129   :  { %v291_v24 = vmul.f32 0.5, %v283_v21  ;;  %v293_v25 = vmul.f32 %v273_v20, %v273_v20  ;;  %v299_v34 = vsub.f32 %v253_v53, %v273_v20  ;;  %v330_v53 = vld [vmem:[%s1390_s5 + $0xa8] sm:$0xff]  ;;  %v791_v16 = vpack.c.bf16 %v338_v14, %v337_v13  ;;  %v340_v20 = vld [vmem:[%s1390_s5 + $0xf8] sm:$0xff] }
 0x12a   :  { %v292_v26 = vmul.f32 0.5, %v290_v22  ;;  %v294_v27 = vmul.f32 %v274_v23, %v274_v23  ;;  %v300_v36 = vsub.f32 %v255_v55, %v274_v23  ;;  %v773_v55 = vpack.c.bf16 %v312_v51, %v311_v50  ;;  %v322_v18 = vld [vmem:[%s1390_s5 + $0x68] sm:$0xff]  ;;  %v323_v23 = vld [vmem:[%s1390_s5 + $0x70] sm:$0xff] }
 0x12b   :  { %v295_v28 = vsub.f32 %v291_v24, %v293_v25  ;;  %v775_v56 = vpack.c.bf16 %v330_v53, %v329_v52  ;;  %v793_v21 = vpack.c.bf16 %v322_v18, %v321_v17  ;;  %v795_v22 = vpack.c.bf16 %v340_v20, %v339_v19  ;;  %v324_v24 = vld [vmem:[%s1390_s5 + $0x78] sm:$0xff] }
 0x12c   :  { %v296_v29 = vsub.f32 %v292_v26, %v294_v27  ;;  %v797_v25 = vpack.c.bf16 %v324_v24, %v323_v23 }
 0x12d   :  { %v297_v30 = vmax.f32 %v295_v28, 0.0 }
 0x12e   :  { %v298_v31 = vmax.f32 %v296_v29, 0.0 }
 0x12f   :  { %v301_v32 = vadd.f32 1e-05, %v297_v30 }
 0x130   :  { %v302_v33 = vadd.f32 1e-05, %v298_v31 }
 0x131   :  { %803 = vrsqrt.f32 %v301_v32 }
 0x132   :  { %805 = vrsqrt.f32 %v302_v33 }
 0x13b   :  { %v804_v35 = vpop.eup %803 }
 0x13c   :  { %v806_v37 = vpop.eup %805  ;;  %v305_v38 = vmul.f32 %v804_v35, %v299_v34 }
 0x13d   :  { %v306_v41 = vmul.f32 %v806_v37, %v300_v36 }
 0x13e   :  { %v307_v44 = vmax.f32 %v305_v38, 0.0 }
 0x13f   :  { %v308_v45 = vmax.f32 %v306_v41, 0.0 }
 0x141   :  { %437 = vmatprep.mubr.f32.mxu1 %v308_v45  ;;  %v547_v54 = vcombine.low %v307_v44, %v308_v45 }
 0x142   :  { %438 = vmatmul.mubr.f32.vlgmr.msra.gmra.mrb[0].mxu1 %v307_v44 }
 0x143   :  { %770 = vmatpush3.bf16.msra.mxu1 %v769_v46  ;;  %518 = vmatprep.mubr.f32.mxu1 %v451_v47  ;;  %600 = vst.sshfl [vmem:[#allocation6] sm:$0x33 pattern:$0x76325410] %v547_v54 }
 0x144   :  { %772 = vmatprep.subr.bf16.mxu1 %v771_v49 }
 0x147   :  { %774 = vmatpush3.bf16.msra.mxu1 %v773_v55 }
 0x148   :  { %776 = vmatprep.subr.bf16.mxu1 %v775_v56 }
 0x14b   :  { %778 = vmatpush3.bf16.msra.mxu1 %v777_v61 }
 0x14c   :  { %780 = vmatprep.subr.bf16.mxu1 %v779_v62 }
 0x14f   :  { %782 = vmatpush3.bf16.msra.mxu1 %v781_v3 }
 0x150   :  { %784 = vmatprep.subr.bf16.mxu1 %v783_v4 }
 0x153   :  { %786 = vmatpush3.bf16.msra.mxu1 %v785_v9 }
 0x154   :  { %788 = vmatprep.subr.bf16.mxu1 %v787_v10 }
 0x157   :  { %790 = vmatpush3.bf16.msra.mxu1 %v789_v15 }
 0x158   :  { %792 = vmatprep.subr.bf16.mxu1 %v791_v16 }
 0x15b   :  { %794 = vmatpush3.bf16.msra.mxu1 %v793_v21 }
 0x15c   :  { %796 = vmatprep.subr.bf16.mxu1 %v795_v22 }
 0x15f   :  { %798 = vmatpush3.bf16.msra.mxu1 %v797_v25 }
 0x162   :  { %519 = vmatmul.mubr.f32.vlgmr.msra.gmra.mrb[2].mxu1 %v1248_v48 }
 0x163   :  { %822 = shalt.err (!%p819_p4)
}
 0x164   :  { %s823_s5 = scalar_lea.hbm %s1394_s9, 64 }
 0x165   :  { %p824_p5 = scmp.ne.s32.totalorder %s1394_s9, %s823_s5  ;;  %p827_p6 = scmp.lt.u32.totalorder %s823_s5, %s1394_s9 }
 0x167   :  { %p829_p7 = pnand %p827_p6, %p824_p5 }
 0x169   :  { %832 = shalt.err (!%p829_p7)
}
 0x16a   :  { %576 = dma.vmem_to_hbm [thread:$0]  %s574_s11, 64, %s1394_s9, [#allocation5]  }
 0x16b   :  { %s883_s20 = smov [#allocation6]  }
 0x16c   :  { %s583_s21 = sshll.u32 %s883_s20, 4  ;;  %s584_s21 = int_to_ptr.vmem [resolvable:$true] %s583_s21 }
 0x16d   :  { %s833_s6 = scalar_lea.vmem %s584_s21, 64  ;;  %p838_p9 = scmp.lt.s32.totalorder %s584_s21, %s584_s21 }
 0x16e   :  { %p834_p8 = scmp.ne.s32.totalorder %s584_s21, %s833_s6  ;;  %p839_p10 = scmp.lt.s32.totalorder %s833_s6, %s833_s6 }
 0x170   :  { %p840_p11 = por %p839_p10, %p838_p9 }
 0x172   :  { %p841_p12 = pnand %p840_p11, %p834_p8 }
 0x174   :  { %844 = shalt.err (!%p841_p12)
}
 0x175   :  { %s845_s1 = scalar_lea.hbm %s1395_s10, 64 }
 0x176   :  { %p846_p13 = scmp.ne.s32.totalorder %s1395_s10, %s845_s1  ;;  %p849_p0 = scmp.lt.u32.totalorder %s845_s1, %s1395_s10 }
 0x178   :  { %p851_p1 = pnand %p849_p0, %p846_p13 }
 0x17a   :  { %854 = shalt.err (!%p851_p1)
}
 0x17b   :  { %586 = dma.vmem_to_hbm [thread:$0]  %s584_s21, 64, %s1395_s10, [#allocation5]   ;;  %v599_v31 = vld [vmem:[%s1392_s7] ss:$0 sm:$0xff]  ;;  %vm542_vm1 = vcmask 74752  }
 0x17c   :  { %s884_s10 = smov [#allocation2]  }
 0x17d   :  { %s563_s28 = sshll.u32 %s884_s10, 4  ;;  %s564_s28 = int_to_ptr.vmem [resolvable:$true] %s563_s28 }
 0x17e   :  { %s855_s29 = scalar_lea.vmem %s564_s28, 32  ;;  %p860_p3 = scmp.lt.s32.totalorder %s564_s28, %s564_s28 }
 0x17f   :  { %p856_p2 = scmp.ne.s32.totalorder %s564_s28, %s855_s29  ;;  %p861_p4 = scmp.lt.s32.totalorder %s855_s29, %s855_s29 }
 0x181   :  { %p862_p5 = por %p861_p4, %p860_p3 }
 0x183   :  { %p863_p6 = pnand %p862_p5, %p856_p2 }
 0x215   :  { %v633_v48 = vpop.f32.mrb[0].mxu1 }
 0x216   :  { %v634_v26 = vpop.f32.mrb[1].mxu1 }
 0x217   :  { %v635_v27 = vadd.f32 %v634_v26, %v633_v48 }
 0x235   :  { %v668_v28 = vpop.f32.mrb[2].mxu1 }
 0x236   :  { %v669_v29 = vpop.f32.mrb[3].mxu1 }
 0x237   :  { %v670_v30 = vadd.f32 %v669_v29, %v668_v28 }
 0x239   :  { %v521_v32 = vadd.f32 %v670_v30, %v635_v27 }
 0x23b   :  { %v531_v33 = vadd.f32 %v599_v31, %v521_v32 }
 0x23d   :  { %v532_v34 = vand.u32 2147483647, %v531_v33  ;;  %vm536_vm2 = vcmp.ge.f32.partialorder %v531_v33, 0.0 }
 0x23f   :  { %v533_v35 = vsub.f32 0.0, %v532_v34 }
 0x241   :  { %v534_v36 = vmul.f32 1.442695, %v533_v35 }
 0x243   :  { %807 = vpow2.f32 %v534_v36 }
 0x24d   :  { %v808_v37 = vpop.eup %807 }
 0x24e   :  { %v537_v38 = vadd.f32 1.0, %v808_v37 }
 0x250   :  { %809 = vrcp.f32 %v537_v38 }
 0x25a   :  { %v810_v39 = vpop.eup %809 }
 0x25b   :  { %v540_v40 = vmul.f32 %v810_v39, %v808_v37 }
 0x25d   :  { %v541_v41 = vsel %vm536_vm2, %v810_v39, %v540_v40 }
 0x25e   :  { %543 = vst.msk [vmem:[#allocation2] sm:$0x3] %vm542_vm1, %v541_v41 }
 0x25f   :  { %866 = shalt.err (!%p863_p6)
}
 0x260   :  { %s867_s11 = scalar_lea.hbm %s1393_s8, 32 }
 0x261   :  { %p868_p7 = scmp.ne.s32.totalorder %s1393_s8, %s867_s11  ;;  %p871_p8 = scmp.lt.u32.totalorder %s867_s11, %s1393_s8 }
 0x263   :  { %p873_p9 = pnand %p871_p8, %p868_p7 }
 0x265   :  { %876 = shalt.err (!%p873_p9)
}
 0x266   :  { %566 = dma.vmem_to_hbm [thread:$0]  %s564_s28, 32, %s1393_s8, [#allocation3]  }
 0x267   :  { %877 = dma.done.wait [#allocation3], 32  }
 0x268   :  { %878 = vsyncadd [#allocation3], 4294967264 }
 0x269   :  { %879 = dma.done.wait [#allocation5], 128  }
 0x26a   :  { %880 = vsyncadd [#allocation5], 4294967168 }
 0x26b   :  { %596 = vsyncpa [#allocation3], 1 }
 0x26c   :  { %597 = vsyncpa [#allocation5], 1 }

// kernel: sbfusion_forward.12
= control target key start
LH: loop header
LB: loop body
LE: loop exit
PB: predicated region body
PF: predicated region fallthrough
CT: control target
= control target key end

     0   :  { %s1505_s15 = smov 0   ;;  %s1843_s0 = inlined_call_operand.vmem [shape: bf16[2,16,256], index: 0, kind: input, shape index: {}]   ;;  %s1844_s1 = inlined_call_operand.vmem [shape: f32[2,256], index: 1, kind: input, shape index: {}]   ;;  %s1845_s2 = inlined_call_operand.vmem [shape: bf16[256,768], index: 2, kind: input, shape index: {}]   ;;  %s1846_s3 = inlined_call_operand.vmem [shape: f32[2,1,256], index: 3, kind: output, shape index: {0}]   ;;  %s1847_s4 = inlined_call_operand.vmem [shape: f32[2,2,256], index: 4, kind: output, shape index: {1}]  }
   0x1 LB: > { %s1207_s16 = sadd.s32 4294967295, %s1477_s15   ;;  %p1211_p0 = scmp.ge.s32.totalorder %s1477_s15, 1  ;;  %s1477_s15 = sphi %s1505_s15, %s15_s15  }
   0x2   : > { %p165_p1 = scmp.lt.s32.totalorder %s1477_s15, 3 }
   0x4   : > { %p166_p2 = pnand %p1211_p0, %p165_p1 }
   0x5   : > { %v1327_v0 = vld [vmem:[%s1845_s2 + $0x4] ss:$24 sps:$4 sm:$0xff] (!%p166_p2)   ;;  %v1329_v1 = vld [vmem:[%s1845_s2] ss:$24 sps:$4 sm:$0xff] (!%p166_p2)   ;;  %v1332_v3 = vld [vmem:[%s1845_s2 + $0x34] ss:$24 sps:$4 sm:$0xff] (!%p166_p2)   ;;  %v217_v34 = vlaneseq (!%p166_p2) }
   0x6   : > { %169 = sbr.rel (%p166_p2) target bundleno = 378 (0x17a), region = 32  ;;  %843 = vmatprep.subr.bf16.mxu0 (!%p166_p2), %v1327_v0  ;;  %v1330_v2 = vld [vmem:[%s1845_s2 + $0xc] ss:$24 sps:$4 sm:$0xff] (!%p166_p2)   ;;  %v1334_v4 = vld [vmem:[%s1845_s2 + $0x8] ss:$24 sps:$4 sm:$0xff] (!%p166_p2)   ;;  %p195_p3 = scmp.lt.s32.totalorder (!%p166_p2), %s1207_s16, 1 }
   0x7   : > { %844 = vmatpush1.bf16.msra.mxu0 (!%p166_p2), %v1329_v1  ;;  %v1335_v5 = vld [vmem:[%s1845_s2 + $0x30] ss:$24 sps:$4 sm:$0xff] (!%p166_p2)   ;;  %886 = vmatprep.subr.bf16.mxu1 (!%p166_p2), %v1330_v2  ;;  %v1336_v6 = vld [vmem:[%s1845_s2 + $0x3c] ss:$24 sps:$4 sm:$0xff] (!%p166_p2)   ;;  %v1341_v9 = vld [vmem:[%s1845_s2 + $0x60] ss:$24 sps:$4 sm:$0xff] (!%p166_p2)  }
   0x8   : > { %845 = vmatprep.subr.bf16.mxu0 (!%p166_p2), %v1332_v3  ;;  %887 = vmatpush1.bf16.msra.mxu1 (!%p166_p2), %v1334_v4  ;;  %v1338_v7 = vld [vmem:[%s1845_s2 + $0x64] ss:$24 sps:$4 sm:$0xff] (!%p166_p2)   ;;  %v1340_v8 = vld [vmem:[%s1845_s2 + $0x38] ss:$24 sps:$4 sm:$0xff] (!%p166_p2)   ;;  %v1344_v11 = vld [vmem:[%s1845_s2 + $0x94] ss:$24 sps:$4 sm:$0xff] (!%p166_p2)  }
   0x9   : > { %888 = vmatprep.subr.bf16.mxu1 (!%p166_p2), %v1336_v6  ;;  %v1342_v10 = vld [vmem:[%s1845_s2 + $0x6c] ss:$24 sps:$4 sm:$0xff] (!%p166_p2)   ;;  %v1346_v12 = vld [vmem:[%s1845_s2 + $0x68] ss:$24 sps:$4 sm:$0xff] (!%p166_p2)   ;;  %v1348_v13 = vld [vmem:[%s1845_s2 + $0x9c] ss:$24 sps:$4 sm:$0xff] (!%p166_p2)  }
   0xa   : > { %v1347_v14 = vld [vmem:[%s1845_s2 + $0x90] ss:$24 sps:$4 sm:$0xff] (!%p166_p2)   ;;  %v1350_v15 = vld [vmem:[%s1845_s2 + $0xc4] ss:$24 sps:$4 sm:$0xff] (!%p166_p2)   ;;  %v1353_v18 = vld [vmem:[%s1845_s2 + $0xc0] ss:$24 sps:$4 sm:$0xff] (!%p166_p2)  }
   0xb   : > { %846 = vmatpush1.bf16.msra.mxu0 (!%p166_p2), %v1335_v5  ;;  %v1352_v16 = vld [vmem:[%s1845_s2 + $0x98] ss:$24 sps:$4 sm:$0xff] (!%p166_p2)   ;;  %v1354_v17 = vld [vmem:[%s1845_s2 + $0xcc] ss:$24 sps:$4 sm:$0xff] (!%p166_p2)   ;;  %v1358_v20 = vld [vmem:[%s1845_s2 + $0xc8] ss:$24 sps:$4 sm:$0xff] (!%p166_p2)  }
   0xc   : > { %847 = vmatprep.subr.bf16.mxu0 (!%p166_p2), %v1338_v7  ;;  %889 = vmatpush1.bf16.msra.mxu1 (!%p166_p2), %v1340_v8  ;;  %v1356_v19 = vld [vmem:[%s1845_s2 + $0xf4] ss:$24 sps:$4 sm:$0xff] (!%p166_p2)   ;;  %v1359_v22 = vld [vmem:[%s1845_s2 + $0xf0] ss:$24 sps:$4 sm:$0xff] (!%p166_p2)   ;;  %v1362_v23 = vld [vmem:[%s1845_s2 + $0x124] ss:$24 sps:$4 sm:$0xff] (!%p166_p2)  }
   0xd   : > { %890 = vmatprep.subr.bf16.mxu1 %v1342_v10  ;;  %v1360_v21 = vld [vmem:[%s1845_s2 + $0xfc] ss:$24 sps:$4 sm:$0xff]   ;;  %v1364_v24 = vld [vmem:[%s1845_s2 + $0xf8] ss:$24 sps:$4 sm:$0xff]   ;;  %v1366_v25 = vld [vmem:[%s1845_s2 + $0x12c] ss:$24 sps:$4 sm:$0xff]  }
   0xe   : > { %v1365_v26 = vld [vmem:[%s1845_s2 + $0x120] ss:$24 sps:$4 sm:$0xff]   ;;  %v1368_v27 = vld [vmem:[%s1845_s2 + $0x154] ss:$24 sps:$4 sm:$0xff]   ;;  %v1371_v30 = vld [vmem:[%s1845_s2 + $0x150] ss:$24 sps:$4 sm:$0xff]  }
   0xf   : > { %848 = vmatpush1.bf16.msra.mxu0 %v1341_v9  ;;  %v1370_v28 = vld [vmem:[%s1845_s2 + $0x128] ss:$24 sps:$4 sm:$0xff]   ;;  %v1372_v29 = vld [vmem:[%s1845_s2 + $0x15c] ss:$24 sps:$4 sm:$0xff]   ;;  %v1376_v32 = vld [vmem:[%s1845_s2 + $0x158] ss:$24 sps:$4 sm:$0xff]  }
  0x10   : > { %849 = vmatprep.subr.bf16.mxu0 %v1344_v11  ;;  %891 = vmatpush1.bf16.msra.mxu1 %v1346_v12  ;;  %v1374_v31 = vld [vmem:[%s1845_s2 + $0x184] ss:$24 sps:$4 sm:$0xff]   ;;  %v1377_v35 = vld [vmem:[%s1845_s2 + $0x180] ss:$24 sps:$4 sm:$0xff]   ;;  %s1849_s16 = smov (!%p195_p3, %s1207_s16), 1  ;;  %v1634_v39 = vshrl.u32 %v217_v34, 7 }
  0x11   : > { %892 = vmatprep.subr.bf16.mxu1 %v1348_v13  ;;  %v1378_v33 = vld [vmem:[%s1845_s2 + $0x18c] ss:$24 sps:$4 sm:$0xff]   ;;  %v1382_v37 = vld [vmem:[%s1845_s2 + $0x188] ss:$24 sps:$4 sm:$0xff]   ;;  %v1384_v38 = vld [vmem:[%s1845_s2 + $0x1bc] ss:$24 sps:$4 sm:$0xff]  }
  0x12   : > { %v1380_v36 = vld [vmem:[%s1845_s2 + $0x1b4] ss:$24 sps:$4 sm:$0xff]   ;;  %v1383_v40 = vld [vmem:[%s1845_s2 + $0x1b0] ss:$24 sps:$4 sm:$0xff]   ;;  %s1316_s23 = sshll.u32 %s1849_s16, 4  ;;  %v219_v44 = vsub.s32 0, %v1634_v39 }
  0x13   : > { %850 = vmatpush1.bf16.msra.mxu0 %v1347_v14  ;;  %v1386_v41 = vld [vmem:[%s1845_s2 + $0x1e4] ss:$24 sps:$4 sm:$0xff]   ;;  %v1388_v42 = vld [vmem:[%s1845_s2 + $0x1b8] ss:$24 sps:$4 sm:$0xff]   ;;  %s199_s6 = scalar_lea.vmem %s1843_s0, %s1316_s23  ;;  %v223_v46 = vsub.s32 2, %v1634_v39  ;;  %v245_v47 = vsub.s32 3, %v1634_v39 }
  0x14   : > { %851 = vmatprep.subr.bf16.mxu0 %v1350_v15  ;;  %893 = vmatpush1.bf16.msra.mxu1 %v1352_v16  ;;  %v1390_v43 = vld [vmem:[%s1845_s2 + $0x1ec] ss:$24 sps:$4 sm:$0xff]   ;;  %v1389_v45 = vld [vmem:[%s1845_s2 + $0x1e0] ss:$24 sps:$4 sm:$0xff]   ;;  %v1396_v50 = vld [vmem:[%s1845_s2 + $0x21c] ss:$24 sps:$4 sm:$0xff]  }
  0x15   : > { %894 = vmatprep.subr.bf16.mxu1 %v1354_v17  ;;  %v1392_v48 = vld [vmem:[%s1845_s2 + $0x214] ss:$24 sps:$4 sm:$0xff]   ;;  %v1394_v49 = vld [vmem:[%s1845_s2 + $0x1e8] ss:$24 sps:$4 sm:$0xff]   ;;  %v241_v53 = vsub.s32 1, %v1634_v39  ;;  %vm979_vm0 = vcmp.lt.s32.totalorder %v1634_v39, 1 }
  0x16   : > { %v209_v51 = vld [vmem:[%s199_s6] sm:$0xff]  ;;  %v210_v52 = vld [vmem:[%s199_s6 + $0x8] sm:$0xff]  ;;  %v1400_v62 = vld [vmem:[%s1845_s2 + $0x218] ss:$24 sps:$4 sm:$0xff]   ;;  %vm984_vm1 = vcmp.eq.s32.totalorder %v1634_v39, 0  ;;  %vm998_vm2 = vcmp.lt.s32.totalorder %v1634_v39, 7 }
  0x17   : > { %852 = vmatpush1.bf16.msra.mxu0 %v1353_v18  ;;  %v212_v54 = vunpack.c.h.bf16 %v209_v51  ;;  %v215_v55 = vld [vmem:[%s1844_s1] sm:$0xf]  ;;  %v1395_v56 = vld [vmem:[%s1845_s2 + $0x210] ss:$24 sps:$4 sm:$0xff]   ;;  %v214_v57 = vunpack.c.h.bf16 %v210_v52  ;;  %v1398_v61 = vld [vmem:[%s1845_s2 + $0x244] ss:$24 sps:$4 sm:$0xff]   ;;  %v211_v2 = vunpack.c.l.bf16 %v209_v51  ;;  %v213_v3 = vunpack.c.l.bf16 %v210_v52 }
  0x18   : > { %853 = vmatprep.subr.bf16.mxu0 %v1356_v19  ;;  %895 = vmatpush1.bf16.msra.mxu1 %v1358_v20  ;;  %v224_v58 = vrot.slane %v215_v55, %v223_v46  ;;  %v246_v59 = vrot.slane %v215_v55, %v245_v47  ;;  %v220_v60 = vrot.slane %v215_v55, %v219_v44  ;;  %v1402_v1 = vld [vmem:[%s1845_s2 + $0x24c] ss:$24 sps:$4 sm:$0xff]   ;;  %v1401_v6 = vld [vmem:[%s1845_s2 + $0x240] ss:$24 sps:$4 sm:$0xff]   ;;  %v1408_v13 = vld [vmem:[%s1845_s2 + $0x27c] ss:$24 sps:$4 sm:$0xff]  }
  0x19   : > { %896 = vmatprep.subr.bf16.mxu1 %v1360_v21  ;;  %v242_v5 = vrot.slane %v215_v55, %v241_v53  ;;  %v1404_v9 = vld [vmem:[%s1845_s2 + $0x274] ss:$24 sps:$4 sm:$0xff]   ;;  %v1406_v10 = vld [vmem:[%s1845_s2 + $0x248] ss:$24 sps:$4 sm:$0xff]   ;;  %v1410_v20 = vld [vmem:[%s1845_s2 + $0x2a4] ss:$24 sps:$4 sm:$0xff]  }
  0x1a   : > { %v234_v63 = vrot.slane %v224_v58, %v219_v44  ;;  %v256_v0 = vrot.slane %v246_v59, %v241_v53  ;;  %v230_v4 = vrot.slane %v220_v60, %v219_v44  ;;  %v1407_v17 = vld [vmem:[%s1845_s2 + $0x270] ss:$24 sps:$4 sm:$0xff]   ;;  %v1432_v44 = vld [vmem:[%s1845_s2 + $0xa0] ss:$24 sps:$4 sm:$0xff]   ;;  %v1440_v47 = vld [vmem:[%s1845_s2 + $0x104] ss:$24 sps:$4 sm:$0xff]  }
  0x1b   : > { %854 = vmatpush1.bf16.msra.mxu0 %v1359_v22  ;;  %v252_v16 = vrot.slane %v242_v5, %v241_v53  ;;  %v1412_v21 = vld [vmem:[%s1845_s2 + $0x278] ss:$24 sps:$4 sm:$0xff]   ;;  %v1446_v51 = vld [vmem:[%s1845_s2 + $0x164] ss:$24 sps:$4 sm:$0xff]   ;;  %v1449_v53 = vld [vmem:[%s1845_s2 + $0x194] ss:$24 sps:$4 sm:$0xff]  }
  0x1c   : > { %855 = vmatprep.subr.bf16.mxu0 %v1362_v23  ;;  %897 = vmatpush1.bf16.msra.mxu1 %v1364_v24  ;;  %v236_v7 = vmul.f32 %v234_v63, %v212_v54  ;;  %v238_v8 = vmul.f32 %v234_v63, %v214_v57  ;;  %v235_v14 = vmul.f32 %v230_v4, %v211_v2  ;;  %v1414_v23 = vld [vmem:[%s1845_s2 + $0x2ac] ss:$24 sps:$4 sm:$0xff]   ;;  %v1435_v46 = vld [vmem:[%s1845_s2 + $0xd0] ss:$24 sps:$4 sm:$0xff]   ;;  %v1444_v52 = vld [vmem:[%s1845_s2 + $0x160] ss:$24 sps:$4 sm:$0xff]  }
  0x1d   : > { %898 = vmatprep.subr.bf16.mxu1 %v1366_v25  ;;  %v237_v15 = vmul.f32 %v230_v4, %v213_v3  ;;  %v1447_v54 = vld [vmem:[%s1845_s2 + $0x190] ss:$24 sps:$4 sm:$0xff]   ;;  %v1452_v55 = vld [vmem:[%s1845_s2 + $0x1c4] ss:$24 sps:$4 sm:$0xff]   ;;  %v1455_v57 = vld [vmem:[%s1845_s2 + $0x1f4] ss:$24 sps:$4 sm:$0xff]  }
  0x1e   : > { %v258_v11 = vadd.f32 %v256_v0, %v236_v7  ;;  %v260_v12 = vadd.f32 %v256_v0, %v238_v8  ;;  %v257_v24 = vadd.f32 %v252_v16, %v235_v14  ;;  %v1453_v58 = vld [vmem:[%s1845_s2 + $0x1f0] ss:$24 sps:$4 sm:$0xff]   ;;  %v1458_v59 = vld [vmem:[%s1845_s2 + $0x224] ss:$24 sps:$4 sm:$0xff]   ;;  %v1456_v60 = vld [vmem:[%s1845_s2 + $0x220] ss:$24 sps:$4 sm:$0xff]  }
  0x1f   : > { %856 = vmatpush1.bf16.msra.mxu0 %v1365_v26  ;;  %v259_v25 = vadd.f32 %v252_v16, %v237_v15  ;;  %v1413_v26 = vld [vmem:[%s1845_s2 + $0x2a0] ss:$24 sps:$4 sm:$0xff]   ;;  %v1464_v63 = vld [vmem:[%s1845_s2 + $0x284] ss:$24 sps:$4 sm:$0xff]   ;;  %v1465_v2 = vld [vmem:[%s1845_s2 + $0x2b0] ss:$24 sps:$4 sm:$0xff]  }
  0x20   : > { %857 = vmatprep.subr.bf16.mxu0 %v1368_v27  ;;  %899 = vmatpush1.bf16.msra.mxu1 %v1370_v28  ;;  %v262_v18 = vmax.f32 %v258_v11, 0.0  ;;  %v264_v19 = vmax.f32 %v260_v12, 0.0  ;;  %v1416_v27 = vld [vmem:[%s1845_s2 + $0x2d4] ss:$24 sps:$4 sm:$0xff]   ;;  %v1418_v28 = vld [vmem:[%s1845_s2 + $0x2a8] ss:$24 sps:$4 sm:$0xff]  }
  0x21   : > { %900 = vmatprep.subr.bf16.mxu1 %v1372_v29  ;;  %v1420_v29 = vld [vmem:[%s1845_s2 + $0x2dc] ss:$24 sps:$4 sm:$0xff]   ;;  %v1462_v0 = vld [vmem:[%s1845_s2 + $0x280] ss:$24 sps:$4 sm:$0xff]   ;;  %s1214_s23 = sshll.u32 %s1849_s16, 1  ;;  %s1317_s24 = sshll.u32 %s1849_s16, 2 }
  0x22   : > { %v266_v22 = vpack.c.bf16 %v264_v19, %v262_v18  ;;  %v1470_v3 = vld [vmem:[%s1845_s2 + $0x2e4] ss:$24 sps:$4 sm:$0xff]   ;;  %v1468_v4 = vld [vmem:[%s1845_s2 + $0x2e0] ss:$24 sps:$4 sm:$0xff]   ;;  %s203_s27 = scalar_lea.vmem %s1846_s3, %s1214_s23  ;;  %s208_s30 = scalar_lea.vmem %s1847_s4, %s1317_s24  ;;  %vm1047_vm4 = vcmp.lt.s32.totalorder %v217_v34, 256 }
  0x23   : > { %858 = vmatpush1.bf16.msra.mxu0 %v1371_v30  ;;  %v261_v30 = vmax.f32 %v257_v24, 0.0 }
  0x24   : > { %859 = vmatprep.subr.bf16.mxu0 %v1374_v31  ;;  %901 = vmatpush1.bf16.msra.mxu1 %v1376_v32  ;;  %v263_v31 = vmax.f32 %v259_v25, 0.0  ;;  %v1419_v32 = vld [vmem:[%s1845_s2 + $0x2d0] ss:$24 sps:$4 sm:$0xff]  }
  0x25   : > { %902 = vmatprep.subr.bf16.mxu1 %v1378_v33  ;;  %875 = vmatprep.mubr.bf16.mxu0 %v266_v22  ;;  %v1425_v33 = vld [vmem:[%s1845_s2 + $0x14] ss:$24 sps:$4 sm:$0xff]  }
  0x26   : > { %918 = vmatprep.mubr.bf16.mxu1 %v266_v22 }
  0x27   : > { %860 = vmatpush1.bf16.msra.mxu0 %v1377_v35  ;;  %v1422_v35 = vld [vmem:[%s1845_s2 + $0x2d8] ss:$24 sps:$4 sm:$0xff]  }
  0x28   : > { %861 = vmatprep.subr.bf16.mxu0 %v1380_v36  ;;  %903 = vmatpush1.bf16.msra.mxu1 %v1382_v37  ;;  %v1728_v36 = vpack.c.bf16 %v263_v31, %v261_v30  ;;  %v1423_v37 = vld [vmem:[%s1845_s2 + $0x10] ss:$24 sps:$4 sm:$0xff]  }
  0x29   : > { %904 = vmatprep.subr.bf16.mxu1 %v1384_v38  ;;  %v1428_v38 = vld [vmem:[%s1845_s2 + $0x44] ss:$24 sps:$4 sm:$0xff]  }
  0x2b   : > { %862 = vmatpush1.bf16.msra.mxu0 %v1383_v40  ;;  %v1426_v40 = vld [vmem:[%s1845_s2 + $0x40] ss:$24 sps:$4 sm:$0xff]  }
  0x2c   : > { %863 = vmatprep.subr.bf16.mxu0 %v1386_v41  ;;  %905 = vmatpush1.bf16.msra.mxu1 %v1388_v42  ;;  %v1431_v41 = vld [vmem:[%s1845_s2 + $0x74] ss:$24 sps:$4 sm:$0xff]   ;;  %v1429_v42 = vld [vmem:[%s1845_s2 + $0x70] ss:$24 sps:$4 sm:$0xff]  }
  0x2d   : > { %906 = vmatprep.subr.bf16.mxu1 %v1390_v43  ;;  %v1434_v43 = vld [vmem:[%s1845_s2 + $0xa4] ss:$24 sps:$4 sm:$0xff]  }
  0x2f   : > { %864 = vmatpush1.bf16.msra.mxu0 %v1389_v45  ;;  %v1437_v45 = vld [vmem:[%s1845_s2 + $0xd4] ss:$24 sps:$4 sm:$0xff]  }
  0x30   : > { %865 = vmatprep.subr.bf16.mxu0 %v1392_v48  ;;  %907 = vmatpush1.bf16.msra.mxu1 %v1394_v49  ;;  %v1438_v48 = vld [vmem:[%s1845_s2 + $0x100] ss:$24 sps:$4 sm:$0xff]   ;;  %v1443_v49 = vld [vmem:[%s1845_s2 + $0x134] ss:$24 sps:$4 sm:$0xff]  }
  0x31   : > { %908 = vmatprep.subr.bf16.mxu1 %v1396_v50  ;;  %v1441_v50 = vld [vmem:[%s1845_s2 + $0x130] ss:$24 sps:$4 sm:$0xff]  }
  0x33   : > { %866 = vmatpush1.bf16.msra.mxu0 %v1395_v56  ;;  %v1450_v56 = vld [vmem:[%s1845_s2 + $0x1c0] ss:$24 sps:$4 sm:$0xff]  }
  0x34   : > { %867 = vmatprep.subr.bf16.mxu0 %v1398_v61  ;;  %909 = vmatpush1.bf16.msra.mxu1 %v1400_v62  ;;  %v1461_v61 = vld [vmem:[%s1845_s2 + $0x254] ss:$24 sps:$4 sm:$0xff]   ;;  %v1459_v62 = vld [vmem:[%s1845_s2 + $0x250] ss:$24 sps:$4 sm:$0xff]  }
  0x35   : > { %910 = vmatprep.subr.bf16.mxu1 %v1402_v1  ;;  %v1467_v1 = vld [vmem:[%s1845_s2 + $0x2b4] ss:$24 sps:$4 sm:$0xff]  }
  0x37   : > { %868 = vmatpush1.bf16.msra.mxu0 %v1401_v6 }
  0x38   : > { %869 = vmatprep.subr.bf16.mxu0 %v1404_v9  ;;  %911 = vmatpush1.bf16.msra.mxu1 %v1406_v10 }
  0x39   : > { %912 = vmatprep.subr.bf16.mxu1 %v1408_v13 }
  0x3b   : > { %870 = vmatpush1.bf16.msra.mxu0 %v1407_v17 }
  0x3c   : > { %871 = vmatprep.subr.bf16.mxu0 %v1410_v20  ;;  %913 = vmatpush1.bf16.msra.mxu1 %v1412_v21 }
  0x3d   : > { %914 = vmatprep.subr.bf16.mxu1 %v1414_v23 }
  0x3f   : > { %872 = vmatpush1.bf16.msra.mxu0 %v1413_v26 }
  0x40   : > { %873 = vmatprep.subr.bf16.mxu0 %v1416_v27  ;;  %915 = vmatpush1.bf16.msra.mxu1 %v1418_v28  ;;  %v974_v27 = vadd.s32 8, %v1634_v39 }
  0x41   : > { %916 = vmatprep.subr.bf16.mxu1 %v1420_v29 }
  0x42   : > { %vm1004_vm3 = vcmp.eq.s32.totalorder %v974_v27, 15 }
  0x43   : > { %874 = vmatpush1.bf16.msra.mxu0 %v1419_v32 }
  0x44   : > { %929 = vmatprep.subr.bf16.mxu0 %v1425_v33  ;;  %917 = vmatpush1.bf16.msra.mxu1 %v1422_v35 }
  0x46   : > { %876 = vmatmul.mubr.bf16.vlgmr.msra.gmra.mrb[0].mxu0 %v1728_v36 }
  0x47   : > { %930 = vmatpush1.bf16.msra.mxu0 %v1423_v37  ;;  %961 = vmatprep.mubr.bf16.mxu0 %v266_v22 }
  0x48   : > { %919 = vmatmul.mubr.bf16.vlgmr.msra.gmra.mrb[0].mxu1 %v1728_v36  ;;  %931 = vmatprep.subr.bf16.mxu0 %v1428_v38 }
  0x4b   : > { %932 = vmatpush1.bf16.msra.mxu0 %v1426_v40 }
  0x4c   : > { %933 = vmatprep.subr.bf16.mxu0 %v1431_v41 }
  0x4f   : > { %934 = vmatpush1.bf16.msra.mxu0 %v1429_v42 }
  0x50   : > { %935 = vmatprep.subr.bf16.mxu0 %v1434_v43 }
  0x53   : > { %936 = vmatpush1.bf16.msra.mxu0 %v1432_v44 }
  0x54   : > { %937 = vmatprep.subr.bf16.mxu0 %v1437_v45 }
  0x57   : > { %938 = vmatpush1.bf16.msra.mxu0 %v1435_v46 }
  0x58   : > { %939 = vmatprep.subr.bf16.mxu0 %v1440_v47 }
  0x5b   : > { %940 = vmatpush1.bf16.msra.mxu0 %v1438_v48 }
  0x5c   : > { %941 = vmatprep.subr.bf16.mxu0 %v1443_v49 }
  0x5f   : > { %942 = vmatpush1.bf16.msra.mxu0 %v1441_v50 }
  0x60   : > { %943 = vmatprep.subr.bf16.mxu0 %v1446_v51 }
  0x63   : > { %944 = vmatpush1.bf16.msra.mxu0 %v1444_v52 }
  0x64   : > { %945 = vmatprep.subr.bf16.mxu0 %v1449_v53 }
  0x67   : > { %946 = vmatpush1.bf16.msra.mxu0 %v1447_v54 }
  0x68   : > { %947 = vmatprep.subr.bf16.mxu0 %v1452_v55 }
  0x6b   : > { %948 = vmatpush1.bf16.msra.mxu0 %v1450_v56 }
  0x6c   : > { %949 = vmatprep.subr.bf16.mxu0 %v1455_v57 }
  0x6f   : > { %950 = vmatpush1.bf16.msra.mxu0 %v1453_v58 }
  0x70   : > { %951 = vmatprep.subr.bf16.mxu0 %v1458_v59 }
  0x73   : > { %952 = vmatpush1.bf16.msra.mxu0 %v1456_v60 }
  0x74   : > { %953 = vmatprep.subr.bf16.mxu0 %v1461_v61 }
  0x77   : > { %954 = vmatpush1.bf16.msra.mxu0 %v1459_v62 }
  0x78   : > { %955 = vmatprep.subr.bf16.mxu0 %v1464_v63 }
  0x7b   : > { %956 = vmatpush1.bf16.msra.mxu0 %v1462_v0 }
  0x7c   : > { %957 = vmatprep.subr.bf16.mxu0 %v1467_v1 }
  0x7f   : > { %958 = vmatpush1.bf16.msra.mxu0 %v1465_v2  ;;  %v1479_v2 = vmov 1966171168  }
  0x80   : > { %959 = vmatprep.subr.bf16.mxu0 %v1470_v3  ;;  %v1031_v3 = vunpack.c.l.s4 %v1479_v2 }
  0x83   : > { %960 = vmatpush1.bf16.msra.mxu0 %v1468_v4 }
  0x86   : > { %962 = vmatmul.mubr.bf16.vlgmr.msra.gmra.mrb[4].mxu0 %v1728_v36 }
 0x119   : > { %v877_v5 = vpop.f32.mrb[0].mxu0 }
 0x11a   : > { %v975_v6 = vrot.slane %v877_v5, 7  ;;  %v879_v7 = vpop.f32.mrb[1].mxu0 }
 0x11b   : > { %v881_v8 = vpop.f32.mrb[2].mxu0  ;;  %v920_v9 = vpop.f32.mrb[0].mxu1  ;;  %v976_v13 = vrot.slane %v879_v7, 7 }
 0x11c   : > { %v977_v10 = vrot.slane %v881_v8, 7  ;;  %v883_v11 = vpop.f32.mrb[3].mxu0  ;;  %v922_v12 = vpop.f32.mrb[1].mxu1 }
 0x11d   : > { %v978_v14 = vrot.slane %v883_v11, 7  ;;  %v924_v15 = vpop.f32.mrb[2].mxu1 }
 0x11e   : > { %v982_v16 = vsel %vm979_vm0, %v977_v10, %v975_v6  ;;  %v980_v17 = vsel %vm979_vm0, %v975_v6, %v977_v10  ;;  %v926_v18 = vpop.f32.mrb[3].mxu1 }
 0x11f   : > { %v986_v19 = vsel %vm984_vm1, 0.0, %v982_v16  ;;  %v983_v20 = vsel %vm979_vm0, %v978_v14, %v976_v13  ;;  %v992_v21 = vadd.f32 %v980_v17, %v924_v15  ;;  %v981_v22 = vsel %vm979_vm0, %v976_v13, %v978_v14 }
 0x120   : > { %v990_v23 = vadd.f32 %v986_v19, %v920_v9  ;;  %v987_v24 = vsel %vm984_vm1, 0.0, %v983_v20  ;;  %v993_v25 = vadd.f32 %v981_v22, %v926_v18  ;;  %v1032_v16 = vunpack.c.0.s8 %v1031_v3 }
 0x121   : > { %v991_v26 = vadd.f32 %v987_v24, %v922_v12 }
 0x159   : > { %v963_v28 = vpop.f32.mrb[4].mxu0 }
 0x15a   : > { %v965_v29 = vpop.f32.mrb[5].mxu0  ;;  %v994_v31 = vrot.slane %v963_v28, 1 }
 0x15b   : > { %v967_v30 = vpop.f32.mrb[6].mxu0  ;;  %v995_v35 = vrot.slane %v965_v29, 1  ;;  %v1035_v29 = vsub.s32 %v1032_v16, %v1634_v39 }
 0x15c   : > { %v996_v32 = vrot.slane %v967_v30, 1  ;;  %v969_v33 = vpop.f32.mrb[7].mxu0 }
 0x15d   : > { %v997_v36 = vrot.slane %v969_v33, 1 }
 0x15e   : > { %v999_v37 = vsel %vm998_vm2, %v994_v31, %v996_v32  ;;  %v1001_v38 = vsel %vm998_vm2, %v996_v32, %v994_v31 }
 0x15f   : > { %v1007_v40 = vsel %vm1004_vm3, 0.0, %v1001_v38  ;;  %v1009_v41 = vadd.f32 %v999_v37, %v990_v23  ;;  %v1000_v42 = vsel %vm998_vm2, %v995_v35, %v997_v36  ;;  %v1002_v43 = vsel %vm998_vm2, %v997_v36, %v995_v35 }
 0x160   : > { %v1011_v44 = vadd.f32 %v1007_v40, %v992_v21  ;;  %v1008_v45 = vsel %vm1004_vm3, 0.0, %v1002_v43  ;;  %v1010_v46 = vadd.f32 %v1000_v42, %v991_v26 }
 0x161   : > { %v1050_v47 = vmul.f32 %v1009_v41, %v1009_v41  ;;  %v1012_v48 = vadd.f32 %v1008_v45, %v993_v25 }
 0x162   : > { %v1013_v49 = vadd.f32 %v1011_v44, %v1009_v41  ;;  %v1052_v50 = vmul.f32 %v1011_v44, %v1011_v44  ;;  %v1088_v51 = vmax.f32 %v1009_v41, %v1011_v44  ;;  %v1051_v52 = vmul.f32 %v1010_v46, %v1010_v46 }
 0x163   : > { %v1020_v53 = vadd.f32 %v1012_v48, %v1010_v46  ;;  %v1053_v54 = vmul.f32 %v1012_v48, %v1012_v48  ;;  %v1095_v55 = vmax.f32 %v1010_v46, %v1012_v48 }
 0x164   : > { %v1014_v56 = vrot.slane %v1013_v49, 4  ;;  %v1054_v57 = vadd.f32 %v1052_v50, %v1050_v47  ;;  %v1089_v58 = vrot.slane %v1088_v51, 4 }
 0x165   : > { %v1021_v59 = vrot.slane %v1020_v53, 4  ;;  %v1061_v60 = vadd.f32 %v1053_v54, %v1051_v52  ;;  %v1096_v61 = vrot.slane %v1095_v55, 4 }
 0x166   : > { %v1015_v62 = vadd.f32 %v1014_v56, %v1013_v49  ;;  %v1055_v63 = vrot.slane %v1054_v57, 4  ;;  %v1090_v0 = vmax.f32 %v1088_v51, %v1089_v58 }
 0x167   : > { %v1022_v1 = vadd.f32 %v1021_v59, %v1020_v53  ;;  %v1062_v4 = vrot.slane %v1061_v60, 4  ;;  %v1097_v5 = vmax.f32 %v1095_v55, %v1096_v61 }
 0x168   : > { %v1016_v6 = vrot.slane %v1015_v62, 2  ;;  %v1056_v7 = vadd.f32 %v1055_v63, %v1054_v57  ;;  %v1091_v8 = vrot.slane %v1090_v0, 2 }
 0x169   : > { %v1023_v9 = vrot.slane %v1022_v1, 2  ;;  %v1063_v10 = vadd.f32 %v1062_v4, %v1061_v60  ;;  %v1098_v11 = vrot.slane %v1097_v5, 2 }
 0x16a   : > { %v1017_v12 = vadd.f32 %v1016_v6, %v1015_v62  ;;  %v1057_v13 = vrot.slane %v1056_v7, 2  ;;  %v1092_v14 = vmax.f32 %v1090_v0, %v1091_v8 }
 0x16b   : > { %v1024_v15 = vadd.f32 %v1023_v9, %v1022_v1  ;;  %v1064_v17 = vrot.slane %v1063_v10, 2  ;;  %v1099_v18 = vmax.f32 %v1097_v5, %v1098_v11 }
 0x16c   : > { %v1018_v19 = vrot.slane %v1017_v12, 1  ;;  %v1058_v20 = vadd.f32 %v1057_v13, %v1056_v7  ;;  %v1093_v21 = vrot.slane %v1092_v14, 1 }
 0x16d   : > { %v1025_v22 = vrot.slane %v1024_v15, 1  ;;  %v1065_v23 = vadd.f32 %v1064_v17, %v1063_v10  ;;  %v1100_v24 = vrot.slane %v1099_v18, 1 }
 0x16e   : > { %v1019_v25 = vadd.f32 %v1018_v19, %v1017_v12  ;;  %v1059_v26 = vrot.slane %v1058_v20, 1  ;;  %v1094_v27 = vmax.f32 %v1092_v14, %v1093_v21 }
 0x16f   : > { %v1026_v28 = vadd.f32 %v1025_v22, %v1024_v15  ;;  %v1066_v30 = vrot.slane %v1065_v23, 1  ;;  %v1101_v31 = vmax.f32 %v1099_v18, %v1100_v24 }
 0x170   : > { %v1060_v32 = vadd.f32 %v1059_v26, %v1058_v20 }
 0x171   : > { %v1029_v33 = vcombine.low %v1019_v25, %v1026_v28  ;;  %v1067_v35 = vadd.f32 %v1066_v30, %v1065_v23  ;;  %v1104_v36 = vcombine.low %v1094_v27, %v1101_v31 }
 0x173   : > { %v1036_v37 = vrot.slane %v1029_v33, %v1035_v29  ;;  %v1070_v38 = vcombine.low %v1060_v32, %v1067_v35  ;;  %v1111_v40 = vrot.slane %v1104_v36, %v1035_v29 }
 0x175   : > { %v1043_v39 = vrot.slane %v1036_v37, %v1035_v29  ;;  %v1077_v41 = vrot.slane %v1070_v38, %v1035_v29  ;;  %v1118_v42 = vrot.slane %v1111_v40, %v1035_v29 }
 0x177   : > { %1049 = vst.msk [vmem:[%s208_s30] ss:$2 sm:$0x3] %vm1047_vm4, %v1043_v39  ;;  %v1084_v43 = vrot.slane %v1077_v41, %v1035_v29  ;;  %1120 = vst.msk [vmem:[%s203_s27] sm:$0x3] %vm1047_vm4, %v1118_v42 }
 0x179   : > { %1313 = vst.msk [vmem:[%s208_s30 + $0x1] ss:$2 sm:$0x3] %vm1047_vm4, %v1084_v43 }
 0x17a PF: > { %s15_s15 = sadd.s32 1, %s1477_s15  }
 0x17b   : > { %p12_p4 = scmp.ge.s32.totalorder %s15_s15, 4  }
 0x17d   :  { %14 = sbr.rel (!%p12_p4) target bundleno = 1 (0x1), region = 75 }

</bundles_post_ra>
